<compile_context>
chip_gen: v7x
topology: tpu7x:2x2x1
jax: 0.10.0
libtpu: 0.0.40
codegen_flags: <defaults>
</compile_context>

<pallas_src>
import functools
import math

import jax
import jax.numpy as jnp
from jax.experimental import pallas as pl
from jax.experimental.pallas import tpu as pltpu


def _pick_tile(n, target, mult=16):
    """Largest tile <= target that divides n (multiple of `mult`), else n."""
    if n <= target:
        return n
    t = (target // mult) * mult
    while t >= mult:
        if n % t == 0:
            return t
        t -= mult
    return n


def _vmem_limit_bytes():
    """~75% of physical VMEM: ~48 MiB on v7x, ~96 MiB on v5e/v6e."""
    cap = 64 * 1024 * 1024
    try:
        info = pltpu.get_tpu_info()
        cap = int(getattr(info, "vmem_capacity_bytes", cap) or cap)
    except Exception:
        pass
    return int(cap * 3 // 4)


def _flash_spatial_attn_kernel(x_ref, wq_ref, wkv_ref, wout_ref, bout_ref,
                               o_ref, kv_cache, q_scr, m_scr, l_scr, acc_scr,
                               *, heads, tq, tk):
    # x_ref:    (N, C)         bf16 -- all rows of x for this batch element (resident)
    # wq_ref:   (C, C)         bf16 -- q projection, softmax scale pre-folded
    # wkv_ref:  (C, 2C)        bf16 -- [k | v] projection
    # wout_ref: (C, C)         bf16 -- output projection (out_ch, in_ch)
    # bout_ref: (C, 1)         f32  -- output projection bias
    # o_ref:    (C, tq)        out  -- output tile in (B, C, N) layout
    # kv_cache: (N, 2C)        bf16 -- projected [K | V] for this batch element
    # q_scr:    (tq, C)        bf16 -- projected+scaled q for this Q tile
    # m_scr:    (heads, tq, 1) f32  -- running row max per head
    # l_scr:    (heads, tq, 1) f32  -- running row sum per head
    # acc_scr:  (tq, C)        f32  -- un-normalized per-head outputs
    i = pl.program_id(1)          # Q-tile index (sequential; fills kv_cache at 0)
    j = pl.program_id(2)          # KV-chunk index (online-softmax reduction)
    C = wq_ref.shape[0]
    d = C // heads

    kv_row = pl.multiple_of(j * tk, tk)
    q_row = pl.multiple_of(i * tq, tq)

    # Project this KV chunk exactly once per batch element (first Q tile only);
    # every later Q tile reuses the cached bf16 [K|V].
    @pl.when(i == 0)
    def _():
        xkv = x_ref[pl.ds(kv_row, tk), :]                           # (tk, C) bf16
        kv = jnp.dot(xkv, wkv_ref[...], preferred_element_type=jnp.float32)
        kv_cache[pl.ds(kv_row, tk), :] = kv.astype(kv_cache.dtype)

    # Per-Q-tile init: project q (scale folded into Wq), reset softmax state.
    @pl.when(j == 0)
    def _():
        xq = x_ref[pl.ds(q_row, tq), :]                             # (tq, C) bf16
        q = jnp.dot(xq, wq_ref[...], preferred_element_type=jnp.float32)
        q_scr[...] = q.astype(q_scr.dtype)                          # bf16 for MXU
        m_scr[...] = jnp.full(m_scr.shape, -jnp.inf, dtype=m_scr.dtype)
        l_scr[...] = jnp.zeros(l_scr.shape, dtype=l_scr.dtype)
        acc_scr[...] = jnp.zeros(acc_scr.shape, dtype=acc_scr.dtype)

    # TODO(synk): lax.fori_loop(..., unroll=True) for large head counts.
    for h in range(heads):                                          # static unroll
        qh = q_scr[:, h * d:(h + 1) * d]                            # (tq, d) bf16
        kh = kv_cache[pl.ds(kv_row, tk), h * d:(h + 1) * d]         # (tk, d) bf16
        vh = kv_cache[pl.ds(kv_row, tk), C + h * d:C + (h + 1) * d]  # (tk, d) bf16

        # s = qh @ kh^T : contract axis 1 of both (no explicit transpose).
        s = jax.lax.dot_general(qh, kh, (((1,), (1,)), ((), ())),
                                preferred_element_type=jnp.float32)  # (tq, tk) f32

        m_prev = m_scr[h]                                           # (tq, 1) f32
        m_new = jnp.maximum(m_prev, jnp.max(s, axis=-1, keepdims=True))
        alpha = jnp.exp(m_prev - m_new)                             # f32 (VPU/EUP)
        # TODO(synk): bf16 exp relieves the EUP for multi-head on v6e/v7x;
        # kept f32 here for portability (v5e has no bf16 EUP/VPU).
        p = jnp.exp(s - m_new)                                      # (tq, tk) f32

        l_scr[h] = alpha * l_scr[h] + jnp.sum(p, axis=-1, keepdims=True)
        acc_scr[:, h * d:(h + 1) * d] = (
            alpha * acc_scr[:, h * d:(h + 1) * d]
            + jnp.dot(p.astype(vh.dtype), vh, preferred_element_type=jnp.float32))
        m_scr[h] = m_new

    @pl.when(j == pl.num_programs(2) - 1)
    def _():
        # Normalize each head in place, then fused out-projection (+bias),
        # emitted as a (C, tq) tile so the wrapper needs no output transpose.
        for h in range(heads):
            inv = pl.reciprocal(l_scr[h], approx=True)              # (tq, 1) EUP
            acc_scr[:, h * d:(h + 1) * d] = acc_scr[:, h * d:(h + 1) * d] * inv
        o = acc_scr[...].astype(wout_ref.dtype)                     # (tq, C) bf16
        y = jax.lax.dot_general(wout_ref[...], o, (((1,), (1,)), ((), ())),
                                preferred_element_type=jnp.float32)  # (C, tq) f32
        y = y + bout_ref[...]                                        # + bias (C, 1)
        o_ref[...] = y.astype(o_ref.dtype)


def spatial_self_attention(x_nchw, w_qkv, w_out, b_out, heads,
                           *, q_tile=512, kv_tile=512, out_dtype=jnp.bfloat16):
    """x_nchw: (B, C, H, W); w_qkv: (3C, C); w_out: (C, C); b_out: (C,)."""
    B, C, H, W = x_nchw.shape
    N = H * W
    d = C // heads
    scale = d ** (-0.5)

    tq = _pick_tile(N, q_tile)
    tk = _pick_tile(N, kv_tile)
    nq = N // tq
    nkv = N // tk

    # bf16 *before* the layout transpose (halves transpose HBM traffic);
    # (B, N, C) so the 1x1 convs are plain matmuls with C on the lane dim.
    x_bnc = jnp.transpose(x_nchw.reshape(B, C, N).astype(jnp.bfloat16), (0, 2, 1))

    # Split qkv weight; fold softmax scale into Wq (saves N^2 VPU multiplies).
    wq_t = (jnp.transpose(w_qkv[:C], (1, 0)) * scale).astype(jnp.bfloat16)   # (C, C)
    wkv_t = jnp.transpose(w_qkv[C:], (1, 0)).astype(jnp.bfloat16)            # (C, 2C)
    wout = w_out.astype(jnp.bfloat16)                                        # (C, C)
    bout = b_out.reshape(C, 1).astype(jnp.float32)                           # (C, 1)

    kernel = functools.partial(_flash_spatial_attn_kernel, heads=heads, tq=tq, tk=tk)

    out_bytes = jnp.dtype(out_dtype).itemsize
    flops = int(B * (8 * N * C * C + 4 * N * N * C))
    transcendentals = int(B * heads * (N * N + N * nkv))
    bytes_accessed = int(B * N * C * 2                   # x read once per batch elem
                         + B * N * C * out_bytes         # output writeback
                         + 2 * (wq_t.size + wkv_t.size + wout.size)
                         + 4 * bout.size)

    out_bcn = pl.pallas_call(
        kernel,
        out_shape=jax.ShapeDtypeStruct((B, C, N), out_dtype),
        grid_spec=pltpu.PrefetchScalarGridSpec(
            num_scalar_prefetch=0,
            grid=(B, nq, nkv),
            in_specs=[
                # x is batch-resident: DMA'd once per batch element; both the
                # Q tile and the KV chunk are sliced from it in VMEM.
                pl.BlockSpec((None, N, C), lambda b, i, j: (b, 0, 0)),
                pl.BlockSpec((C, C), lambda b, i, j: (0, 0)),       # Wq (scaled)
                pl.BlockSpec((C, 2 * C), lambda b, i, j: (0, 0)),   # Wkv
                pl.BlockSpec((C, C), lambda b, i, j: (0, 0)),       # Wout
                pl.BlockSpec((C, 1), lambda b, i, j: (0, 0)),       # bias
            ],
            # Output emitted directly in (B, C, N): no post-kernel transpose.
            out_specs=pl.BlockSpec((None, C, tq), lambda b, i, j: (b, 0, i)),
            scratch_shapes=[
                pltpu.VMEM((N, 2 * C), jnp.bfloat16),     # cached [K|V] projection
                pltpu.VMEM((tq, C), jnp.bfloat16),        # projected q tile
                pltpu.VMEM((heads, tq, 1), jnp.float32),  # running max m
                pltpu.VMEM((heads, tq, 1), jnp.float32),  # running sum l
                pltpu.VMEM((tq, C), jnp.float32),         # output accumulator
            ],
        ),
        compiler_params=pltpu.CompilerParams(
            # The Q-tile axis must be sequential ("arbitrary"): kv_cache is
            # filled at i == 0 and reused by later Q tiles.  Megacore (v7x)
            # parallelism comes from the batch axis; KV axis is the reduction.
            dimension_semantics=("parallel", "arbitrary", "arbitrary"),
            # ~75% of physical VMEM -> headroom for Mosaic internal scratch
            # (~48 MiB on v7x's 64 MiB, ~96 MiB on v5e/v6e's 128 MiB).
            vmem_limit_bytes=_vmem_limit_bytes(),
        ),
        cost_estimate=pl.CostEstimate(
            flops=flops,
            transcendentals=transcendentals,
            bytes_accessed=bytes_accessed,
        ),
    )(x_bnc, wq_t, wkv_t, wout, bout)

    # Already (B, C, N): just reshape back to NCHW (no transpose, no extra pass).
    return out_bcn.reshape(B, C, H, W)


def spatial_self_attention_reference(x_nchw, w_qkv, w_out, b_out, heads):
    """Pure-JAX (f32) mirror of the PyTorch forward for verification."""
    B, C, H, W = x_nchw.shape
    N = H * W
    d = C // heads
    scale = d ** (-0.5)
    xf = x_nchw.reshape(B, C, N)
    qkv = jnp.einsum("oc,bcn->bon", w_qkv, xf)            # (B, 3C, N)
    q, k, v = jnp.split(qkv, 3, axis=1)
    q = q.reshape(B, heads, d, N)
    k = k.reshape(B, heads, d, N)
    v = v.reshape(B, heads, d, N)
    attn = jnp.einsum("bhdn,bhdm->bhnm", q, k) * scale
    attn = jax.nn.softmax(attn, axis=-1)
    out = jnp.einsum("bhnm,bhdm->bhnd", attn, v)          # (B, h, N, d)
    out = jnp.transpose(out, (0, 1, 3, 2)).reshape(B, C, N)
    y = jnp.einsum("oc,bcn->bon", w_out, out) + b_out[None, :, None]
    return y.reshape(B, C, H, W)


if __name__ == "__main__":
    # Small shapes consistent with the module: B=2, C=32, H=W=8, heads=4 (d=8).
    B, C, H, W, heads = 2, 32, 8, 8, 4

    key = jax.random.PRNGKey(0)
    kx, kq, kw, kb = jax.random.split(key, 4)

    x = jax.random.normal(kx, (B, C, H, W), dtype=jnp.float32)
    # Deterministic synthetic parameters (Conv2d 1x1 weights squeezed to matrices).
    w_qkv = jax.random.normal(kq, (3 * C, C), dtype=jnp.float32) * (1.0 / math.sqrt(C))
    w_out = jax.random.normal(kw, (C, C), dtype=jnp.float32) * (1.0 / math.sqrt(C))
    b_out = jax.random.normal(kb, (C,), dtype=jnp.float32) * 0.1

    y = spatial_self_attention(x, w_qkv, w_out, b_out, heads)
    y = jax.block_until_ready(y)

    y_ref = spatial_self_attention_reference(x, w_qkv, w_out, b_out, heads)
    assert y.shape == (B, C, H, W)
    # bf16 MXU operands / bf16 output (f32 accumulation) vs a pure-f32
    # reference: expect ~1e-2-level differences, compare with loose tolerance.
    assert jnp.allclose(y.astype(jnp.float32), y_ref, atol=1e-1, rtol=1e-1), \
        "Pallas kernel mismatch vs reference"

    print("KERNEL_OK")
</pallas_src>

<mosaic_0001>
module attributes {stable_mosaic.version = 11 : i64} {
  func.func @_flash_spatial_attn_kernel(%arg0: i32, %arg1: i32, %arg2: i32, %arg3: memref<1x64x32xbf16, #tpu.memory_space<vmem>>, %arg4: memref<32x32xbf16, #tpu.memory_space<vmem>>, %arg5: memref<32x64xbf16, #tpu.memory_space<vmem>>, %arg6: memref<32x32xbf16, #tpu.memory_space<vmem>>, %arg7: memref<32x1xf32, #tpu.memory_space<vmem>>, %arg8: memref<1x32x64xbf16, #tpu.memory_space<vmem>>, %arg9: memref<64x64xbf16, #tpu.memory_space<vmem>>, %arg10: memref<64x32xbf16, #tpu.memory_space<vmem>>, %arg11: memref<4x64x1xf32, #tpu.memory_space<vmem>>, %arg12: memref<4x64x1xf32, #tpu.memory_space<vmem>>, %arg13: memref<64x32xf32, #tpu.memory_space<vmem>>) attributes {dimension_semantics = [#tpu.dimension_semantics<parallel>, #tpu.dimension_semantics<arbitrary>, #tpu.dimension_semantics<arbitrary>], iteration_bounds = array<i64: 2, 1, 1>, scalar_prefetch = 0 : i64, scratch_operands = 5 : i64, tpu.core_type = #tpu.core_type<tc>, window_params = [{transform_indices = @transform_0, window_bounds = array<i64: 1, 64, 32>}, {pipeline_mode = #tpu.pipeline_mode<synchronous>, transform_indices = @transform_1, window_bounds = array<i64: 32, 32>}, {pipeline_mode = #tpu.pipeline_mode<synchronous>, transform_indices = @transform_2, window_bounds = array<i64: 32, 64>}, {pipeline_mode = #tpu.pipeline_mode<synchronous>, transform_indices = @transform_3, window_bounds = array<i64: 32, 32>}, {pipeline_mode = #tpu.pipeline_mode<synchronous>, transform_indices = @transform_4, window_bounds = array<i64: 32, 1>}, {transform_indices = @transform_5, window_bounds = array<i64: 1, 32, 64>}]} {
    %c64_i32 = arith.constant 64 : i32
    %0 = arith.muli %arg2, %c64_i32 : i32
    %1 = tpu.assume_multiple %0, 64 : i32
    %c64_i32_0 = arith.constant 64 : i32
    %2 = arith.muli %arg1, %c64_i32_0 : i32
    %3 = tpu.assume_multiple %2, 64 : i32
    %c0_i32 = arith.constant 0 : i32
    %4 = arith.cmpi eq, %arg1, %c0_i32 : i32
    %5 = arith.extui %4 : i1 to i32
    %c0_i32_1 = arith.constant 0 : i32
    %6 = arith.cmpi ne, %5, %c0_i32_1 : i32
    scf.if %6 {
      %c0_90 = arith.constant 0 : index
      %153 = arith.index_cast %1 : i32 to index
      %c0_91 = arith.constant 0 : index
      %154 = vector.load %arg3[%c0_90, %153, %c0_91] : memref<1x64x32xbf16, #tpu.memory_space<vmem>>, vector<1x64x32xbf16>
      %155 = vector.shape_cast %154 : vector<1x64x32xbf16> to vector<64x32xbf16>
      %c0_92 = arith.constant 0 : index
      %c0_93 = arith.constant 0 : index
      %156 = vector.load %arg5[%c0_92, %c0_93] : memref<32x64xbf16, #tpu.memory_space<vmem>>, vector<32x64xbf16>
      %cst_94 = arith.constant dense<0.000000e+00> : vector<64x64xf32>
      %157 = tpu.matmul %155, %156, %cst_94 {dimension_numbers = #tpu.dot_dimension_numbers<[1], [0], [0], [1], [0, 0, 1, 1], [], []>} : vector<64x32xbf16>, vector<32x64xbf16>, vector<64x64xf32> -> vector<64x64xf32>
      %158 = arith.truncf %157 : vector<64x64xf32> to vector<64x64xbf16>
      %159 = arith.index_cast %1 : i32 to index
      %c0_95 = arith.constant 0 : index
      %160 = vector.load %arg9[%159, %c0_95] : memref<64x64xbf16, #tpu.memory_space<vmem>>, vector<64x64xbf16>
      tpu.vector_store %arg9[%159, %c0_95], %158 {strides = array<i32>} : memref<64x64xbf16, #tpu.memory_space<vmem>>, vector<64x64xbf16>,
    } else {
    }
    %c0_i32_2 = arith.constant 0 : i32
    %7 = arith.cmpi eq, %arg2, %c0_i32_2 : i32
    %8 = arith.extui %7 : i1 to i32
    %c0_i32_3 = arith.constant 0 : i32
    %9 = arith.cmpi ne, %8, %c0_i32_3 : i32
    scf.if %9 {
      %c0_90 = arith.constant 0 : index
      %153 = arith.index_cast %3 : i32 to index
      %c0_91 = arith.constant 0 : index
      %154 = vector.load %arg3[%c0_90, %153, %c0_91] : memref<1x64x32xbf16, #tpu.memory_space<vmem>>, vector<1x64x32xbf16>
      %155 = vector.shape_cast %154 : vector<1x64x32xbf16> to vector<64x32xbf16>
      %c0_92 = arith.constant 0 : index
      %c0_93 = arith.constant 0 : index
      %156 = vector.load %arg4[%c0_92, %c0_93] : memref<32x32xbf16, #tpu.memory_space<vmem>>, vector<32x32xbf16>
      %cst_94 = arith.constant dense<0.000000e+00> : vector<64x32xf32>
      %157 = tpu.matmul %155, %156, %cst_94 {dimension_numbers = #tpu.dot_dimension_numbers<[1], [0], [0], [1], [0, 0, 1, 1], [], []>} : vector<64x32xbf16>, vector<32x32xbf16>, vector<64x32xf32> -> vector<64x32xf32>
      %158 = arith.truncf %157 : vector<64x32xf32> to vector<64x32xbf16>
      %c0_95 = arith.constant 0 : index
      %c0_96 = arith.constant 0 : index
      %159 = vector.load %arg10[%c0_95, %c0_96] : memref<64x32xbf16, #tpu.memory_space<vmem>>, vector<64x32xbf16>
      tpu.vector_store %arg10[%c0_95, %c0_96], %158 {strides = array<i32>} : memref<64x32xbf16, #tpu.memory_space<vmem>>, vector<64x32xbf16>,
      %cst_97 = arith.constant 0xFF800000 : f32
      %160 = vector.broadcast %cst_97 : f32 to vector<4x64x1xf32>
      %c0_98 = arith.constant 0 : index
      %c0_99 = arith.constant 0 : index
      %c0_100 = arith.constant 0 : index
      %161 = vector.load %arg11[%c0_98, %c0_99, %c0_100] : memref<4x64x1xf32, #tpu.memory_space<vmem>>, vector<4x64x1xf32>
      tpu.vector_store %arg11[%c0_98, %c0_99, %c0_100], %160 {strides = array<i32>} : memref<4x64x1xf32, #tpu.memory_space<vmem>>, vector<4x64x1xf32>,
      %cst_101 = arith.constant 0.000000e+00 : f32
      %162 = vector.broadcast %cst_101 : f32 to vector<4x64x1xf32>
      %c0_102 = arith.constant 0 : index
      %c0_103 = arith.constant 0 : index
      %c0_104 = arith.constant 0 : index
      %163 = vector.load %arg12[%c0_102, %c0_103, %c0_104] : memref<4x64x1xf32, #tpu.memory_space<vmem>>, vector<4x64x1xf32>
      tpu.vector_store %arg12[%c0_102, %c0_103, %c0_104], %162 {strides = array<i32>} : memref<4x64x1xf32, #tpu.memory_space<vmem>>, vector<4x64x1xf32>,
      %cst_105 = arith.constant 0.000000e+00 : f32
      %164 = vector.broadcast %cst_105 : f32 to vector<64x32xf32>
      %c0_106 = arith.constant 0 : index
      %c0_107 = arith.constant 0 : index
      %165 = vector.load %arg13[%c0_106, %c0_107] : memref<64x32xf32, #tpu.memory_space<vmem>>, vector<64x32xf32>
      tpu.vector_store %arg13[%c0_106, %c0_107], %164 {strides = array<i32>} : memref<64x32xf32, #tpu.memory_space<vmem>>, vector<64x32xf32>,
    } else {
    }
    %c0 = arith.constant 0 : index
    %c0_4 = arith.constant 0 : index
    %10 = vector.load %arg10[%c0, %c0_4] : memref<64x32xbf16, #tpu.memory_space<vmem>>, vector<64x8xbf16>
    %11 = arith.index_cast %1 : i32 to index
    %c0_5 = arith.constant 0 : index
    %12 = vector.load %arg9[%11, %c0_5] : memref<64x64xbf16, #tpu.memory_space<vmem>>, vector<64x8xbf16>
    %13 = arith.index_cast %1 : i32 to index
    %c32 = arith.constant 32 : index
    %14 = vector.load %arg9[%13, %c32] : memref<64x64xbf16, #tpu.memory_space<vmem>>, vector<64x8xbf16>
    %cst = arith.constant dense<0.000000e+00> : vector<64x64xf32>
    %15 = tpu.matmul %10, %12, %cst {dimension_numbers = #tpu.dot_dimension_numbers<[1], [1], [0], [0], [0, 0, 1, 0], [], []>} : vector<64x8xbf16>, vector<64x8xbf16>, vector<64x64xf32> -> vector<64x64xf32>
    %c0_6 = arith.constant 0 : index
    %c0_7 = arith.constant 0 : index
    %c0_8 = arith.constant 0 : index
    %16 = vector.load %arg11[%c0_6, %c0_7, %c0_8] : memref<4x64x1xf32, #tpu.memory_space<vmem>>, vector<1x64x1xf32>
    %17 = vector.shape_cast %16 : vector<1x64x1xf32> to vector<64x1xf32>
    %cst_9 = arith.constant dense<0xFF800000> : vector<64xf32>
    %18 = vector.multi_reduction <maximumf>, %15, %cst_9 [1] : vector<64x64xf32> to vector<64xf32>
    %19 = vector.shape_cast %18 : vector<64xf32> to vector<64x1xf32>
    %20 = arith.maximumf %17, %19 : vector<64x1xf32>
    %21 = arith.subf %17, %20 : vector<64x1xf32>
    %22 = math.exp %21 : vector<64x1xf32>
    %23 = vector.broadcast %20 : vector<64x1xf32> to vector<64x64xf32>
    %24 = arith.subf %15, %23 : vector<64x64xf32>
    %25 = math.exp %24 : vector<64x64xf32>
    %c0_10 = arith.constant 0 : index
    %c0_11 = arith.constant 0 : index
    %c0_12 = arith.constant 0 : index
    %26 = vector.load %arg12[%c0_10, %c0_11, %c0_12] : memref<4x64x1xf32, #tpu.memory_space<vmem>>, vector<1x64x1xf32>
    %27 = vector.shape_cast %26 : vector<1x64x1xf32> to vector<64x1xf32>
    %28 = arith.mulf %22, %27 : vector<64x1xf32>
    %cst_13 = arith.constant dense<0.000000e+00> : vector<64xf32>
    %29 = vector.multi_reduction <add>, %25, %cst_13 [1] : vector<64x64xf32> to vector<64xf32>
    %30 = vector.shape_cast %29 : vector<64xf32> to vector<64x1xf32>
    %31 = arith.addf %28, %30 : vector<64x1xf32>
    %c0_14 = arith.constant 0 : index
    %c0_15 = arith.constant 0 : index
    %c0_16 = arith.constant 0 : index
    %32 = vector.load %arg12[%c0_14, %c0_15, %c0_16] : memref<4x64x1xf32, #tpu.memory_space<vmem>>, vector<1x64x1xf32>
    %33 = vector.shape_cast %32 : vector<1x64x1xf32> to vector<64x1xf32>
    %34 = vector.shape_cast %31 : vector<64x1xf32> to vector<1x64x1xf32>
    tpu.vector_store %arg12[%c0_14, %c0_15, %c0_16], %34 {strides = array<i32>} : memref<4x64x1xf32, #tpu.memory_space<vmem>>, vector<1x64x1xf32>,
    %c0_17 = arith.constant 0 : index
    %c0_18 = arith.constant 0 : index
    %35 = vector.load %arg13[%c0_17, %c0_18] : memref<64x32xf32, #tpu.memory_space<vmem>>, vector<64x8xf32>
    %36 = vector.broadcast %22 : vector<64x1xf32> to vector<64x8xf32>
    %37 = arith.mulf %36, %35 : vector<64x8xf32>
    %38 = arith.truncf %25 : vector<64x64xf32> to vector<64x64xbf16>
    %cst_19 = arith.constant dense<0.000000e+00> : vector<64x8xf32>
    %39 = tpu.matmul %38, %14, %cst_19 {dimension_numbers = #tpu.dot_dimension_numbers<[1], [0], [0], [1], [0, 0, 1, 1], [], []>} : vector<64x64xbf16>, vector<64x8xbf16>, vector<64x8xf32> -> vector<64x8xf32>
    %40 = arith.addf %37, %39 : vector<64x8xf32>
    %c0_20 = arith.constant 0 : index
    %c0_21 = arith.constant 0 : index
    %41 = vector.load %arg13[%c0_20, %c0_21] : memref<64x32xf32, #tpu.memory_space<vmem>>, vector<64x8xf32>
    tpu.vector_store %arg13[%c0_20, %c0_21], %40 {strides = array<i32>} : memref<64x32xf32, #tpu.memory_space<vmem>>, vector<64x8xf32>,
    %c0_22 = arith.constant 0 : index
    %c0_23 = arith.constant 0 : index
    %c0_24 = arith.constant 0 : index
    %42 = vector.load %arg11[%c0_22, %c0_23, %c0_24] : memref<4x64x1xf32, #tpu.memory_space<vmem>>, vector<1x64x1xf32>
    %43 = vector.shape_cast %42 : vector<1x64x1xf32> to vector<64x1xf32>
    %44 = vector.shape_cast %20 : vector<64x1xf32> to vector<1x64x1xf32>
    tpu.vector_store %arg11[%c0_22, %c0_23, %c0_24], %44 {strides = array<i32>} : memref<4x64x1xf32, #tpu.memory_space<vmem>>, vector<1x64x1xf32>,
    %c0_25 = arith.constant 0 : index
    %c8 = arith.constant 8 : index
    %45 = vector.load %arg10[%c0_25, %c8] : memref<64x32xbf16, #tpu.memory_space<vmem>>, vector<64x8xbf16>
    %46 = arith.index_cast %1 : i32 to index
    %c8_26 = arith.constant 8 : index
    %47 = vector.load %arg9[%46, %c8_26] : memref<64x64xbf16, #tpu.memory_space<vmem>>, vector<64x8xbf16>
    %48 = arith.index_cast %1 : i32 to index
    %c40 = arith.constant 40 : index
    %49 = vector.load %arg9[%48, %c40] : memref<64x64xbf16, #tpu.memory_space<vmem>>, vector<64x8xbf16>
    %cst_27 = arith.constant dense<0.000000e+00> : vector<64x64xf32>
    %50 = tpu.matmul %45, %47, %cst_27 {dimension_numbers = #tpu.dot_dimension_numbers<[1], [1], [0], [0], [0, 0, 1, 0], [], []>} : vector<64x8xbf16>, vector<64x8xbf16>, vector<64x64xf32> -> vector<64x64xf32>
    %c1 = arith.constant 1 : index
    %c0_28 = arith.constant 0 : index
    %c0_29 = arith.constant 0 : index
    %51 = vector.load %arg11[%c1, %c0_28, %c0_29] : memref<4x64x1xf32, #tpu.memory_space<vmem>>, vector<1x64x1xf32>
    %52 = vector.shape_cast %51 : vector<1x64x1xf32> to vector<64x1xf32>
    %cst_30 = arith.constant dense<0xFF800000> : vector<64xf32>
    %53 = vector.multi_reduction <maximumf>, %50, %cst_30 [1] : vector<64x64xf32> to vector<64xf32>
    %54 = vector.shape_cast %53 : vector<64xf32> to vector<64x1xf32>
    %55 = arith.maximumf %52, %54 : vector<64x1xf32>
    %56 = arith.subf %52, %55 : vector<64x1xf32>
    %57 = math.exp %56 : vector<64x1xf32>
    %58 = vector.broadcast %55 : vector<64x1xf32> to vector<64x64xf32>
    %59 = arith.subf %50, %58 : vector<64x64xf32>
    %60 = math.exp %59 : vector<64x64xf32>
    %c1_31 = arith.constant 1 : index
    %c0_32 = arith.constant 0 : index
    %c0_33 = arith.constant 0 : index
    %61 = vector.load %arg12[%c1_31, %c0_32, %c0_33] : memref<4x64x1xf32, #tpu.memory_space<vmem>>, vector<1x64x1xf32>
    %62 = vector.shape_cast %61 : vector<1x64x1xf32> to vector<64x1xf32>
    %63 = arith.mulf %57, %62 : vector<64x1xf32>
    %cst_34 = arith.constant dense<0.000000e+00> : vector<64xf32>
    %64 = vector.multi_reduction <add>, %60, %cst_34 [1] : vector<64x64xf32> to vector<64xf32>
    %65 = vector.shape_cast %64 : vector<64xf32> to vector<64x1xf32>
    %66 = arith.addf %63, %65 : vector<64x1xf32>
    %c1_35 = arith.constant 1 : index
    %c0_36 = arith.constant 0 : index
    %c0_37 = arith.constant 0 : index
    %67 = vector.load %arg12[%c1_35, %c0_36, %c0_37] : memref<4x64x1xf32, #tpu.memory_space<vmem>>, vector<1x64x1xf32>
    %68 = vector.shape_cast %67 : vector<1x64x1xf32> to vector<64x1xf32>
    %69 = vector.shape_cast %66 : vector<64x1xf32> to vector<1x64x1xf32>
    tpu.vector_store %arg12[%c1_35, %c0_36, %c0_37], %69 {strides = array<i32>} : memref<4x64x1xf32, #tpu.memory_space<vmem>>, vector<1x64x1xf32>,
    %c0_38 = arith.constant 0 : index
    %c8_39 = arith.constant 8 : index
    %70 = vector.load %arg13[%c0_38, %c8_39] : memref<64x32xf32, #tpu.memory_space<vmem>>, vector<64x8xf32>
    %71 = vector.broadcast %57 : vector<64x1xf32> to vector<64x8xf32>
    %72 = arith.mulf %71, %70 : vector<64x8xf32>
    %73 = arith.truncf %60 : vector<64x64xf32> to vector<64x64xbf16>
    %cst_40 = arith.constant dense<0.000000e+00> : vector<64x8xf32>
    %74 = tpu.matmul %73, %49, %cst_40 {dimension_numbers = #tpu.dot_dimension_numbers<[1], [0], [0], [1], [0, 0, 1, 1], [], []>} : vector<64x64xbf16>, vector<64x8xbf16>, vector<64x8xf32> -> vector<64x8xf32>
    %75 = arith.addf %72, %74 : vector<64x8xf32>
    %c0_41 = arith.constant 0 : index
    %c8_42 = arith.constant 8 : index
    %76 = vector.load %arg13[%c0_41, %c8_42] : memref<64x32xf32, #tpu.memory_space<vmem>>, vector<64x8xf32>
    tpu.vector_store %arg13[%c0_41, %c8_42], %75 {strides = array<i32>} : memref<64x32xf32, #tpu.memory_space<vmem>>, vector<64x8xf32>,
    %c1_43 = arith.constant 1 : index
    %c0_44 = arith.constant 0 : index
    %c0_45 = arith.constant 0 : index
    %77 = vector.load %arg11[%c1_43, %c0_44, %c0_45] : memref<4x64x1xf32, #tpu.memory_space<vmem>>, vector<1x64x1xf32>
    %78 = vector.shape_cast %77 : vector<1x64x1xf32> to vector<64x1xf32>
    %79 = vector.shape_cast %55 : vector<64x1xf32> to vector<1x64x1xf32>
    tpu.vector_store %arg11[%c1_43, %c0_44, %c0_45], %79 {strides = array<i32>} : memref<4x64x1xf32, #tpu.memory_space<vmem>>, vector<1x64x1xf32>,
    %c0_46 = arith.constant 0 : index
    %c16 = arith.constant 16 : index
    %80 = vector.load %arg10[%c0_46, %c16] : memref<64x32xbf16, #tpu.memory_space<vmem>>, vector<64x8xbf16>
    %81 = arith.index_cast %1 : i32 to index
    %c16_47 = arith.constant 16 : index
    %82 = vector.load %arg9[%81, %c16_47] : memref<64x64xbf16, #tpu.memory_space<vmem>>, vector<64x8xbf16>
    %83 = arith.index_cast %1 : i32 to index
    %c48 = arith.constant 48 : index
    %84 = vector.load %arg9[%83, %c48] : memref<64x64xbf16, #tpu.memory_space<vmem>>, vector<64x8xbf16>
    %cst_48 = arith.constant dense<0.000000e+00> : vector<64x64xf32>
    %85 = tpu.matmul %80, %82, %cst_48 {dimension_numbers = #tpu.dot_dimension_numbers<[1], [1], [0], [0], [0, 0, 1, 0], [], []>} : vector<64x8xbf16>, vector<64x8xbf16>, vector<64x64xf32> -> vector<64x64xf32>
    %c2 = arith.constant 2 : index
    %c0_49 = arith.constant 0 : index
    %c0_50 = arith.constant 0 : index
    %86 = vector.load %arg11[%c2, %c0_49, %c0_50] : memref<4x64x1xf32, #tpu.memory_space<vmem>>, vector<1x64x1xf32>
    %87 = vector.shape_cast %86 : vector<1x64x1xf32> to vector<64x1xf32>
    %cst_51 = arith.constant dense<0xFF800000> : vector<64xf32>
    %88 = vector.multi_reduction <maximumf>, %85, %cst_51 [1] : vector<64x64xf32> to vector<64xf32>
    %89 = vector.shape_cast %88 : vector<64xf32> to vector<64x1xf32>
    %90 = arith.maximumf %87, %89 : vector<64x1xf32>
    %91 = arith.subf %87, %90 : vector<64x1xf32>
    %92 = math.exp %91 : vector<64x1xf32>
    %93 = vector.broadcast %90 : vector<64x1xf32> to vector<64x64xf32>
    %94 = arith.subf %85, %93 : vector<64x64xf32>
    %95 = math.exp %94 : vector<64x64xf32>
    %c2_52 = arith.constant 2 : index
    %c0_53 = arith.constant 0 : index
    %c0_54 = arith.constant 0 : index
    %96 = vector.load %arg12[%c2_52, %c0_53, %c0_54] : memref<4x64x1xf32, #tpu.memory_space<vmem>>, vector<1x64x1xf32>
    %97 = vector.shape_cast %96 : vector<1x64x1xf32> to vector<64x1xf32>
    %98 = arith.mulf %92, %97 : vector<64x1xf32>
    %cst_55 = arith.constant dense<0.000000e+00> : vector<64xf32>
    %99 = vector.multi_reduction <add>, %95, %cst_55 [1] : vector<64x64xf32> to vector<64xf32>
    %100 = vector.shape_cast %99 : vector<64xf32> to vector<64x1xf32>
    %101 = arith.addf %98, %100 : vector<64x1xf32>
    %c2_56 = arith.constant 2 : index
    %c0_57 = arith.constant 0 : index
    %c0_58 = arith.constant 0 : index
    %102 = vector.load %arg12[%c2_56, %c0_57, %c0_58] : memref<4x64x1xf32, #tpu.memory_space<vmem>>, vector<1x64x1xf32>
    %103 = vector.shape_cast %102 : vector<1x64x1xf32> to vector<64x1xf32>
    %104 = vector.shape_cast %101 : vector<64x1xf32> to vector<1x64x1xf32>
    tpu.vector_store %arg12[%c2_56, %c0_57, %c0_58], %104 {strides = array<i32>} : memref<4x64x1xf32, #tpu.memory_space<vmem>>, vector<1x64x1xf32>,
    %c0_59 = arith.constant 0 : index
    %c16_60 = arith.constant 16 : index
    %105 = vector.load %arg13[%c0_59, %c16_60] : memref<64x32xf32, #tpu.memory_space<vmem>>, vector<64x8xf32>
    %106 = vector.broadcast %92 : vector<64x1xf32> to vector<64x8xf32>
    %107 = arith.mulf %106, %105 : vector<64x8xf32>
    %108 = arith.truncf %95 : vector<64x64xf32> to vector<64x64xbf16>
    %cst_61 = arith.constant dense<0.000000e+00> : vector<64x8xf32>
    %109 = tpu.matmul %108, %84, %cst_61 {dimension_numbers = #tpu.dot_dimension_numbers<[1], [0], [0], [1], [0, 0, 1, 1], [], []>} : vector<64x64xbf16>, vector<64x8xbf16>, vector<64x8xf32> -> vector<64x8xf32>
    %110 = arith.addf %107, %109 : vector<64x8xf32>
    %c0_62 = arith.constant 0 : index
    %c16_63 = arith.constant 16 : index
    %111 = vector.load %arg13[%c0_62, %c16_63] : memref<64x32xf32, #tpu.memory_space<vmem>>, vector<64x8xf32>
    tpu.vector_store %arg13[%c0_62, %c16_63], %110 {strides = array<i32>} : memref<64x32xf32, #tpu.memory_space<vmem>>, vector<64x8xf32>,
    %c2_64 = arith.constant 2 : index
    %c0_65 = arith.constant 0 : index
    %c0_66 = arith.constant 0 : index
    %112 = vector.load %arg11[%c2_64, %c0_65, %c0_66] : memref<4x64x1xf32, #tpu.memory_space<vmem>>, vector<1x64x1xf32>
    %113 = vector.shape_cast %112 : vector<1x64x1xf32> to vector<64x1xf32>
    %114 = vector.shape_cast %90 : vector<64x1xf32> to vector<1x64x1xf32>
    tpu.vector_store %arg11[%c2_64, %c0_65, %c0_66], %114 {strides = array<i32>} : memref<4x64x1xf32, #tpu.memory_space<vmem>>, vector<1x64x1xf32>,
    %c0_67 = arith.constant 0 : index
    %c24 = arith.constant 24 : index
    %115 = vector.load %arg10[%c0_67, %c24] : memref<64x32xbf16, #tpu.memory_space<vmem>>, vector<64x8xbf16>
    %116 = arith.index_cast %1 : i32 to index
    %c24_68 = arith.constant 24 : index
    %117 = vector.load %arg9[%116, %c24_68] : memref<64x64xbf16, #tpu.memory_space<vmem>>, vector<64x8xbf16>
    %118 = arith.index_cast %1 : i32 to index
    %c56 = arith.constant 56 : index
    %119 = vector.load %arg9[%118, %c56] : memref<64x64xbf16, #tpu.memory_space<vmem>>, vector<64x8xbf16>
    %cst_69 = arith.constant dense<0.000000e+00> : vector<64x64xf32>
    %120 = tpu.matmul %115, %117, %cst_69 {dimension_numbers = #tpu.dot_dimension_numbers<[1], [1], [0], [0], [0, 0, 1, 0], [], []>} : vector<64x8xbf16>, vector<64x8xbf16>, vector<64x64xf32> -> vector<64x64xf32>
    %c3 = arith.constant 3 : index
    %c0_70 = arith.constant 0 : index
    %c0_71 = arith.constant 0 : index
    %121 = vector.load %arg11[%c3, %c0_70, %c0_71] : memref<4x64x1xf32, #tpu.memory_space<vmem>>, vector<1x64x1xf32>
    %122 = vector.shape_cast %121 : vector<1x64x1xf32> to vector<64x1xf32>
    %cst_72 = arith.constant dense<0xFF800000> : vector<64xf32>
    %123 = vector.multi_reduction <maximumf>, %120, %cst_72 [1] : vector<64x64xf32> to vector<64xf32>
    %124 = vector.shape_cast %123 : vector<64xf32> to vector<64x1xf32>
    %125 = arith.maximumf %122, %124 : vector<64x1xf32>
    %126 = arith.subf %122, %125 : vector<64x1xf32>
    %127 = math.exp %126 : vector<64x1xf32>
    %128 = vector.broadcast %125 : vector<64x1xf32> to vector<64x64xf32>
    %129 = arith.subf %120, %128 : vector<64x64xf32>
    %130 = math.exp %129 : vector<64x64xf32>
    %c3_73 = arith.constant 3 : index
    %c0_74 = arith.constant 0 : index
    %c0_75 = arith.constant 0 : index
    %131 = vector.load %arg12[%c3_73, %c0_74, %c0_75] : memref<4x64x1xf32, #tpu.memory_space<vmem>>, vector<1x64x1xf32>
    %132 = vector.shape_cast %131 : vector<1x64x1xf32> to vector<64x1xf32>
    %133 = arith.mulf %127, %132 : vector<64x1xf32>
    %cst_76 = arith.constant dense<0.000000e+00> : vector<64xf32>
    %134 = vector.multi_reduction <add>, %130, %cst_76 [1] : vector<64x64xf32> to vector<64xf32>
    %135 = vector.shape_cast %134 : vector<64xf32> to vector<64x1xf32>
    %136 = arith.addf %133, %135 : vector<64x1xf32>
    %c3_77 = arith.constant 3 : index
    %c0_78 = arith.constant 0 : index
    %c0_79 = arith.constant 0 : index
    %137 = vector.load %arg12[%c3_77, %c0_78, %c0_79] : memref<4x64x1xf32, #tpu.memory_space<vmem>>, vector<1x64x1xf32>
    %138 = vector.shape_cast %137 : vector<1x64x1xf32> to vector<64x1xf32>
    %139 = vector.shape_cast %136 : vector<64x1xf32> to vector<1x64x1xf32>
    tpu.vector_store %arg12[%c3_77, %c0_78, %c0_79], %139 {strides = array<i32>} : memref<4x64x1xf32, #tpu.memory_space<vmem>>, vector<1x64x1xf32>,
    %c0_80 = arith.constant 0 : index
    %c24_81 = arith.constant 24 : index
    %140 = vector.load %arg13[%c0_80, %c24_81] : memref<64x32xf32, #tpu.memory_space<vmem>>, vector<64x8xf32>
    %141 = vector.broadcast %127 : vector<64x1xf32> to vector<64x8xf32>
    %142 = arith.mulf %141, %140 : vector<64x8xf32>
    %143 = arith.truncf %130 : vector<64x64xf32> to vector<64x64xbf16>
    %cst_82 = arith.constant dense<0.000000e+00> : vector<64x8xf32>
    %144 = tpu.matmul %143, %119, %cst_82 {dimension_numbers = #tpu.dot_dimension_numbers<[1], [0], [0], [1], [0, 0, 1, 1], [], []>} : vector<64x64xbf16>, vector<64x8xbf16>, vector<64x8xf32> -> vector<64x8xf32>
    %145 = arith.addf %142, %144 : vector<64x8xf32>
    %c0_83 = arith.constant 0 : index
    %c24_84 = arith.constant 24 : index
    %146 = vector.load %arg13[%c0_83, %c24_84] : memref<64x32xf32, #tpu.memory_space<vmem>>, vector<64x8xf32>
    tpu.vector_store %arg13[%c0_83, %c24_84], %145 {strides = array<i32>} : memref<64x32xf32, #tpu.memory_space<vmem>>, vector<64x8xf32>,
    %c3_85 = arith.constant 3 : index
    %c0_86 = arith.constant 0 : index
    %c0_87 = arith.constant 0 : index
    %147 = vector.load %arg11[%c3_85, %c0_86, %c0_87] : memref<4x64x1xf32, #tpu.memory_space<vmem>>, vector<1x64x1xf32>
    %148 = vector.shape_cast %147 : vector<1x64x1xf32> to vector<64x1xf32>
    %149 = vector.shape_cast %125 : vector<64x1xf32> to vector<1x64x1xf32>
    tpu.vector_store %arg11[%c3_85, %c0_86, %c0_87], %149 {strides = array<i32>} : memref<4x64x1xf32, #tpu.memory_space<vmem>>, vector<1x64x1xf32>,
    %c0_i32_88 = arith.constant 0 : i32
    %150 = arith.cmpi eq, %arg2, %c0_i32_88 : i32
    %151 = arith.extui %150 : i1 to i32
    %c0_i32_89 = arith.constant 0 : i32
    %152 = arith.cmpi ne, %151, %c0_i32_89 : i32
    scf.if %152 {
      %c0_90 = arith.constant 0 : index
      %c0_91 = arith.constant 0 : index
      %c0_92 = arith.constant 0 : index
      %153 = vector.load %arg12[%c0_90, %c0_91, %c0_92] : memref<4x64x1xf32, #tpu.memory_space<vmem>>, vector<1x64x1xf32>
      %154 = vector.shape_cast %153 : vector<1x64x1xf32> to vector<64x1xf32>
      %155 = tpu.reciprocal %154 {approx = true} : vector<64x1xf32> -> vector<64x1xf32>
      %c0_93 = arith.constant 0 : index
      %c0_94 = arith.constant 0 : index
      %156 = vector.load %arg13[%c0_93, %c0_94] : memref<64x32xf32, #tpu.memory_space<vmem>>, vector<64x8xf32>
      %157 = vector.broadcast %155 : vector<64x1xf32> to vector<64x8xf32>
      %158 = arith.mulf %156, %157 : vector<64x8xf32>
      %c0_95 = arith.constant 0 : index
      %c0_96 = arith.constant 0 : index
      %159 = vector.load %arg13[%c0_95, %c0_96] : memref<64x32xf32, #tpu.memory_space<vmem>>, vector<64x8xf32>
      tpu.vector_store %arg13[%c0_95, %c0_96], %158 {strides = array<i32>} : memref<64x32xf32, #tpu.memory_space<vmem>>, vector<64x8xf32>,
      %c1_97 = arith.constant 1 : index
      %c0_98 = arith.constant 0 : index
      %c0_99 = arith.constant 0 : index
      %160 = vector.load %arg12[%c1_97, %c0_98, %c0_99] : memref<4x64x1xf32, #tpu.memory_space<vmem>>, vector<1x64x1xf32>
      %161 = vector.shape_cast %160 : vector<1x64x1xf32> to vector<64x1xf32>
      %162 = tpu.reciprocal %161 {approx = true} : vector<64x1xf32> -> vector<64x1xf32>
      %c0_100 = arith.constant 0 : index
      %c8_101 = arith.constant 8 : index
      %163 = vector.load %arg13[%c0_100, %c8_101] : memref<64x32xf32, #tpu.memory_space<vmem>>, vector<64x8xf32>
      %164 = vector.broadcast %162 : vector<64x1xf32> to vector<64x8xf32>
      %165 = arith.mulf %163, %164 : vector<64x8xf32>
      %c0_102 = arith.constant 0 : index
      %c8_103 = arith.constant 8 : index
      %166 = vector.load %arg13[%c0_102, %c8_103] : memref<64x32xf32, #tpu.memory_space<vmem>>, vector<64x8xf32>
      tpu.vector_store %arg13[%c0_102, %c8_103], %165 {strides = array<i32>} : memref<64x32xf32, #tpu.memory_space<vmem>>, vector<64x8xf32>,
      %c2_104 = arith.constant 2 : index
      %c0_105 = arith.constant 0 : index
      %c0_106 = arith.constant 0 : index
      %167 = vector.load %arg12[%c2_104, %c0_105, %c0_106] : memref<4x64x1xf32, #tpu.memory_space<vmem>>, vector<1x64x1xf32>
      %168 = vector.shape_cast %167 : vector<1x64x1xf32> to vector<64x1xf32>
      %169 = tpu.reciprocal %168 {approx = true} : vector<64x1xf32> -> vector<64x1xf32>
      %c0_107 = arith.constant 0 : index
      %c16_108 = arith.constant 16 : index
      %170 = vector.load %arg13[%c0_107, %c16_108] : memref<64x32xf32, #tpu.memory_space<vmem>>, vector<64x8xf32>
      %171 = vector.broadcast %169 : vector<64x1xf32> to vector<64x8xf32>
      %172 = arith.mulf %170, %171 : vector<64x8xf32>
      %c0_109 = arith.constant 0 : index
      %c16_110 = arith.constant 16 : index
      %173 = vector.load %arg13[%c0_109, %c16_110] : memref<64x32xf32, #tpu.memory_space<vmem>>, vector<64x8xf32>
      tpu.vector_store %arg13[%c0_109, %c16_110], %172 {strides = array<i32>} : memref<64x32xf32, #tpu.memory_space<vmem>>, vector<64x8xf32>,
      %c3_111 = arith.constant 3 : index
      %c0_112 = arith.constant 0 : index
      %c0_113 = arith.constant 0 : index
      %174 = vector.load %arg12[%c3_111, %c0_112, %c0_113] : memref<4x64x1xf32, #tpu.memory_space<vmem>>, vector<1x64x1xf32>
      %175 = vector.shape_cast %174 : vector<1x64x1xf32> to vector<64x1xf32>
      %176 = tpu.reciprocal %175 {approx = true} : vector<64x1xf32> -> vector<64x1xf32>
      %c0_114 = arith.constant 0 : index
      %c24_115 = arith.constant 24 : index
      %177 = vector.load %arg13[%c0_114, %c24_115] : memref<64x32xf32, #tpu.memory_space<vmem>>, vector<64x8xf32>
      %178 = vector.broadcast %176 : vector<64x1xf32> to vector<64x8xf32>
      %179 = arith.mulf %177, %178 : vector<64x8xf32>
      %c0_116 = arith.constant 0 : index
      %c24_117 = arith.constant 24 : index
      %180 = vector.load %arg13[%c0_116, %c24_117] : memref<64x32xf32, #tpu.memory_space<vmem>>, vector<64x8xf32>
      tpu.vector_store %arg13[%c0_116, %c24_117], %179 {strides = array<i32>} : memref<64x32xf32, #tpu.memory_space<vmem>>, vector<64x8xf32>,
      %c0_118 = arith.constant 0 : index
      %c0_119 = arith.constant 0 : index
      %181 = vector.load %arg13[%c0_118, %c0_119] : memref<64x32xf32, #tpu.memory_space<vmem>>, vector<64x32xf32>
      %182 = arith.truncf %181 : vector<64x32xf32> to vector<64x32xbf16>
      %c0_120 = arith.constant 0 : index
      %c0_121 = arith.constant 0 : index
      %183 = vector.load %arg6[%c0_120, %c0_121] : memref<32x32xbf16, #tpu.memory_space<vmem>>, vector<32x32xbf16>
      %cst_122 = arith.constant dense<0.000000e+00> : vector<32x64xf32>
      %184 = tpu.matmul %183, %182, %cst_122 {dimension_numbers = #tpu.dot_dimension_numbers<[1], [1], [0], [0], [0, 0, 1, 0], [], []>} : vector<32x32xbf16>, vector<64x32xbf16>, vector<32x64xf32> -> vector<32x64xf32>
      %c0_123 = arith.constant 0 : index
      %c0_124 = arith.constant 0 : index
      %185 = vector.load %arg7[%c0_123, %c0_124] : memref<32x1xf32, #tpu.memory_space<vmem>>, vector<32x1xf32>
      %186 = vector.broadcast %185 : vector<32x1xf32> to vector<32x64xf32>
      %187 = arith.addf %184, %186 : vector<32x64xf32>
      %188 = arith.truncf %187 : vector<32x64xf32> to vector<32x64xbf16>
      %c0_125 = arith.constant 0 : index
      %c0_126 = arith.constant 0 : index
      %c0_127 = arith.constant 0 : index
      %189 = vector.load %arg8[%c0_125, %c0_126, %c0_127] : memref<1x32x64xbf16, #tpu.memory_space<vmem>>, vector<1x32x64xbf16>
      %190 = vector.shape_cast %189 : vector<1x32x64xbf16> to vector<32x64xbf16>
      %191 = vector.shape_cast %188 : vector<32x64xbf16> to vector<1x32x64xbf16>
      tpu.vector_store %arg8[%c0_125, %c0_126, %c0_127], %191 {strides = array<i32>} : memref<1x32x64xbf16, #tpu.memory_space<vmem>>, vector<1x32x64xbf16>,
    } else {
    }
    return
  }
  func.func @transform_0(%arg0: i32, %arg1: i32, %arg2: i32) -> (i32, i32, i32) {
    %c0_i32 = arith.constant 0 : i32
    %c0_i32_0 = arith.constant 0 : i32
    %c0_i32_1 = arith.constant 0 : i32
    return %arg0, %c0_i32, %c0_i32_0 : i32, i32, i32
  }
  func.func @transform_1(%arg0: i32, %arg1: i32, %arg2: i32) -> (i32, i32) {
    %c0_i32 = arith.constant 0 : i32
    %c0_i32_0 = arith.constant 0 : i32
    %c0_i32_1 = arith.constant 0 : i32
    return %c0_i32, %c0_i32_0 : i32, i32
  }
  func.func @transform_2(%arg0: i32, %arg1: i32, %arg2: i32) -> (i32, i32) {
    %c0_i32 = arith.constant 0 : i32
    %c0_i32_0 = arith.constant 0 : i32
    %c0_i32_1 = arith.constant 0 : i32
    return %c0_i32, %c0_i32_0 : i32, i32
  }
  func.func @transform_3(%arg0: i32, %arg1: i32, %arg2: i32) -> (i32, i32) {
    %c0_i32 = arith.constant 0 : i32
    %c0_i32_0 = arith.constant 0 : i32
    %c0_i32_1 = arith.constant 0 : i32
    return %c0_i32, %c0_i32_0 : i32, i32
  }
  func.func @transform_4(%arg0: i32, %arg1: i32, %arg2: i32) -> (i32, i32) {
    %c0_i32 = arith.constant 0 : i32
    %c0_i32_0 = arith.constant 0 : i32
    %c0_i32_1 = arith.constant 0 : i32
    return %c0_i32, %c0_i32_0 : i32, i32
  }
  func.func @transform_5(%arg0: i32, %arg1: i32, %arg2: i32) -> (i32, i32, i32) {
    %c0_i32 = arith.constant 0 : i32
    %c0_i32_0 = arith.constant 0 : i32
    return %arg0, %c0_i32, %arg1 : i32, i32, i32
  }
}

</mosaic_0001>

<bundles_post_ra>
// kernel: tpu_custom_call.1
= control target key start
LH: loop header
LB: loop body
LE: loop exit
PB: predicated region body
PF: predicated region fallthrough
CT: control target
= control target key end

     0   :  { %10 = vsyncpa [#allocation8], 0  ;;  %s5365_s0 = inlined_call_operand.vmem [shape: bf16[2,64,32], index: 0, kind: input, shape index: {}]   ;;  %s5366_s1 = inlined_call_operand.vmem [shape: bf16[32,32], index: 1, kind: input, shape index: {}]   ;;  %s5367_s2 = inlined_call_operand.vmem [shape: bf16[32,64], index: 2, kind: input, shape index: {}]   ;;  %s5368_s3 = inlined_call_operand.vmem [shape: bf16[32,32], index: 3, kind: input, shape index: {}]   ;;  %s5369_s4 = inlined_call_operand.vmem [shape: f32[32,1], index: 4, kind: input, shape index: {}]   ;;  %s5370_s5 = inlined_call_operand.hbm [shape: bf16[2,32,64], index: 5, kind: output, shape index: {}]  }
   0x1   :  { %12 = vsyncpa [#allocation8 + $0x1], 0  ;;  %s3917_s18 = smov 0   ;;  %s3919_s19 = smov 0  }
   0x2   :  { %s3921_s20 = smov 0   ;;  %s3923_s21 = smov 0  }
   0x3   :  { %s3925_s22 = smov 0   ;;  %s3927_s23 = smov 0  }
   0x4 LB: > { %s3165_s24 = sadd.s32 4294967295, %s3869_s23   ;;  %s3166_s25 = sadd.s32 4294967294, %s3869_s23   ;;  %s3869_s23 = sphi %s3927_s23, %s18_s23   ;;  %s3865_s22 = sphi %s3925_s22, %s5493_s22   ;;  %s3861_s21 = sphi %s3923_s21, %s5492_s21   ;;  %s3857_s20 = sphi %s3921_s20, %s5491_s20   ;;  %s3853_s19 = sphi %s3919_s19, %s5490_s19   ;;  %s3849_s18 = sphi %s3917_s18, %s5489_s18  }
   0x5   : > { %s37_s26 = sadd.s32 1, %s3865_s22  ;;  %s156_s27 = sadd.s32 1, %s3857_s20 }
   0x6   : > { %p39_p0 = scmp.ge.s32.totalorder %s37_s26, 2  ;;  %p166_p1 = scmp.ne.s32.totalorder %s3857_s20, %s3853_s19 }
   0x7   : > { %p167_p2 = scmp.eq.s32.totalorder %s3165_s24, 1  ;;  %p172_p3 = scmp.ne.s32.totalorder %s3853_s19, %s3849_s18 }
   0x8   : > { %s5495_s26 = smov (%p39_p0, %s37_s26), 0  ;;  %p173_p5 = scmp.eq.s32.totalorder %s3166_s25, 1 }
   0x9   : > { %p3957_p4 = por %p167_p2, %p166_p1  ;;  %s151_s29 = ssub.s32 %s3865_s22, %s5495_s26 }
   0xa   : > { %p3169_p6 = scmp.ge.s32.totalorder %s3869_s23, 1  ;;  %p154_p7 = scmp.eq.s32.totalorder %s151_s29, 0 }
   0xb   : > { %p3964_p8 = por %p173_p5, %p172_p3  ;;  %p211_p9 = scmp.lt.s32.totalorder %s3869_s23, 3 }
   0xc   : > { %s3970_s6 = scalar_select %p154_p7, %s3857_s20, %s156_s27  }
   0xd   : > { %p212_p10 = pnand %p3169_p6, %p211_p9 }
   0xf   : > { %215 = sbr.rel (%p212_p10) target bundleno = 3174 (0xc66), region = 40 }
  0x16   : > { %v3582_v0 = vld [vmem:[%s5367_s2] sm:$0xff]   ;;  %p239_p11 = scmp.lt.s32.totalorder %s3861_s21, 1  ;;  %v3583_v1 = vld [vmem:[%s5367_s2 + $0x8] sm:$0xff]   ;;  %vm299_vm0 = vcmask 261120   ;;  %vm385_vm1 = vcmask 523264   ;;  %vm613_vm2 = vcmask 64512  }
  0x17   : > { %3326 = vmatprep.subr.bf16.mxu1 %v3582_v0  ;;  %v3588_v2 = vld [vmem:[%s5366_s1] sm:$0xff]   ;;  %v3589_v4 = vld [vmem:[%s5366_s1 + $0x8] sm:$0xff]   ;;  %vm528_vm3 = vcmask 7168   ;;  %v3871_v48 = vmov -inf   ;;  %s3874_s27 = smov 96   ;;  %s3875_s29 = smov 120  }
  0x18   : > { %s240_s11 = scalar_select %p239_p11, %s3861_s21, 1  ;;  %3327 = vmatpush3.bf16.msra.mxu1 %v3582_v0  ;;  %531 = vst.msk [vmem:[#allocation4 + $0x10] sm:$0xff] %vm528_vm3, %v3871_v48  ;;  %529 = vst.msk [vmem:[#allocation4] sm:$0xff] %vm528_vm3, %v3871_v48  ;;  %vm1562_vm4 = vcmask 130112   ;;  %vm2075_vm5 = vcmask 195712   ;;  %vm2588_vm6 = vcmask 261312  }
  0x19   : > { %3328 = vmatprep.subr.bf16.mxu1 %v3583_v1  ;;  %530 = vst.msk [vmem:[#allocation4 + $0x8] sm:$0xff] %vm528_vm3, %v3871_v48  ;;  %532 = vst.msk [vmem:[#allocation4 + $0x18] sm:$0xff] %vm528_vm3, %v3871_v48  ;;  %s3876_s7 = smov 88   ;;  %s3877_s8 = smov 112   ;;  %vm3062_vm7 = vcmask 519168  }
  0x1a   : > { %s3238_s12 = sshll.u32 %s240_s11, 5  ;;  %533 = vst.msk [vmem:[#allocation4 + $0x20] sm:$0xff] %vm528_vm3, %v3871_v48  ;;  %534 = vst.msk [vmem:[#allocation4 + $0x28] sm:$0xff] %vm528_vm3, %v3871_v48  ;;  %s3878_s9 = smov 80  }
  0x1b   : > { %s243_s17 = scalar_lea.vmem %s5365_s0, %s3238_s12  ;;  %535 = vst.msk [vmem:[#allocation4 + $0x30] sm:$0xff] %vm528_vm3, %v3871_v48  ;;  %536 = vst.msk [vmem:[#allocation4 + $0x38] sm:$0xff] %vm528_vm3, %v3871_v48  ;;  %s3879_s10 = smov 104  }
  0x1c   : > { %v3584_v3 = vld [vmem:[%s243_s17] sm:$0xff]   ;;  %3329 = vmatpush3.bf16.msra.mxu1 %v3583_v1  ;;  %v3585_v5 = vld [vmem:[%s243_s17 + $0x8] sm:$0xff]   ;;  %v3586_v6 = vld [vmem:[%s243_s17 + $0x10] sm:$0xff]   ;;  %537 = vst.msk [vmem:[#allocation4 + $0x40] sm:$0xff] %vm528_vm3, %v3871_v48  ;;  %v3872_v1 = vmov 0   ;;  %s3880_s11 = smov 72  }
  0x1d   : > { %3330 = vmatprep.mubr.msk.bf16.mxu1 %vm299_vm0, %v3584_v3  ;;  %3338 = vmatprep.subr.bf16.mxu1 %v3588_v2  ;;  %v3587_v7 = vld [vmem:[%s243_s17 + $0x18] sm:$0xff]   ;;  %v3590_v8 = vld [vmem:[%s243_s17] sm:$0xff]   ;;  %v3591_v9 = vld [vmem:[%s243_s17 + $0x8] sm:$0xff]   ;;  %538 = vst.msk [vmem:[#allocation4 + $0x48] sm:$0xff] %vm528_vm3, %v3871_v48  ;;  %s3881_s12 = smov 8   ;;  %s3882_s13 = smov 16  }
  0x1e   : > { %v3592_v10 = vld [vmem:[%s243_s17 + $0x10] sm:$0xff]   ;;  %v3593_v11 = vld [vmem:[%s243_s17 + $0x18] sm:$0xff]   ;;  %539 = vst.msk [vmem:[#allocation4 + $0x50] sm:$0xff] %vm528_vm3, %v3871_v48  ;;  %540 = vst.msk [vmem:[#allocation4 + $0x58] sm:$0xff] %vm528_vm3, %v3871_v48  ;;  %3580 = vset.pattern.permute.xlu0 %v3872_v1  ;;  %3581 = vset.pattern.permute.xlu1 %v3872_v1  ;;  %s3883_s14 = smov 24   ;;  %s3243_s16 = sshll.u32 %s3861_s21, 8 }
  0x1f   : > { %3331 = vmatmul.mubr.msk.bf16.vlgmr.msra.gmra.mrb[0].mxu1 %vm299_vm0, %v3585_v5  ;;  %541 = vst.msk [vmem:[#allocation4 + $0x60] sm:$0xff] %vm528_vm3, %v3871_v48  ;;  %542 = vst.msk [vmem:[#allocation4 + $0x68] sm:$0xff] %vm528_vm3, %v3871_v48  ;;  %v4149_v3 = vld [vmem:[#allocation4 + $0x10] sm:$0xff]  ;;  %s5315_s25 = scalar_lea.hbm %s5370_s5, %s3243_s16 }
  0x20   : > { %3334 = vmatprep.mubr.msk.bf16.mxu1 %vm299_vm0, %v3586_v6  ;;  %3339 = vmatpush3.bf16.msra.mxu1 %v3588_v2  ;;  %543 = vst.msk [vmem:[#allocation4 + $0x70] sm:$0xff] %vm528_vm3, %v3871_v48  ;;  %544 = vst.msk [vmem:[#allocation4 + $0x78] sm:$0xff] %vm528_vm3, %v3871_v48  ;;  %v3873_v2 = vmov 0.0  }
  0x21   : > { %3340 = vmatprep.subr.bf16.mxu1 %v3589_v4  ;;  %545 = vst.msk [vmem:[#allocation4 + $0x80] sm:$0xff] %vm528_vm3, %v3871_v48  ;;  %546 = vst.msk [vmem:[#allocation4 + $0x88] sm:$0xff] %vm528_vm3, %v3871_v48 }
  0x22   : > { %547 = vst.msk [vmem:[#allocation4 + $0x90] sm:$0xff] %vm528_vm3, %v3871_v48  ;;  %548 = vst.msk [vmem:[#allocation4 + $0x98] sm:$0xff] %vm528_vm3, %v3871_v48 }
  0x23   : > { %549 = vst.msk [vmem:[#allocation4 + $0xa0] sm:$0xff] %vm528_vm3, %v3871_v48  ;;  %550 = vst.msk [vmem:[#allocation4 + $0xa8] sm:$0xff] %vm528_vm3, %v3871_v48 }
  0x24   : > { %3341 = vmatpush3.bf16.msra.mxu1 %v3589_v4  ;;  %551 = vst.msk [vmem:[#allocation4 + $0xb0] sm:$0xff] %vm528_vm3, %v3871_v48  ;;  %552 = vst.msk [vmem:[#allocation4 + $0xb8] sm:$0xff] %vm528_vm3, %v3871_v48  ;;  %v4151_v4 = vld [vmem:[#allocation4] sm:$0xff] }
  0x25   : > { %553 = vst.msk [vmem:[#allocation4 + $0xc0] sm:$0xff] %vm528_vm3, %v3871_v48  ;;  %554 = vst.msk [vmem:[#allocation4 + $0xc8] sm:$0xff] %vm528_vm3, %v3871_v48 }
  0x26   : > { %555 = vst.msk [vmem:[#allocation4 + $0xd0] sm:$0xff] %vm528_vm3, %v3871_v48  ;;  %556 = vst.msk [vmem:[#allocation4 + $0xd8] sm:$0xff] %vm528_vm3, %v3871_v48 }
  0x27   : > { %3335 = vmatmul.mubr.msk.bf16.gmra.mrb[4].mxu1 %vm299_vm0, %v3587_v7  ;;  %557 = vst.msk [vmem:[#allocation4 + $0xe0] sm:$0xff] %vm528_vm3, %v3871_v48  ;;  %558 = vst.msk [vmem:[#allocation4 + $0xe8] sm:$0xff] %vm528_vm3, %v3871_v48 }
  0x28   : > { %3342 = vmatprep.mubr.msk.bf16.mxu1 %vm299_vm0, %v3590_v8  ;;  %559 = vst.msk [vmem:[#allocation4 + $0xf0] sm:$0xff] %vm528_vm3, %v3871_v48  ;;  %560 = vst.msk [vmem:[#allocation4 + $0xf8] sm:$0xff] %vm528_vm3, %v3871_v48 }
  0x29   : > { %562 = vst.msk [vmem:[#allocation5 + $0x8] sm:$0xff] %vm528_vm3, %v3873_v2  ;;  %561 = vst.msk [vmem:[#allocation5] sm:$0xff] %vm528_vm3, %v3873_v2 }
  0x2a   : > { %563 = vst.msk [vmem:[#allocation5 + $0x10] sm:$0xff] %vm528_vm3, %v3873_v2  ;;  %564 = vst.msk [vmem:[#allocation5 + $0x18] sm:$0xff] %vm528_vm3, %v3873_v2 }
  0x2b   : > { %565 = vst.msk [vmem:[#allocation5 + $0x20] sm:$0xff] %vm528_vm3, %v3873_v2  ;;  %566 = vst.msk [vmem:[#allocation5 + $0x28] sm:$0xff] %vm528_vm3, %v3873_v2 }
  0x2c   : > { %567 = vst.msk [vmem:[#allocation5 + $0x30] sm:$0xff] %vm528_vm3, %v3873_v2  ;;  %568 = vst.msk [vmem:[#allocation5 + $0x38] sm:$0xff] %vm528_vm3, %v3873_v2 }
  0x2d   : > { %569 = vst.msk [vmem:[#allocation5 + $0x40] sm:$0xff] %vm528_vm3, %v3873_v2  ;;  %570 = vst.msk [vmem:[#allocation5 + $0x48] sm:$0xff] %vm528_vm3, %v3873_v2 }
  0x2e   : > { %571 = vst.msk [vmem:[#allocation5 + $0x50] sm:$0xff] %vm528_vm3, %v3873_v2  ;;  %572 = vst.msk [vmem:[#allocation5 + $0x58] sm:$0xff] %vm528_vm3, %v3873_v2 }
  0x2f   : > { %3343 = vmatmul.mubr.msk.bf16.vlgmr.msra.gmra.mrb[8].mxu1 %vm299_vm0, %v3591_v9  ;;  %573 = vst.msk [vmem:[#allocation5 + $0x60] sm:$0xff] %vm528_vm3, %v3873_v2  ;;  %574 = vst.msk [vmem:[#allocation5 + $0x68] sm:$0xff] %vm528_vm3, %v3873_v2  ;;  %v4159_v9 = vld [vmem:[#allocation4 + $0x18] sm:$0xff] }
  0x30   : > { %3346 = vmatprep.mubr.msk.bf16.mxu1 %vm299_vm0, %v3592_v10  ;;  %575 = vst.msk [vmem:[#allocation5 + $0x70] sm:$0xff] %vm528_vm3, %v3873_v2  ;;  %576 = vst.msk [vmem:[#allocation5 + $0x78] sm:$0xff] %vm528_vm3, %v3873_v2 }
  0x31   : > { %577 = vst.msk [vmem:[#allocation5 + $0x80] sm:$0xff] %vm528_vm3, %v3873_v2  ;;  %578 = vst.msk [vmem:[#allocation5 + $0x88] sm:$0xff] %vm528_vm3, %v3873_v2 }
  0x32   : > { %579 = vst.msk [vmem:[#allocation5 + $0x90] sm:$0xff] %vm528_vm3, %v3873_v2  ;;  %580 = vst.msk [vmem:[#allocation5 + $0x98] sm:$0xff] %vm528_vm3, %v3873_v2 }
  0x33   : > { %581 = vst.msk [vmem:[#allocation5 + $0xa0] sm:$0xff] %vm528_vm3, %v3873_v2  ;;  %582 = vst.msk [vmem:[#allocation5 + $0xa8] sm:$0xff] %vm528_vm3, %v3873_v2 }
  0x34   : > { %583 = vst.msk [vmem:[#allocation5 + $0xb0] sm:$0xff] %vm528_vm3, %v3873_v2  ;;  %584 = vst.msk [vmem:[#allocation5 + $0xb8] sm:$0xff] %vm528_vm3, %v3873_v2 }
  0x35   : > { %585 = vst.msk [vmem:[#allocation5 + $0xc0] sm:$0xff] %vm528_vm3, %v3873_v2  ;;  %586 = vst.msk [vmem:[#allocation5 + $0xc8] sm:$0xff] %vm528_vm3, %v3873_v2 }
  0x36   : > { %587 = vst.msk [vmem:[#allocation5 + $0xd0] sm:$0xff] %vm528_vm3, %v3873_v2  ;;  %588 = vst.msk [vmem:[#allocation5 + $0xd8] sm:$0xff] %vm528_vm3, %v3873_v2 }
  0x37   : > { %3347 = vmatmul.mubr.msk.bf16.gmra.mrb[12].mxu1 %vm299_vm0, %v3593_v11  ;;  %589 = vst.msk [vmem:[#allocation5 + $0xe0] sm:$0xff] %vm528_vm3, %v3873_v2  ;;  %590 = vst.msk [vmem:[#allocation5 + $0xe8] sm:$0xff] %vm528_vm3, %v3873_v2  ;;  %v4166_v11 = vld [vmem:[#allocation4 + $0x8] sm:$0xff] }
  0x38   : > { %591 = vst.msk [vmem:[#allocation5 + $0xf0] sm:$0xff] %vm528_vm3, %v3873_v2  ;;  %592 = vst.msk [vmem:[#allocation5 + $0xf8] sm:$0xff] %vm528_vm3, %v3873_v2 }
  0x39   : > { %593 = vst.msk [vmem:[#allocation6] sm:$0xff] %vm299_vm0, %v3873_v2  ;;  %594 = vst.msk [vmem:[#allocation6 + $0x8] sm:$0xff] %vm299_vm0, %v3873_v2 }
  0x3a   : > { %595 = vst.msk [vmem:[#allocation6 + $0x10] sm:$0xff] %vm299_vm0, %v3873_v2  ;;  %596 = vst.msk [vmem:[#allocation6 + $0x18] sm:$0xff] %vm299_vm0, %v3873_v2 }
  0x3b   : > { %597 = vst.msk [vmem:[#allocation6 + $0x20] sm:$0xff] %vm299_vm0, %v3873_v2  ;;  %598 = vst.msk [vmem:[#allocation6 + $0x28] sm:$0xff] %vm299_vm0, %v3873_v2 }
  0x3c   : > { %599 = vst.msk [vmem:[#allocation6 + $0x30] sm:$0xff] %vm299_vm0, %v3873_v2  ;;  %600 = vst.msk [vmem:[#allocation6 + $0x38] sm:$0xff] %vm299_vm0, %v3873_v2 }
  0xf2   : > { %v3332_v12 = vpop.f32.mrb[0].mxu1 }
  0xf3   : > { %v346_v13 = vpop.f32.mrb[1].mxu1 }
  0xf4   : > { %v3333_v14 = vpop.f32.mrb[2].mxu1 }
  0xf5   : > { %v378_v15 = vpack.c.bf16 %v3333_v14, %v3332_v12  ;;  %v349_v16 = vpop.f32.mrb[3].mxu1  ;;  %v4375_v12 = vld [vmem:[#allocation4 + $0x60] sm:$0xff] }
  0xf6   : > { %v377_v17 = vpack.c.bf16 %v349_v16, %v346_v13 }
  0xf7   : > { %387 = vst.msk [vmem:[#allocation2 + $0x8] sm:$0xff] %vm385_vm1, %v378_v15 }
  0xf8   : > { %386 = vst.msk [vmem:[#allocation2] sm:$0xff] %vm385_vm1, %v377_v17 }
  0xfa   : > { %v3336_v18 = vpop.f32.mrb[4].mxu1 }
  0xfb   : > { %v362_v19 = vpop.f32.mrb[5].mxu1 }
  0xfc   : > { %v3337_v20 = vpop.f32.mrb[6].mxu1 }
  0xfd   : > { %v380_v21 = vpack.c.bf16 %v3337_v20, %v3336_v18  ;;  %v365_v22 = vpop.f32.mrb[7].mxu1  ;;  %v4185_v18 = vld [vmem:[#allocation4 + $0x20] sm:$0xff]  ;;  %v4191_v20 = vld [vmem:[#allocation4 + $0x28] sm:$0xff] }
  0xfe   : > { %v379_v23 = vpack.c.bf16 %v365_v22, %v362_v19  ;;  %v4007_v26 = vld [vmem:[#allocation2 + $0x8] sm:$0xff]  ;;  %v4391_v19 = vld [vmem:[#allocation4 + $0x70] sm:$0xff] }
  0xff   : > { %v3999_v24 = vld [vmem:[#allocation2] sm:$0xff]  ;;  %389 = vst.msk [vmem:[#allocation2 + $0x18] sm:$0xff] %vm385_vm1, %v380_v21  ;;  %v630_v34 = vsel %vm613_vm2, %v4007_v26, 0  ;;  %5399 = vst [vmem:[#allocation18_spill] sm:$0xff] %v4391_v19 }
 0x100   : > { %3490 = vmatprep.subr.msk.bf16.mxu0 %vm613_vm2, %v3999_v24  ;;  %v627_v25 = vsel %vm613_vm2, %v3999_v24, 0  ;;  %388 = vst.msk [vmem:[#allocation2 + $0x10] sm:$0xff] %vm385_vm1, %v379_v23 }
 0x101   : > { %3351 = vmatpush3.bf16.xpose.msra.mxu0 %v627_v25  ;;  %v4197_v25 = vld [vmem:[#allocation4 + $0x30] sm:$0xff] }
 0x102   : > { %3491 = vmatprep.subr.msk.bf16.mxu0 %vm613_vm2, %v4007_v26  ;;  %v3344_v27 = vpop.f32.mrb[8].mxu1 }
 0x103   : > { %v489_v28 = vpop.f32.mrb[9].mxu1 }
 0x104   : > { %v3345_v29 = vpop.f32.mrb[10].mxu1 }
 0x105   : > { %v521_v30 = vpack.c.bf16 %v3345_v29, %v3344_v27  ;;  %v492_v31 = vpop.f32.mrb[11].mxu1  ;;  %v4206_v29 = vld [vmem:[#allocation4 + $0x38] sm:$0xff] }
 0x106   : > { %v520_v32 = vpack.c.bf16 %v492_v31, %v489_v28  ;;  %v4027_v43 = vld [vmem:[#allocation2 + $0x18] sm:$0xff] }
 0x107   : > { %v4011_v33 = vld [vmem:[#allocation2 + $0x10] sm:$0xff]  ;;  %525 = vst.msk [vmem:[#allocation3 + $0x8] sm:$0xff] %vm299_vm0, %v521_v30  ;;  %v636_v44 = vsel %vm613_vm2, %v4027_v43, 0  ;;  %v4348_v31 = vld [vmem:[#allocation4 + $0x58] sm:$0xff] }
 0x108   : > { %524 = vst.msk [vmem:[#allocation3] sm:$0xff] %vm299_vm0, %v520_v32  ;;  %v633_v42 = vsel %vm613_vm2, %v4011_v33, 0 }
 0x109   : > { %3353 = vmatpush3.bf16.xpose.msra.mxu0 %v630_v34 }
 0x10a   : > { %3492 = vmatprep.subr.msk.bf16.mxu0 %vm613_vm2, %v4011_v33  ;;  %v3348_v35 = vpop.f32.mrb[12].mxu1 }
 0x10b   : > { %v505_v36 = vpop.f32.mrb[13].mxu1 }
 0x10c   : > { %v3349_v37 = vpop.f32.mrb[14].mxu1 }
 0x10d   : > { %v523_v38 = vpack.c.bf16 %v3349_v37, %v3348_v35  ;;  %v508_v39 = vpop.f32.mrb[15].mxu1 }
 0x10e   : > { %v522_v40 = vpack.c.bf16 %v508_v39, %v505_v36  ;;  %v4035_v46 = vld [vmem:[#allocation3 + $0x8] sm:$0xff] }
 0x10f   : > { %527 = vst.msk [vmem:[#allocation3 + $0x18] sm:$0xff] %vm299_vm0, %v523_v38  ;;  %v4020_v41 = vld [vmem:[#allocation3] sm:$0xff] }
 0x110   : > { %526 = vst.msk [vmem:[#allocation3 + $0x10] sm:$0xff] %vm299_vm0, %v522_v40  ;;  %3358 = vmatprep.mubr.msk.bf16.mxu0 %vm613_vm2, %v4020_v41 }
 0x111   : > { %3355 = vmatpush3.bf16.xpose.msra.mxu0 %v633_v42 }
 0x112   : > { %3493 = vmatprep.subr.msk.bf16.mxu0 %vm613_vm2, %v4027_v43 }
 0x116   : > { %v4041_v47 = vld [vmem:[#allocation3 + $0x18] sm:$0xff] }
 0x117   : > { %v4033_v45 = vld [vmem:[#allocation3 + $0x10] sm:$0xff] }
 0x119   : > { %3357 = vmatpush3.bf16.xpose.msra.mxu0 %v636_v44 }
 0x120   : > { %3359 = vmatmul.mubr.msk.bf16.vlgmr.msra.gmra.mrb[0].mxu0 %vm613_vm2, %v4035_v46 }
 0x121   : > { %3362 = vmatprep.mubr.msk.bf16.mxu0 %vm613_vm2, %v4033_v45 }
 0x128   : > { %3363 = vmatmul.mubr.msk.bf16.gmra.mrb[4].mxu0 %vm613_vm2, %v4041_v47 }
 0x1f3   : > { %v4077_v49 = vpop.f32.mrb[0].mxu0 }
 0x1f4   : > { %v4079_v50 = vpop.f32.mrb[1].mxu0  ;;  %v718_v51 = vsel %vm385_vm1, %v4077_v49, -inf }
 0x1f5   : > { %719 = vmax.xlane.f32.xlu1 %v718_v51  ;;  %v4083_v52 = vpop.f32.mrb[2].mxu0  ;;  %v712_v53 = vsel %vm385_vm1, %v4079_v50, -inf }
 0x1f6   : > { %713 = vmax.xlane.f32.xlu0 %v712_v53  ;;  %v4087_v54 = vpop.f32.mrb[3].mxu0  ;;  %v721_v55 = vsel %vm385_vm1, %v4083_v52, -inf }
 0x1f7   : > { %v715_v56 = vsel %vm385_vm1, %v4087_v54, -inf }
 0x1f9   : > { %722 = vmax.xlane.f32.xlu1 %v721_v55 }
 0x1fa   : > { %716 = vmax.xlane.f32.xlu0 %v715_v56 }
 0x1fb   : > { %v4093_v57 = vpop.f32.mrb[4].mxu0 }
 0x1fc   : > { %v4095_v58 = vpop.f32.mrb[5].mxu0  ;;  %v730_v63 = vsel %vm385_vm1, %v4093_v57, -inf }
 0x1fd   : > { %v4097_v59 = vpop.f32.mrb[6].mxu0  ;;  %v724_v60 = vsel %vm385_vm1, %v4095_v58, -inf }
 0x1fe   : > { %v4101_v61 = vpop.f32.mrb[7].mxu0  ;;  %725 = vmax.xlane.f32.xlu0 %v724_v60  ;;  %v733_v0 = vsel %vm385_vm1, %v4097_v59, -inf }
 0x1ff   : > { %v727_v62 = vsel %vm385_vm1, %v4101_v61, -inf }
 0x200   : > { %728 = vmax.xlane.f32.xlu1 %v727_v62 }
 0x202   : > { %731 = vmax.xlane.f32.xlu0 %v730_v63 }
 0x204   : > { %734 = vmax.xlane.f32.xlu1 %v733_v0 }
 0x282   : > { %v720_v5 = vpop.xlane.xlu1 %719 }
 0x283   : > { %v4154_v6 = vmax.f32 %v4149_v3, %v720_v5  ;;  %v714_v7 = vpop.xlane.xlu0 %713 }
 0x284   : > { %v4157_v8 = vmax.f32 %v4151_v4, %v714_v7 }
 0x285   : > { %1060 = vst.msk [vmem:[#allocation4 + $0x10] sm:$0xff] %vm528_vm3, %v4154_v6  ;;  %780 = vperm.xlu1 %3581, %v4154_v6  }
 0x286   : > { %1058 = vst.msk [vmem:[#allocation4] sm:$0xff] %vm528_vm3, %v4157_v8  ;;  %v723_v13 = vpop.xlane.xlu1 %722  ;;  %770 = vperm.xlu0 %3580, %v4157_v8  }
 0x287   : > { %v4174_v14 = vmax.f32 %v4159_v9, %v723_v13  ;;  %v717_v15 = vpop.xlane.xlu0 %716 }
 0x288   : > { %v4177_v16 = vmax.f32 %v4166_v11, %v717_v15 }
 0x289   : > { %1061 = vst.msk [vmem:[#allocation4 + $0x18] sm:$0xff] %vm528_vm3, %v4174_v14  ;;  %953 = vrot.lane.b32.xlu1 %v3999_v24, %s3874_s27 }
 0x28a   : > { %1059 = vst.msk [vmem:[#allocation4 + $0x8] sm:$0xff] %vm528_vm3, %v4177_v16 }
 0x28b   : > { %v726_v21 = vpop.xlane.xlu0 %725 }
 0x28c   : > { %v4194_v22 = vmax.f32 %v4185_v18, %v726_v21 }
 0x28d   : > { %785 = vperm.xlu1 %3581, %v4174_v14   ;;  %v729_v23 = vpop.xlane.xlu1 %728 }
 0x28e   : > { %v4200_v27 = vmax.f32 %v4191_v20, %v729_v23  ;;  %1062 = vst.msk [vmem:[#allocation4 + $0x20] sm:$0xff] %vm528_vm3, %v4194_v22 }
 0x28f   : > { %v732_v30 = vpop.xlane.xlu0 %731 }
 0x290   : > { %1063 = vst.msk [vmem:[#allocation4 + $0x28] sm:$0xff] %vm528_vm3, %v4200_v27  ;;  %795 = vperm.xlu0 %3580, %v4200_v27   ;;  %v4214_v32 = vmax.f32 %v4197_v25, %v732_v30 }
 0x291   : > { %775 = vperm.xlu1 %3581, %v4177_v16   ;;  %v735_v34 = vpop.xlane.xlu1 %734 }
 0x292   : > { %v4218_v35 = vmax.f32 %v4206_v29, %v735_v34  ;;  %1064 = vst.msk [vmem:[#allocation4 + $0x30] sm:$0xff] %vm528_vm3, %v4214_v32 }
 0x294   : > { %1065 = vst.msk [vmem:[#allocation4 + $0x38] sm:$0xff] %vm528_vm3, %v4218_v35  ;;  %805 = vperm.xlu0 %3580, %v4218_v35  }
 0x295   : > { %955 = vrot.lane.b32.xlu1 %v4007_v26, %s3874_s27 }
 0x298   : > { %1092 = vrot.lane.b32.xlu0 %v4007_v26, %s3875_s29 }
 0x299   : > { %957 = vrot.lane.b32.xlu1 %v4011_v33, %s3874_s27 }
 0x29c   : > { %1096 = vrot.lane.b32.xlu0 %v4027_v43, %s3875_s29 }
 0x29d   : > { %959 = vrot.lane.b32.xlu1 %v4027_v43, %s3874_s27 }
 0x2a0   : > { %1080 = vrot.lane.b32.xlu0 %v4035_v46, %s3875_s29 }
 0x2a1   : > { %800 = vperm.xlu1 %3581, %v4214_v32  }
 0x2a4   : > { %1084 = vrot.lane.b32.xlu0 %v4041_v47, %s3875_s29 }
 0x2a5   : > { %790 = vperm.xlu1 %3581, %v4194_v22  }
 0x2a9   : > { %1090 = vrot.lane.b32.xlu1 %v3999_v24, %s3875_s29 }
 0x2ad   : > { %1094 = vrot.lane.b32.xlu1 %v4011_v33, %s3875_s29 }
 0x2b1   : > { %1078 = vrot.lane.b32.xlu1 %v4020_v41, %s3875_s29 }
 0x2b5   : > { %1082 = vrot.lane.b32.xlu1 %v4033_v45, %s3875_s29  ;;  %s3884_s29 = smov [#allocation7]  }
 0x304   : > { %v781_v38 = vpop.permute.xlu1 %780 }
 0x305   : > { %v810_v39 = vsub.f32 %v4077_v49, %v781_v38  ;;  %v771_v42 = vpop.permute.xlu0 %770 }
 0x306   : > { %v808_v48 = vsub.f32 %v4079_v50, %v771_v42 }
 0x307   : > { %v820_v44 = vmul.f32 1.442695, %v810_v39 }
 0x308   : > { %v954_v40 = vpop.permute.xlu1 %953  ;;  %v816_v56 = vmul.f32 1.442695, %v808_v48 }
 0x309   : > { %3366 = vmatprep.subr.bf16.mxu1 %v954_v40  ;;  %3596 = vpow2.f32 %v820_v44 }
 0x30a   : > { %3367 = vmatpush3.bf16.msra.mxu1 %v954_v40 }
 0x30c   : > { %v786_v51 = vpop.permute.xlu1 %785 }
 0x30d   : > { %v811_v53 = vsub.f32 %v4083_v52, %v786_v51 }
 0x30f   : > { %v822_v55 = vmul.f32 1.442695, %v811_v53  ;;  %v796_v63 = vpop.permute.xlu0 %795 }
 0x310   : > { %v776_v60 = vpop.permute.xlu1 %775  ;;  %v813_v21 = vsub.f32 %v4101_v61, %v796_v63 }
 0x311   : > { %3598 = vpow2.f32 %v822_v55  ;;  %v809_v62 = vsub.f32 %v4087_v54, %v776_v60 }
 0x312   : > { %3600 = vpow2.f32 %v816_v56 }
 0x313   : > { %v818_v0 = vmul.f32 1.442695, %v809_v62  ;;  %v806_v2 = vpop.permute.xlu0 %805  ;;  %v4249_v50 = vpop.eup %3596 }
 0x314   : > { %v956_v49 = vpop.permute.xlu1 %955  ;;  %v815_v54 = vsub.f32 %v4097_v59, %v806_v2  ;;  %v826_v59 = vmul.f32 1.442695, %v813_v21 }
 0x315   : > { %3602 = vpow2.f32 %v818_v0  ;;  %3368 = vmatprep.subr.bf16.mxu1 %v956_v49 }
 0x316   : > { %3369 = vmatpush3.bf16.msra.mxu1 %v956_v49  ;;  %v830_v23 = vmul.f32 1.442695, %v815_v54 }
 0x318   : > { %v958_v1 = vpop.permute.xlu1 %957  ;;  %3604 = vpow2.f32 %v830_v23 }
 0x319   : > { %3370 = vmatprep.subr.bf16.mxu1 %v958_v1 }
 0x31a   : > { %3371 = vmatpush3.bf16.msra.mxu1 %v958_v1 }
 0x31b   : > { %v4251_v52 = vpop.eup %3598 }
 0x31c   : > { %v946_v5 = vpack.c.bf16 %v4251_v52, %v4249_v50  ;;  %v960_v7 = vpop.permute.xlu1 %959  ;;  %v4256_v13 = vpop.eup %3600 }
 0x31d   : > { %3372 = vmatprep.subr.bf16.mxu1 %v960_v7 }
 0x31e   : > { %3373 = vmatpush3.bf16.msra.mxu1 %v960_v7 }
 0x31f   : > { %v4258_v15 = vpop.eup %3602 }
 0x320   : > { %v801_v30 = vpop.permute.xlu1 %800  ;;  %v945_v34 = vpack.c.bf16 %v4258_v15, %v4256_v13 }
 0x321   : > { %v814_v38 = vsub.f32 %v4093_v57, %v801_v30  ;;  %v1093_v57 = vpop.permute.xlu0 %1092 }
 0x322   : > { %3374 = vmatprep.mubr.msk.bf16.mxu1 %vm385_vm1, %v945_v34  ;;  %v4270_v51 = vpop.eup %3604  ;;  %v1114_v56 = vsel %vm613_vm2, %v1093_v57, 0 }
 0x323   : > { %v828_v39 = vmul.f32 1.442695, %v814_v38  ;;  %3375 = vmatmul.mubr.msk.bf16.vlgmr.msra.gmra.mrb[16].mxu1 %vm385_vm1, %v946_v5 }
 0x324   : > { %v791_v40 = vpop.permute.xlu1 %790 }
 0x325   : > { %3606 = vpow2.f32 %v828_v39  ;;  %v812_v42 = vsub.f32 %v4095_v58, %v791_v40  ;;  %v1097_v1 = vpop.permute.xlu0 %1096 }
 0x326   : > { %3608 = vpow2.f32 %v826_v59  ;;  %v1120_v2 = vsel %vm613_vm2, %v1097_v1, 0 }
 0x327   : > { %v824_v44 = vmul.f32 1.442695, %v812_v42 }
 0x328   : > { %v1091_v61 = vpop.permute.xlu1 %1090 }
 0x329   : > { %3610 = vpow2.f32 %v824_v44  ;;  %3494 = vmatprep.subr.msk.bf16.mxu1 %vm613_vm2, %v1091_v61  ;;  %v1111_v48 = vsel %vm613_vm2, %v1091_v61, 0  ;;  %v1081_v5 = vpop.permute.xlu0 %1080 }
 0x32a   : > { %3383 = vmatpush3.bf16.xpose.msra.mxu1 %v1111_v48 }
 0x32b   : > { %3495 = vmatprep.subr.msk.bf16.mxu1 %vm613_vm2, %v1093_v57 }
 0x32c   : > { %v1095_v58 = vpop.permute.xlu1 %1094 }
 0x32d   : > { %v1117_v49 = vsel %vm613_vm2, %v1095_v58, 0  ;;  %v1085_v7 = vpop.permute.xlu0 %1084 }
 0x32f   : > { %v4272_v53 = vpop.eup %3606 }
 0x330   : > { %v948_v55 = vpack.c.bf16 %v4270_v51, %v4272_v53  ;;  %v4277_v60 = vpop.eup %3608  ;;  %v1079_v0 = vpop.permute.xlu1 %1078 }
 0x332   : > { %3385 = vmatpush3.bf16.xpose.msra.mxu1 %v1114_v56 }
 0x333   : > { %v4279_v62 = vpop.eup %3610  ;;  %3496 = vmatprep.subr.msk.bf16.mxu1 %vm613_vm2, %v1095_v58 }
 0x334   : > { %v947_v63 = vpack.c.bf16 %v4277_v60, %v4279_v62  ;;  %v1083_v54 = vpop.permute.xlu1 %1082 }
 0x336   : > { %3378 = vmatprep.mubr.msk.bf16.mxu1 %vm385_vm1, %v947_v63 }
 0x337   : > { %3379 = vmatmul.mubr.msk.bf16.gmra.mrb[20].mxu1 %vm385_vm1, %v948_v55 }
 0x338   : > { %3390 = vmatprep.mubr.msk.bf16.mxu1 %vm613_vm2, %v1079_v0 }
 0x33a   : > { %3387 = vmatpush3.bf16.xpose.msra.mxu1 %v1117_v49 }
 0x33b   : > { %3497 = vmatprep.subr.msk.bf16.mxu1 %vm613_vm2, %v1097_v1 }
 0x342   : > { %3389 = vmatpush3.bf16.xpose.msra.mxu1 %v1120_v2 }
 0x349   : > { %3391 = vmatmul.mubr.msk.bf16.vlgmr.msra.gmra.mrb[24].mxu1 %vm613_vm2, %v1081_v5 }
 0x34a   : > { %3394 = vmatprep.mubr.msk.bf16.mxu1 %vm613_vm2, %v1083_v54 }
 0x351   : > { %3395 = vmatmul.mubr.msk.bf16.gmra.mrb[28].mxu1 %vm613_vm2, %v1085_v7 }
 0x3f6   : > { %v4293_v21 = vpop.f32.mrb[16].mxu1 }
 0x3f7   : > { %5391 = vst [vmem:[#allocation10_spill] sm:$0xff] %v4293_v21  ;;  %v4295_v23 = vpop.f32.mrb[17].mxu1 }
 0x3f8   : > { %5392 = vst [vmem:[#allocation11_spill] sm:$0xff] %v4295_v23  ;;  %v4297_v30 = vpop.f32.mrb[18].mxu1 }
 0x3f9   : > { %5393 = vst [vmem:[#allocation12_spill] sm:$0xff] %v4297_v30  ;;  %v4299_v34 = vpop.f32.mrb[19].mxu1 }
 0x3fa   : > { %5394 = vst [vmem:[#allocation13_spill] sm:$0xff] %v4299_v34 }
 0x40a   : > { %v4301_v38 = vpop.f32.mrb[20].mxu1 }
 0x40b   : > { %5395 = vst [vmem:[#allocation14_spill] sm:$0xff] %v4301_v38  ;;  %v4303_v39 = vpop.f32.mrb[21].mxu1  ;;  %v4393_v38 = vld [vmem:[#allocation4 + $0x78] sm:$0xff] }
 0x40c   : > { %5396 = vst [vmem:[#allocation15_spill] sm:$0xff] %v4303_v39  ;;  %v4305_v59 = vpop.f32.mrb[22].mxu1  ;;  %5400 = vst [vmem:[#allocation19_spill] sm:$0xff] %v4393_v38 }
 0x40d   : > { %5397 = vst [vmem:[#allocation16_spill] sm:$0xff] %v4305_v59  ;;  %v4307_v40 = vpop.f32.mrb[23].mxu1 }
 0x40e   : > { %5398 = vst [vmem:[#allocation17_spill] sm:$0xff] %v4307_v40 }
 0x41c   : > { %v4309_v42 = vpop.f32.mrb[24].mxu1 }
 0x41d   : > { %v4311_v44 = vpop.f32.mrb[25].mxu1  ;;  %v1202_v63 = vsel %vm385_vm1, %v4309_v42, -inf }
 0x41e   : > { %v4313_v61 = vpop.f32.mrb[26].mxu1  ;;  %v1196_v48 = vsel %vm385_vm1, %v4311_v44, -inf }
 0x41f   : > { %1197 = vmax.xlane.f32.xlu1 %v1196_v48  ;;  %v4317_v57 = vpop.f32.mrb[27].mxu1  ;;  %v1205_v58 = vsel %vm385_vm1, %v4313_v61, -inf  ;;  %v4341_v48 = vld [vmem:[#allocation4 + $0x40] sm:$0xff] }
 0x420   : > { %v1199_v55 = vsel %vm385_vm1, %v4317_v57, -inf }
 0x421   : > { %1200 = vmax.xlane.f32.xlu0 %v1199_v55 }
 0x423   : > { %1206 = vmax.xlane.f32.xlu1 %v1205_v58  ;;  %v4343_v58 = vld [vmem:[#allocation4 + $0x48] sm:$0xff] }
 0x424   : > { %v4323_v56 = vpop.f32.mrb[28].mxu1 }
 0x425   : > { %1203 = vmax.xlane.f32.xlu0 %v1202_v63  ;;  %v4327_v0 = vpop.f32.mrb[29].mxu1  ;;  %v1214_v54 = vsel %vm385_vm1, %v4323_v56, -inf }
 0x426   : > { %v4329_v49 = vpop.f32.mrb[30].mxu1  ;;  %v1208_v2 = vsel %vm385_vm1, %v4327_v0, -inf }
 0x427   : > { %v4331_v1 = vpop.f32.mrb[31].mxu1  ;;  %v1217_v7 = vsel %vm385_vm1, %v4329_v49, -inf }
 0x428   : > { %v1211_v5 = vsel %vm385_vm1, %v4331_v1, -inf }
 0x429   : > { %1209 = vmax.xlane.f32.xlu0 %v1208_v2  ;;  %1212 = vmax.xlane.f32.xlu1 %v1211_v5 }
 0x42d   : > { %1215 = vmax.xlane.f32.xlu0 %v1214_v54  ;;  %1218 = vmax.xlane.f32.xlu1 %v1217_v7  ;;  %v4358_v7 = vld [vmem:[#allocation4 + $0x50] sm:$0xff] }
 0x4ac   : > { %v1198_v55 = vpop.xlane.xlu1 %1197 }
 0x4ad   : > { %v4346_v63 = vmax.f32 %v4341_v48, %v1198_v55  ;;  %v4377_v55 = vld [vmem:[#allocation4 + $0x68] sm:$0xff] }
 0x4ae   : > { %v1201_v37 = vpop.xlane.xlu0 %1200 }
 0x4af   : > { %1571 = vst.msk [vmem:[#allocation4 + $0x40] sm:$0xff] %vm528_vm3, %v4346_v63  ;;  %v4355_v5 = vmax.f32 %v4343_v58, %v1201_v37  ;;  %1254 = vperm.xlu0 %3580, %v4346_v63  }
 0x4b0   : > { %v1207_v54 = vpop.xlane.xlu1 %1206 }
 0x4b1   : > { %1572 = vst.msk [vmem:[#allocation4 + $0x48] sm:$0xff] %vm528_vm3, %v4355_v5  ;;  %v4365_v17 = vmax.f32 %v4348_v31, %v1207_v54 }
 0x4b2   : > { %v1204_v2 = vpop.xlane.xlu0 %1203 }
 0x4b3   : > { %1574 = vst.msk [vmem:[#allocation4 + $0x58] sm:$0xff] %vm528_vm3, %v4365_v17  ;;  %v4372_v37 = vmax.f32 %v4358_v7, %v1204_v2  ;;  %1269 = vperm.xlu0 %3580, %v4365_v17  }
 0x4b5   : > { %1573 = vst.msk [vmem:[#allocation4 + $0x50] sm:$0xff] %vm528_vm3, %v4372_v37  ;;  %1264 = vperm.xlu1 %3581, %v4372_v37  }
 0x4b6   : > { %v1210_v36 = vpop.xlane.xlu0 %1209  ;;  %v1213_v28 = vpop.xlane.xlu1 %1212 }
 0x4b7   : > { %v4385_v10 = vmax.f32 %v4375_v12, %v1210_v36  ;;  %v4388_v2 = vmax.f32 %v4377_v55, %v1213_v28  ;;  %1435 = vrot.lane.b32.xlu0 %v4007_v26, %s3876_s7 }
 0x4b9   : > { %1575 = vst.msk [vmem:[#allocation4 + $0x60] sm:$0xff] %vm528_vm3, %v4385_v10  ;;  %1576 = vst.msk [vmem:[#allocation4 + $0x68] sm:$0xff] %vm528_vm3, %v4388_v2  ;;  %1259 = vperm.xlu1 %3581, %v4355_v5  }
 0x4ba   : > { %v1216_v28 = vpop.xlane.xlu0 %1215  ;;  %v1219_v59 = vpop.xlane.xlu1 %1218 }
 0x4bb   : > { %v4405_v39 = vmax.f32 %v4391_v19, %v1216_v28  ;;  %v4408_v40 = vmax.f32 %v4393_v38, %v1219_v59  ;;  %1439 = vrot.lane.b32.xlu0 %v4027_v43, %s3876_s7  ;;  %v4531_v38 = vld [vmem:[#allocation4 + $0x88] sm:$0xff] }
 0x4bc   : > { %5414 = vst [vmem:[#allocation33_spill] sm:$0xff] %v4531_v38 }
 0x4bd   : > { %5401 = vst [vmem:[#allocation20_spill] sm:$0xff] %v4405_v39  ;;  %5402 = vst [vmem:[#allocation21_spill] sm:$0xff] %v4408_v40  ;;  %1433 = vrot.lane.b32.xlu1 %v3999_v24, %s3876_s7 }
 0x4be   : > { %1577 = vst.msk [vmem:[#allocation4 + $0x70] sm:$0xff] %vm528_vm3, %v4405_v39  ;;  %1578 = vst.msk [vmem:[#allocation4 + $0x78] sm:$0xff] %vm528_vm3, %v4408_v40 }
 0x4bf   : > { %1279 = vperm.xlu0 %3580, %v4388_v2  }
 0x4c1   : > { %1437 = vrot.lane.b32.xlu1 %v4011_v33, %s3876_s7  ;;  %s3795_s7 = sshll.u32 %s3884_s29, 4  ;;  %s3796_s7 = int_to_ptr.vmem [resolvable:$false] %s3795_s7 }
 0x4c3   : > { %1289 = vperm.xlu0 %3580, %v4408_v40  }
 0x4c5   : > { %1284 = vperm.xlu1 %3581, %v4405_v39  }
 0x4c7   : > { %1605 = vrot.lane.b32.xlu0 %v4007_v26, %s3877_s8 }
 0x4c9   : > { %1274 = vperm.xlu1 %3581, %v4385_v10  }
 0x4cb   : > { %1609 = vrot.lane.b32.xlu0 %v4027_v43, %s3877_s8 }
 0x4cd   : > { %1603 = vrot.lane.b32.xlu1 %v3999_v24, %s3877_s8 }
 0x4cf   : > { %1593 = vrot.lane.b32.xlu0 %v4035_v46, %s3877_s8 }
 0x4d1   : > { %1607 = vrot.lane.b32.xlu1 %v4011_v33, %s3877_s8 }
 0x4d3   : > { %1597 = vrot.lane.b32.xlu0 %v4041_v47, %s3877_s8 }
 0x4d5   : > { %1591 = vrot.lane.b32.xlu1 %v4020_v41, %s3877_s8 }
 0x4d9   : > { %1595 = vrot.lane.b32.xlu1 %v4033_v45, %s3877_s8  ;;  %s3797_s8 = scalar_lea.vmem %s3796_s7, 512 }
 0x52e   : > { %v1255_v59 = vpop.permute.xlu0 %1254 }
 0x52f   : > { %v1292_v36 = vsub.f32 %v4311_v44, %v1255_v59 }
 0x531   : > { %v1300_v34 = vmul.f32 1.442695, %v1292_v36 }
 0x532   : > { %v1270_v28 = vpop.permute.xlu0 %1269 }
 0x533   : > { %v1295_v26 = vsub.f32 %v4313_v61, %v1270_v28 }
 0x534   : > { %v1265_v54 = vpop.permute.xlu1 %1264 }
 0x535   : > { %v1306_v21 = vmul.f32 1.442695, %v1295_v26  ;;  %v1294_v24 = vsub.f32 %v4309_v42, %v1265_v54 }
 0x536   : > { %v1436_v30 = vpop.permute.xlu0 %1435 }
 0x537   : > { %v1304_v46 = vmul.f32 1.442695, %v1294_v24  ;;  %3612 = vpow2.f32 %v1306_v21 }
 0x538   : > { %v1260_v33 = vpop.permute.xlu1 %1259 }
 0x539   : > { %3614 = vpow2.f32 %v1304_v46  ;;  %v1293_v41 = vsub.f32 %v4317_v57, %v1260_v33 }
 0x53a   : > { %v1440_v47 = vpop.permute.xlu0 %1439  ;;  %3616 = vpow2.f32 %v1300_v34 }
 0x53b   : > { %v1302_v45 = vmul.f32 1.442695, %v1293_v41 }
 0x53c   : > { %v1434_v23 = vpop.permute.xlu1 %1433 }
 0x53d   : > { %3618 = vpow2.f32 %v1302_v45  ;;  %3398 = vmatprep.subr.bf16.mxu0 %v1434_v23 }
 0x53e   : > { %v1280_v61 = vpop.permute.xlu0 %1279  ;;  %3399 = vmatpush3.bf16.msra.mxu0 %v1434_v23 }
 0x53f   : > { %3400 = vmatprep.subr.bf16.mxu0 %v1436_v30  ;;  %v1297_v34 = vsub.f32 %v4331_v1, %v1280_v61 }
 0x540   : > { %v1438_v44 = vpop.permute.xlu1 %1437 }
 0x541   : > { %v4437_v59 = vpop.eup %3612  ;;  %v1310_v46 = vmul.f32 1.442695, %v1297_v34 }
 0x542   : > { %v1290_v42 = vpop.permute.xlu0 %1289  ;;  %3401 = vmatpush3.bf16.msra.mxu0 %v1436_v30 }
 0x543   : > { %v4439_v54 = vpop.eup %3614  ;;  %v1299_v21 = vsub.f32 %v4329_v49, %v1290_v42  ;;  %3402 = vmatprep.subr.bf16.mxu0 %v1438_v44 }
 0x544   : > { %v1430_v57 = vpack.c.bf16 %v4437_v59, %v4439_v54  ;;  %v1285_v36 = vpop.permute.xlu1 %1284  ;;  %v4446_v26 = vpop.eup %3616 }
 0x545   : > { %v1314_v28 = vmul.f32 1.442695, %v1299_v21  ;;  %v1298_v23 = vsub.f32 %v4323_v56, %v1285_v36 }
 0x546   : > { %3403 = vmatpush3.bf16.msra.mxu0 %v1438_v44  ;;  %v1606_v42 = vpop.permute.xlu0 %1605 }
 0x547   : > { %v4448_v24 = vpop.eup %3618  ;;  %v1312_v30 = vmul.f32 1.442695, %v1298_v23  ;;  %3404 = vmatprep.subr.bf16.mxu0 %v1440_v47  ;;  %3620 = vpow2.f32 %v1314_v28  ;;  %v1627_v28 = vsel %vm613_vm2, %v1606_v42, 0 }
 0x548   : > { %v1275_v49 = vpop.permute.xlu1 %1274  ;;  %v1429_v33 = vpack.c.bf16 %v4448_v24, %v4446_v26 }
 0x549   : > { %3622 = vpow2.f32 %v1312_v30  ;;  %v1296_v1 = vsub.f32 %v4327_v0, %v1275_v49 }
 0x54a   : > { %3405 = vmatpush3.bf16.msra.mxu0 %v1440_v47  ;;  %3406 = vmatprep.mubr.msk.bf16.mxu0 %vm385_vm1, %v1429_v33  ;;  %3624 = vpow2.f32 %v1310_v46  ;;  %v1610_v30 = vpop.permute.xlu0 %1609 }
 0x54b   : > { %v1308_v56 = vmul.f32 1.442695, %v1296_v1  ;;  %v1633_v46 = vsel %vm613_vm2, %v1610_v30, 0 }
 0x54c   : > { %v1604_v41 = vpop.permute.xlu1 %1603 }
 0x54d   : > { %3626 = vpow2.f32 %v1308_v56  ;;  %3407 = vmatmul.mubr.msk.bf16.vlgmr.msra.gmra.mrb[8].mxu0 %vm385_vm1, %v1430_v57  ;;  %3498 = vmatprep.subr.msk.bf16.mxu0 %vm613_vm2, %v1604_v41  ;;  %v1624_v61 = vsel %vm613_vm2, %v1604_v41, 0 }
 0x54e   : > { %v1594_v49 = vpop.permute.xlu0 %1593 }
 0x550   : > { %v1608_v47 = vpop.permute.xlu1 %1607 }
 0x551   : > { %v4456_v45 = vpop.eup %3620  ;;  %v1630_v23 = vsel %vm613_vm2, %v1608_v47, 0 }
 0x552   : > { %5403 = vst [vmem:[#allocation22_spill] sm:$0xff] %v4456_v45  ;;  %v1598_v1 = vpop.permute.xlu0 %1597 }
 0x553   : > { %v4459_v44 = vpop.eup %3622  ;;  %3415 = vmatpush3.bf16.xpose.msra.mxu0 %v1624_v61 }
 0x554   : > { %5404 = vst [vmem:[#allocation23_spill] sm:$0xff] %v4459_v44  ;;  %3499 = vmatprep.subr.msk.bf16.mxu0 %vm613_vm2, %v1606_v42  ;;  %v1432_v0 = vpack.c.bf16 %v4456_v45, %v4459_v44  ;;  %v4464_v21 = vpop.eup %3624  ;;  %v1592_v36 = vpop.permute.xlu1 %1591  ;;  %v4563_v44 = vld [vmem:[#allocation4 + $0xa0] sm:$0xff] }
 0x557   : > { %v4466_v34 = vpop.eup %3626 }
 0x558   : > { %v1431_v57 = vpack.c.bf16 %v4464_v21, %v4466_v34  ;;  %v1596_v33 = vpop.permute.xlu1 %1595 }
 0x55a   : > { %3410 = vmatprep.mubr.msk.bf16.mxu0 %vm385_vm1, %v1431_v57 }
 0x55b   : > { %3411 = vmatmul.mubr.msk.bf16.gmra.mrb[12].mxu0 %vm385_vm1, %v1432_v0 }
 0x55c   : > { %3417 = vmatpush3.bf16.xpose.msra.mxu0 %v1627_v28  ;;  %3422 = vmatprep.mubr.msk.bf16.mxu0 %vm613_vm2, %v1592_v36 }
 0x55d   : > { %3500 = vmatprep.subr.msk.bf16.mxu0 %vm613_vm2, %v1608_v47 }
 0x564   : > { %3419 = vmatpush3.bf16.xpose.msra.mxu0 %v1630_v23 }
 0x565   : > { %3501 = vmatprep.subr.msk.bf16.mxu0 %vm613_vm2, %v1610_v30 }
 0x56c   : > { %3421 = vmatpush3.bf16.xpose.msra.mxu0 %v1633_v46 }
 0x573   : > { %3423 = vmatmul.mubr.msk.bf16.vlgmr.msra.gmra.mrb[16].mxu0 %vm613_vm2, %v1594_v49 }
 0x574   : > { %3426 = vmatprep.mubr.msk.bf16.mxu0 %vm613_vm2, %v1596_v33 }
 0x57b   : > { %3427 = vmatmul.mubr.msk.bf16.gmra.mrb[20].mxu0 %vm613_vm2, %v1598_v1 }
 0x620   : > { %v4481_v56 = vpop.f32.mrb[8].mxu0 }
 0x621   : > { %5405 = vst [vmem:[#allocation24_spill] sm:$0xff] %v4481_v56  ;;  %v4483_v41 = vpop.f32.mrb[9].mxu0  ;;  %v4529_v56 = vld [vmem:[#allocation4 + $0x80] sm:$0xff] }
 0x622   : > { %5406 = vst [vmem:[#allocation25_spill] sm:$0xff] %v4483_v41  ;;  %v4485_v61 = vpop.f32.mrb[10].mxu0  ;;  %5413 = vst [vmem:[#allocation32_spill] sm:$0xff] %v4529_v56 }
 0x623   : > { %5407 = vst [vmem:[#allocation26_spill] sm:$0xff] %v4485_v61  ;;  %v4487_v42 = vpop.f32.mrb[11].mxu0 }
 0x624   : > { %5408 = vst [vmem:[#allocation27_spill] sm:$0xff] %v4487_v42  ;;  %v4536_v42 = vld [vmem:[#allocation4 + $0x98] sm:$0xff] }
 0x625   : > { %5416 = vst [vmem:[#allocation35_spill] sm:$0xff] %v4536_v42 }
 0x62e   : > { %v4489_v0 = vpop.f32.mrb[12].mxu0 }
 0x62f   : > { %5409 = vst [vmem:[#allocation28_spill] sm:$0xff] %v4489_v0  ;;  %v4491_v47 = vpop.f32.mrb[13].mxu0 }
 0x630   : > { %5410 = vst [vmem:[#allocation29_spill] sm:$0xff] %v4491_v47  ;;  %v4493_v57 = vpop.f32.mrb[14].mxu0 }
 0x631   : > { %5411 = vst [vmem:[#allocation30_spill] sm:$0xff] %v4493_v57  ;;  %v4495_v36 = vpop.f32.mrb[15].mxu0 }
 0x632   : > { %5412 = vst [vmem:[#allocation31_spill] sm:$0xff] %v4495_v36 }
 0x646   : > { %v4497_v28 = vpop.f32.mrb[16].mxu0 }
 0x647   : > { %v4499_v23 = vpop.f32.mrb[17].mxu0  ;;  %v1715_v0 = vsel %vm385_vm1, %v4497_v28, -inf }
 0x648   : > { %v4501_v30 = vpop.f32.mrb[18].mxu0  ;;  %v1709_v46 = vsel %vm385_vm1, %v4499_v23, -inf }
 0x649   : > { %1710 = vmax.xlane.f32.xlu1 %v1709_v46  ;;  %v4505_v49 = vpop.f32.mrb[19].mxu0  ;;  %v1718_v1 = vsel %vm385_vm1, %v4501_v30, -inf }
 0x64a   : > { %v1712_v33 = vsel %vm385_vm1, %v4505_v49, -inf }
 0x64b   : > { %1713 = vmax.xlane.f32.xlu0 %v1712_v33 }
 0x64d   : > { %1719 = vmax.xlane.f32.xlu1 %v1718_v1 }
 0x64e   : > { %v4511_v57 = vpop.f32.mrb[20].mxu0 }
 0x64f   : > { %1716 = vmax.xlane.f32.xlu0 %v1715_v0  ;;  %v4515_v36 = vpop.f32.mrb[21].mxu0  ;;  %v1727_v1 = vsel %vm385_vm1, %v4511_v57, -inf }
 0x650   : > { %v4517_v47 = vpop.f32.mrb[22].mxu0  ;;  %v1721_v61 = vsel %vm385_vm1, %v4515_v36, -inf }
 0x651   : > { %v4519_v46 = vpop.f32.mrb[23].mxu0  ;;  %v1730_v0 = vsel %vm385_vm1, %v4517_v47, -inf }
 0x652   : > { %v1724_v33 = vsel %vm385_vm1, %v4519_v46, -inf }
 0x653   : > { %1722 = vmax.xlane.f32.xlu0 %v1721_v61  ;;  %1725 = vmax.xlane.f32.xlu1 %v1724_v33 }
 0x657   : > { %1728 = vmax.xlane.f32.xlu0 %v1727_v1  ;;  %1731 = vmax.xlane.f32.xlu1 %v1730_v0  ;;  %v4546_v0 = vld [vmem:[#allocation4 + $0x90] sm:$0xff] }
 0x658   : > { %5417 = vst [vmem:[#allocation36_spill] sm:$0xff] %v4546_v0 }
 0x6d6   : > { %v1711_v40 = vpop.xlane.xlu1 %1710 }
 0x6d7   : > { %v4534_v39 = vmax.f32 %v4529_v56, %v1711_v40  ;;  %v4565_v40 = vld [vmem:[#allocation4 + $0xa8] sm:$0xff] }
 0x6d8   : > { %v1714_v19 = vpop.xlane.xlu0 %1713  ;;  %5420 = vst [vmem:[#allocation39_spill] sm:$0xff] %v4565_v40  ;;  %v3788_v56 = vld [vmem:[#allocation2 + $0x8] sm:$0xff] }
 0x6d9   : > { %5415 = vst [vmem:[#allocation34_spill] sm:$0xff] %v4534_v39  ;;  %2084 = vst.msk [vmem:[#allocation4 + $0x80] sm:$0xff] %vm528_vm3, %v4534_v39  ;;  %v4543_v33 = vmax.f32 %v4531_v38, %v1714_v19  ;;  %1767 = vperm.xlu0 %3580, %v4534_v39  }
 0x6da   : > { %v1720_v1 = vpop.xlane.xlu1 %1719 }
 0x6db   : > { %2085 = vst.msk [vmem:[#allocation4 + $0x88] sm:$0xff] %vm528_vm3, %v4543_v33  ;;  %v4553_v41 = vmax.f32 %v4536_v42, %v1720_v1  ;;  %v4580_v42 = vld [vmem:[#allocation4 + $0xb8] sm:$0xff]  ;;  %v2093_v1 = vld [vmem:[#allocation3 + $0x8] sm:$0xff] }
 0x6dc   : > { %v1717_v61 = vpop.xlane.xlu0 %1716  ;;  %5421 = vst [vmem:[#allocation40_spill] sm:$0xff] %v4580_v42 }
 0x6dd   : > { %5418 = vst [vmem:[#allocation37_spill] sm:$0xff] %v4553_v41  ;;  %2087 = vst.msk [vmem:[#allocation4 + $0x98] sm:$0xff] %vm528_vm3, %v4553_v41  ;;  %v4560_v19 = vmax.f32 %v4546_v0, %v1717_v61  ;;  %1782 = vperm.xlu0 %3580, %v4553_v41   ;;  %v4578_v41 = vld [vmem:[#allocation4 + $0xb0] sm:$0xff] }
 0x6df   : > { %5419 = vst [vmem:[#allocation38_spill] sm:$0xff] %v4560_v19  ;;  %2086 = vst.msk [vmem:[#allocation4 + $0x90] sm:$0xff] %vm528_vm3, %v4560_v19  ;;  %1777 = vperm.xlu1 %3581, %v4560_v19  }
 0x6e0   : > { %v1723_v45 = vpop.xlane.xlu0 %1722  ;;  %v1726_v38 = vpop.xlane.xlu1 %1725 }
 0x6e1   : > { %v4573_v39 = vmax.f32 %v4563_v44, %v1723_v45  ;;  %v4576_v61 = vmax.f32 %v4565_v40, %v1726_v38  ;;  %1948 = vrot.lane.b32.xlu0 %v3788_v56, %s3878_s9  ;;  %v3789_v40 = vld [vmem:[#allocation2] sm:$0xff] }
 0x6e2   : > { %v2096_v45 = vld [vmem:[#allocation2] sm:$0xff] }
 0x6e3   : > { %2088 = vst.msk [vmem:[#allocation4 + $0xa0] sm:$0xff] %vm528_vm3, %v4573_v39  ;;  %2089 = vst.msk [vmem:[#allocation4 + $0xa8] sm:$0xff] %vm528_vm3, %v4576_v61  ;;  %1772 = vperm.xlu1 %3581, %v4543_v33  }
 0x6e4   : > { %v1729_v38 = vpop.xlane.xlu0 %1728  ;;  %v1732_v56 = vpop.xlane.xlu1 %1731 }
 0x6e5   : > { %v4592_v19 = vmax.f32 %v4578_v41, %v1729_v38  ;;  %v4595_v0 = vmax.f32 %v4580_v42, %v1732_v56  ;;  %1952 = vrot.lane.b32.xlu0 %v4027_v43, %s3878_s9  ;;  %v3790_v38 = vld [vmem:[#allocation2 + $0x10] sm:$0xff]  ;;  %v2097_v43 = vld [vmem:[#allocation2 + $0x8] sm:$0xff]  ;;  %v2099_v56 = vld [vmem:[#allocation2 + $0x18] sm:$0xff] }
 0x6e6   : > { %v2095_v42 = vld [vmem:[#allocation3 + $0x18] sm:$0xff] }
 0x6e7   : > { %5422 = vst [vmem:[#allocation41_spill] sm:$0xff] %v4592_v19  ;;  %5423 = vst [vmem:[#allocation42_spill] sm:$0xff] %v4595_v0  ;;  %1946 = vrot.lane.b32.xlu1 %v3789_v40, %s3878_s9  ;;  %v2098_v40 = vld [vmem:[#allocation2 + $0x10] sm:$0xff] }
 0x6e8   : > { %2090 = vst.msk [vmem:[#allocation4 + $0xb0] sm:$0xff] %vm528_vm3, %v4592_v19  ;;  %2091 = vst.msk [vmem:[#allocation4 + $0xb8] sm:$0xff] %vm528_vm3, %v4595_v0 }
 0x6e9   : > { %1792 = vperm.xlu0 %3580, %v4576_v61  }
 0x6eb   : > { %1950 = vrot.lane.b32.xlu1 %v3790_v38, %s3878_s9  ;;  %v2092_v38 = vld [vmem:[#allocation3] sm:$0xff] }
 0x6ed   : > { %1802 = vperm.xlu0 %3580, %v4595_v0   ;;  %v2094_v0 = vld [vmem:[#allocation3 + $0x10] sm:$0xff] }
 0x6ef   : > { %1797 = vperm.xlu1 %3581, %v4592_v19   ;;  %v851_v19 = vsel %vm385_vm1, %v4258_v15, 0.0  ;;  %v857_v15 = vsel %vm385_vm1, %v4251_v52, 0.0  ;;  %v1345_v52 = vsel %vm385_vm1, %v4466_v34, 0.0 }
 0x6f1   : > { %2118 = vrot.lane.b32.xlu0 %v2097_v43, %s3879_s10 }
 0x6f3   : > { %1787 = vperm.xlu1 %3581, %v4573_v39  }
 0x6f5   : > { %2122 = vrot.lane.b32.xlu0 %v2099_v56, %s3879_s10 }
 0x6f7   : > { %2116 = vrot.lane.b32.xlu1 %v2096_v45, %s3879_s10 }
 0x6f9   : > { %2106 = vrot.lane.b32.xlu0 %v2093_v1, %s3879_s10  ;;  %v854_v1 = vsel %vm385_vm1, %v4249_v50, 0.0  ;;  %v1336_v50 = vsel %vm385_vm1, %v4448_v24, 0.0  ;;  %v1333_v24 = vsel %vm385_vm1, %v4446_v26, 0.0 }
 0x6fb   : > { %2120 = vrot.lane.b32.xlu1 %v2098_v40, %s3879_s10 }
 0x6fd   : > { %2110 = vrot.lane.b32.xlu0 %v2095_v42, %s3879_s10  ;;  %v860_v42 = vsel %vm385_vm1, %v4279_v62, 0.0  ;;  %v863_v62 = vsel %vm385_vm1, %v4277_v60, 0.0  ;;  %v1342_v60 = vsel %vm385_vm1, %v4437_v59, 0.0 }
 0x6ff   : > { %2104 = vrot.lane.b32.xlu1 %v2092_v38, %s3879_s10 }
 0x701   : > { %2461 = vrot.lane.b32.xlu0 %v2097_v43, %s3880_s11  ;;  %v848_v43 = vsel %vm385_vm1, %v4256_v13, 0.0  ;;  %v1339_v13 = vsel %vm385_vm1, %v4439_v54, 0.0  ;;  %v1348_v54 = vsel %vm385_vm1, %v4464_v21, 0.0 }
 0x703   : > { %2108 = vrot.lane.b32.xlu1 %v2094_v0, %s3879_s10  ;;  %v866_v0 = vsel %vm385_vm1, %v4272_v53, 0.0  ;;  %v869_v53 = vsel %vm385_vm1, %v4270_v51, 0.0 }
 0x705   : > { %2465 = vrot.lane.b32.xlu0 %v2099_v56, %s3880_s11 }
 0x707   : > { %2459 = vrot.lane.b32.xlu1 %v2096_v45, %s3880_s11 }
 0x70b   : > { %2463 = vrot.lane.b32.xlu1 %v2098_v40, %s3880_s11 }
 0x724   : > { %852 = vadd.xlane.f32.xlu0 %v851_v19 }
 0x728   : > { %855 = vadd.xlane.f32.xlu0 %v854_v1 }
 0x72c   : > { %861 = vadd.xlane.f32.xlu0 %v860_v42 }
 0x72f   : > { %849 = vadd.xlane.f32.xlu1 %v848_v43 }
 0x730   : > { %867 = vadd.xlane.f32.xlu0 %v866_v0 }
 0x733   : > { %858 = vadd.xlane.f32.xlu1 %v857_v15 }
 0x734   : > { %1337 = vadd.xlane.f32.xlu0 %v1336_v50 }
 0x737   : > { %864 = vadd.xlane.f32.xlu1 %v863_v62 }
 0x738   : > { %1340 = vadd.xlane.f32.xlu0 %v1339_v13 }
 0x73b   : > { %870 = vadd.xlane.f32.xlu1 %v869_v53 }
 0x73c   : > { %1346 = vadd.xlane.f32.xlu0 %v1345_v52 }
 0x73f   : > { %1334 = vadd.xlane.f32.xlu1 %v1333_v24 }
 0x743   : > { %1343 = vadd.xlane.f32.xlu1 %v1342_v60 }
 0x747   : > { %1349 = vadd.xlane.f32.xlu1 %v1348_v54 }
 0x758   : > { %v1768_v19 = vpop.permute.xlu0 %1767 }
 0x759   : > { %v1805_v51 = vsub.f32 %v4499_v23, %v1768_v19 }
 0x75b   : > { %v1813_v26 = vmul.f32 1.442695, %v1805_v51 }
 0x75c   : > { %v1783_v45 = vpop.permute.xlu0 %1782 }
 0x75d   : > { %v1808_v56 = vsub.f32 %v4501_v30, %v1783_v45 }
 0x75e   : > { %v1778_v34 = vpop.permute.xlu1 %1777 }
 0x75f   : > { %v1819_v40 = vmul.f32 1.442695, %v1808_v56  ;;  %v1807_v38 = vsub.f32 %v4497_v28, %v1778_v34 }
 0x760   : > { %v1949_v1 = vpop.permute.xlu0 %1948 }
 0x761   : > { %3628 = vpow2.f32 %v1819_v40  ;;  %v1817_v42 = vmul.f32 1.442695, %v1807_v38 }
 0x762   : > { %v1773_v59 = vpop.permute.xlu1 %1772 }
 0x763   : > { %3630 = vpow2.f32 %v1817_v42  ;;  %v1806_v43 = vsub.f32 %v4505_v49, %v1773_v59 }
 0x764   : > { %3632 = vpow2.f32 %v1813_v26  ;;  %v1953_v21 = vpop.permute.xlu0 %1952 }
 0x765   : > { %v1815_v0 = vmul.f32 1.442695, %v1806_v43 }
 0x766   : > { %v1947_v15 = vpop.permute.xlu1 %1946 }
 0x767   : > { %3634 = vpow2.f32 %v1815_v0  ;;  %3430 = vmatprep.subr.bf16.mxu1 %v1947_v15 }
 0x768   : > { %v1793_v23 = vpop.permute.xlu0 %1792  ;;  %3431 = vmatpush3.bf16.msra.mxu1 %v1947_v15 }
 0x769   : > { %3432 = vmatprep.subr.bf16.mxu1 %v1949_v1  ;;  %v1810_v24 = vsub.f32 %v4519_v46, %v1793_v23 }
 0x76a   : > { %v1951_v30 = vpop.permute.xlu1 %1950 }
 0x76b   : > { %v3629_v50 = vpop.eup %3628  ;;  %v1823_v40 = vmul.f32 1.442695, %v1810_v24 }
 0x76c   : > { %v1803_v28 = vpop.permute.xlu0 %1802  ;;  %3433 = vmatpush3.bf16.msra.mxu1 %v1949_v1  ;;  %v1855_v62 = vsel %vm385_vm1, %v3629_v50, 0.0 }
 0x76d   : > { %v3631_v13 = vpop.eup %3630  ;;  %v1812_v53 = vsub.f32 %v4517_v47, %v1803_v28  ;;  %1856 = vadd.xlane.f32.xlu1 %v1855_v62  ;;  %3434 = vmatprep.subr.bf16.mxu1 %v1951_v30 }
 0x76e   : > { %v3633_v49 = vpop.eup %3632  ;;  %v1943_v52 = vpack.c.bf16 %v3629_v50, %v3631_v13  ;;  %v1798_v60 = vpop.permute.xlu1 %1797  ;;  %v1852_v54 = vsel %vm385_vm1, %v3631_v13, 0.0 }
 0x76f   : > { %v1827_v19 = vmul.f32 1.442695, %v1812_v53  ;;  %v1811_v51 = vsub.f32 %v4511_v57, %v1798_v60  ;;  %1853 = vadd.xlane.f32.xlu0 %v1852_v54  ;;  %v1846_v47 = vsel %vm385_vm1, %v3633_v49, 0.0 }
 0x770   : > { %v2119_v45 = vpop.permute.xlu0 %2118  ;;  %3435 = vmatpush3.bf16.msra.mxu1 %v1951_v30 }
 0x771   : > { %v3635_v56 = vpop.eup %3634  ;;  %v1825_v34 = vmul.f32 1.442695, %v1811_v51  ;;  %3436 = vmatprep.subr.bf16.mxu1 %v1953_v21  ;;  %3636 = vpow2.f32 %v1827_v19 }
 0x772   : > { %v1788_v38 = vpop.permute.xlu1 %1787  ;;  %v1849_v26 = vsel %vm385_vm1, %v3635_v56, 0.0  ;;  %v1942_v46 = vpack.c.bf16 %v3635_v56, %v3633_v49  ;;  %v2140_v49 = vsel %vm613_vm2, %v2119_v45, 0 }
 0x773   : > { %3638 = vpow2.f32 %v1825_v34  ;;  %v1809_v1 = vsub.f32 %v4515_v36, %v1788_v38  ;;  %1847 = vadd.xlane.f32.xlu0 %v1846_v47  ;;  %1850 = vadd.xlane.f32.xlu1 %v1849_v26  ;;  %v5425_v34 = vsub.f32 %v4149_v3, %v4154_v6  ;;  %v5427_v26 = vsub.f32 %v4151_v4, %v4157_v8  ;;  %v833_v3 = vld [vmem:[#allocation5 + $0x8] sm:$0xff] }
 0x774   : > { %3437 = vmatpush3.bf16.msra.mxu1 %v1953_v21  ;;  %3438 = vmatprep.mubr.msk.bf16.mxu1 %vm385_vm1, %v1942_v46  ;;  %3640 = vpow2.f32 %v1823_v40  ;;  %v2123_v42 = vpop.permute.xlu0 %2122  ;;  %v5426_v40 = vsub.f32 %v4185_v18, %v4194_v22  ;;  %v5429_v6 = vsub.f32 %v4159_v9, %v4174_v14  ;;  %v5430_v18 = vsub.f32 %v4343_v58, %v4355_v5 }
 0x775   : > { %v1821_v57 = vmul.f32 1.442695, %v1809_v1  ;;  %v2146_v51 = vsel %vm613_vm2, %v2123_v42, 0  ;;  %v756_v47 = vmul.f32 1.442695, %v5425_v34  ;;  %v5432_v9 = vsub.f32 %v4358_v7, %v4372_v37  ;;  %v1318_v34 = vld [vmem:[#allocation5 + $0x48] sm:$0xff] }
 0x776   : > { %v2117_v59 = vpop.permute.xlu1 %2116  ;;  %v760_v38 = vmul.f32 1.442695, %v5426_v40  ;;  %v752_v46 = vmul.f32 1.442695, %v5427_v26  ;;  %v1238_v22 = vmul.f32 1.442695, %v5430_v18 }
 0x777   : > { %3642 = vpow2.f32 %v1821_v57  ;;  %3439 = vmatmul.mubr.msk.bf16.vlgmr.msra.gmra.mrb[32].mxu1 %vm385_vm1, %v1943_v52  ;;  %3502 = vmatprep.subr.msk.bf16.mxu1 %vm613_vm2, %v2117_v59  ;;  %v2137_v36 = vsel %vm613_vm2, %v2117_v59, 0  ;;  %v758_v57 = vmul.f32 1.442695, %v5429_v6  ;;  %v1240_v14 = vmul.f32 1.442695, %v5432_v9 }
 0x778   : > { %v2107_v15 = vpop.permute.xlu0 %2106 }
 0x77a   : > { %v2121_v43 = vpop.permute.xlu1 %2120 }
 0x77b   : > { %v4653_v0 = vpop.eup %3636  ;;  %v2143_v54 = vsel %vm613_vm2, %v2121_v43, 0 }
 0x77c   : > { %v2111_v62 = vpop.permute.xlu0 %2110 }
 0x77d   : > { %v4656_v23 = vpop.eup %3638  ;;  %3447 = vmatpush3.bf16.xpose.msra.mxu1 %v2137_v36  ;;  %v836_v36 = vld [vmem:[#allocation5 + $0x20] sm:$0xff] }
 0x77e   : > { %3503 = vmatprep.subr.msk.bf16.mxu1 %vm613_vm2, %v2119_v45  ;;  %v2105_v21 = vpop.permute.xlu1 %2104  ;;  %v1945_v30 = vpack.c.bf16 %v4653_v0, %v4656_v23  ;;  %v4661_v50 = vpop.eup %3640  ;;  %v5424_v45 = vsub.f32 %v4166_v11, %v4177_v16  ;;  %v5428_v11 = vsub.f32 %v4197_v25, %v4214_v32  ;;  %v834_v25 = vld [vmem:[#allocation5 + $0x10] sm:$0xff]  ;;  %v5431_v32 = vsub.f32 %v4191_v20, %v4200_v27 }
 0x780   : > { %v2462_v24 = vpop.permute.xlu0 %2461  ;;  %v754_v56 = vmul.f32 1.442695, %v5424_v45  ;;  %v764_v16 = vmul.f32 1.442695, %v5428_v11  ;;  %v762_v59 = vmul.f32 1.442695, %v5431_v32 }
 0x781   : > { %v4663_v28 = vpop.eup %3642  ;;  %v837_v11 = vld [vmem:[#allocation5 + $0x28] sm:$0xff]  ;;  %v839_v32 = vld [vmem:[#allocation5 + $0x38] sm:$0xff] }
 0x782   : > { %v2109_v13 = vpop.permute.xlu1 %2108  ;;  %v1944_v53 = vpack.c.bf16 %v4661_v50, %v4663_v28  ;;  %3644 = vpow2.f32 %v754_v56 }
 0x783   : > { %3646 = vpow2.f32 %v756_v47 }
 0x784   : > { %3442 = vmatprep.mubr.msk.bf16.mxu1 %vm385_vm1, %v1944_v53  ;;  %v2466_v19 = vpop.permute.xlu0 %2465  ;;  %3648 = vpow2.f32 %v760_v38 }
 0x785   : > { %3443 = vmatmul.mubr.msk.bf16.gmra.mrb[36].mxu1 %vm385_vm1, %v1945_v30  ;;  %3650 = vpow2.f32 %v752_v46  ;;  %v5434_v30 = vsub.f32 %v4375_v12, %v4385_v10 }
 0x786   : > { %3449 = vmatpush3.bf16.xpose.msra.mxu1 %v2140_v49  ;;  %3454 = vmatprep.mubr.msk.bf16.mxu1 %vm613_vm2, %v2105_v21  ;;  %v2460_v52 = vpop.permute.xlu1 %2459  ;;  %3652 = vpow2.f32 %v764_v16  ;;  %v5433_v21 = vsub.f32 %v4206_v29, %v4218_v35  ;;  %v5435_v29 = vsub.f32 %v4341_v48, %v4346_v63  ;;  %v5436_v48 = vsub.f32 %v4348_v31, %v4365_v17 }
 0x787   : > { %3504 = vmatprep.subr.msk.bf16.mxu1 %vm613_vm2, %v2121_v43  ;;  %3462 = vmatprep.subr.bf16.mxu0 %v2460_v52  ;;  %3654 = vpow2.f32 %v758_v57  ;;  %v1244_v7 = vmul.f32 1.442695, %v5434_v30  ;;  %v1319_v57 = vld [vmem:[#allocation5 + $0x50] sm:$0xff]  ;;  %v5437_v17 = vsub.f32 %v4377_v55, %v4388_v2 }
 0x788   : > { %3463 = vmatpush3.bf16.msra.mxu0 %v2460_v52  ;;  %3656 = vpow2.f32 %v1238_v22  ;;  %v766_v20 = vmul.f32 1.442695, %v5433_v21  ;;  %v838_v52 = vld [vmem:[#allocation5 + $0x30] sm:$0xff]  ;;  %v1236_v35 = vmul.f32 1.442695, %v5435_v29  ;;  %v1317_v21 = vld [vmem:[#allocation5 + $0x40] sm:$0xff] }
 0x789   : > { %3464 = vmatprep.subr.bf16.mxu0 %v2462_v24  ;;  %3658 = vpow2.f32 %v762_v59  ;;  %v1242_v63 = vmul.f32 1.442695, %v5436_v48  ;;  %v1246_v31 = vmul.f32 1.442695, %v5437_v17  ;;  %v5447_v17 = vld [vmem:[#allocation33_spill] sm:$0xff] }
 0x78a   : > { %v2464_v60 = vpop.permute.xlu1 %2463  ;;  %3660 = vpow2.f32 %v1240_v14  ;;  %v1321_v14 = vld [vmem:[#allocation5 + $0x60] sm:$0xff] }
 0x78b   : > { %3662 = vpow2.f32 %v766_v20 }
 0x78c   : > { %3465 = vmatpush3.bf16.msra.mxu0 %v2462_v24  ;;  %v4693_v1 = vpop.eup %3644  ;;  %3664 = vpow2.f32 %v1244_v7 }
 0x78d   : > { %3466 = vmatprep.subr.bf16.mxu0 %v2464_v60  ;;  %v841_v4 = vmul.f32 %v4693_v1, %v833_v3  ;;  %v4702_v8 = vpop.eup %3646  ;;  %3666 = vpow2.f32 %v1236_v35 }
 0x78e   : > { %3451 = vmatpush3.bf16.xpose.msra.mxu1 %v2143_v54  ;;  %v842_v58 = vmul.f32 %v4702_v8, %v834_v25  ;;  %v4712_v5 = vpop.eup %3648  ;;  %3668 = vpow2.f32 %v1242_v63 }
 0x78f   : > { %3505 = vmatprep.subr.msk.bf16.mxu1 %vm613_vm2, %v2123_v42  ;;  %v4720_v37 = vpop.eup %3650  ;;  %3670 = vpow2.f32 %v1246_v31  ;;  %v5448_v31 = vsub.f32 %v5447_v17, %v4543_v33 }
 0x790   : > { %3467 = vmatpush3.bf16.msra.mxu0 %v2464_v60  ;;  %v4724_v53 = vpop.eup %3652 }
 0x791   : > { %3468 = vmatprep.subr.bf16.mxu0 %v2466_v19  ;;  %v4730_v12 = vpop.eup %3654  ;;  %v846_v54 = vmul.f32 %v4724_v53, %v838_v52 }
 0x794   : > { %3469 = vmatpush3.bf16.msra.mxu0 %v2466_v19  ;;  %v835_v19 = vld [vmem:[#allocation5 + $0x18] sm:$0xff] }
 0x795   : > { %v843_v40 = vmul.f32 %v4730_v12, %v835_v19 }
 0x796   : > { %3453 = vmatpush3.bf16.xpose.msra.mxu1 %v2146_v51  ;;  %v4734_v51 = vpop.eup %3656 }
 0x797   : > { %v4741_v38 = vpop.eup %3658  ;;  %v1326_v46 = vmul.f32 %v4734_v51, %v1318_v34  ;;  %v5439_v34 = vld [vmem:[#allocation37_spill] sm:$0xff] }
 0x798   : > { %v4745_v16 = vpop.eup %3660  ;;  %v845_v22 = vmul.f32 %v4741_v38, %v837_v11  ;;  %v5444_v11 = vld [vmem:[#allocation32_spill] sm:$0xff] }
 0x799   : > { %v1327_v25 = vmul.f32 %v4745_v16, %v1319_v57 }
 0x79d   : > { %3455 = vmatmul.mubr.msk.bf16.vlgmr.msra.gmra.mrb[40].mxu1 %vm613_vm2, %v2107_v15 }
 0x79e   : > { %3458 = vmatprep.mubr.msk.bf16.mxu1 %vm613_vm2, %v2109_v13  ;;  %v832_v13 = vld [vmem:[#allocation5] sm:$0xff] }
 0x79f   : > { %v840_v10 = vmul.f32 %v4720_v37, %v832_v13 }
 0x7a5   : > { %3459 = vmatmul.mubr.msk.bf16.gmra.mrb[44].mxu1 %vm613_vm2, %v2111_v62  ;;  %v844_v62 = vmul.f32 %v4712_v5, %v836_v36 }
 0x7b1   : > { %v853_v42 = vpop.xlane.xlu0 %852 }
 0x7b2   : > { %v873_v43 = vadd.f32 %v853_v42, %v841_v4  ;;  %v4752_v4 = vpop.eup %3662 }
 0x7b3   : > { %v4756_v59 = vpop.eup %3664  ;;  %v847_v2 = vmul.f32 %v4752_v4, %v839_v32  ;;  %v1832_v32 = vld [vmem:[#allocation5 + $0x90] sm:$0xff] }
 0x7b4   : > { %882 = vst.msk [vmem:[#allocation5 + $0x8] sm:$0xff] %vm528_vm3, %v873_v43  ;;  %v1329_v36 = vmul.f32 %v4756_v59, %v1321_v14 }
 0x7b5   : > { %v856_v15 = vpop.xlane.xlu0 %855 }
 0x7b6   : > { %v874_v27 = vadd.f32 %v856_v15, %v842_v58  ;;  %v4760_v58 = vpop.eup %3666 }
 0x7b7   : > { %v1325_v7 = vmul.f32 %v4760_v58, %v1317_v21  ;;  %v1831_v21 = vld [vmem:[#allocation5 + $0x88] sm:$0xff] }
 0x7b8   : > { %883 = vst.msk [vmem:[#allocation5 + $0x10] sm:$0xff] %vm528_vm3, %v874_v27 }
 0x7b9   : > { %v862_v49 = vpop.xlane.xlu0 %861 }
 0x7ba   : > { %v876_v24 = vadd.f32 %v862_v49, %v844_v62  ;;  %v4766_v62 = vpop.eup %3668  ;;  %v1320_v49 = vld [vmem:[#allocation5 + $0x58] sm:$0xff] }
 0x7bb   : > { %v1328_v29 = vmul.f32 %v4766_v62, %v1320_v49  ;;  %v4771_v35 = vpop.eup %3670 }
 0x7bc   : > { %885 = vst.msk [vmem:[#allocation5 + $0x20] sm:$0xff] %vm528_vm3, %v876_v24  ;;  %v850_v60 = vpop.xlane.xlu1 %849 }
 0x7bd   : > { %v872_v45 = vadd.f32 %v850_v60, %v840_v10  ;;  %v868_v56 = vpop.xlane.xlu0 %867  ;;  %v1322_v10 = vld [vmem:[#allocation5 + $0x68] sm:$0xff] }
 0x7be   : > { %v878_v47 = vadd.f32 %v868_v56, %v846_v54  ;;  %v1330_v54 = vmul.f32 %v4771_v35, %v1322_v10  ;;  %v5438_v56 = vld [vmem:[#allocation35_spill] sm:$0xff] }
 0x7bf   : > { %881 = vst.msk [vmem:[#allocation5] sm:$0xff] %vm528_vm3, %v872_v45  ;;  %v5440_v48 = vsub.f32 %v5438_v56, %v5439_v34 }
 0x7c0   : > { %887 = vst.msk [vmem:[#allocation5 + $0x30] sm:$0xff] %vm528_vm3, %v878_v47  ;;  %v859_v26 = vpop.xlane.xlu1 %858  ;;  %v5441_v47 = vld [vmem:[#allocation36_spill] sm:$0xff] }
 0x7c1   : > { %v875_v3 = vadd.f32 %v859_v26, %v843_v40  ;;  %v1338_v6 = vpop.xlane.xlu0 %1337  ;;  %v1755_v63 = vmul.f32 1.442695, %v5440_v48  ;;  %v5442_v40 = vld [vmem:[#allocation38_spill] sm:$0xff] }
 0x7c2   : > { %v1358_v18 = vadd.f32 %v1338_v6, %v1326_v46  ;;  %v5443_v26 = vsub.f32 %v5441_v47, %v5442_v40 }
 0x7c3   : > { %884 = vst.msk [vmem:[#allocation5 + $0x18] sm:$0xff] %vm528_vm3, %v875_v3  ;;  %3672 = vpow2.f32 %v1755_v63  ;;  %v5445_v3 = vld [vmem:[#allocation34_spill] sm:$0xff] }
 0x7c4   : > { %1366 = vst.msk [vmem:[#allocation5 + $0x48] sm:$0xff] %vm528_vm3, %v1358_v18  ;;  %v865_v42 = vpop.xlane.xlu1 %864  ;;  %v1753_v46 = vmul.f32 1.442695, %v5443_v26  ;;  %v5446_v6 = vsub.f32 %v5444_v11, %v5445_v3  ;;  %v1751_v18 = vmul.f32 1.442695, %v5448_v31 }
 0x7c5   : > { %v877_v43 = vadd.f32 %v865_v42, %v845_v22  ;;  %v1341_v9 = vpop.xlane.xlu0 %1340  ;;  %v1833_v42 = vld [vmem:[#allocation5 + $0x98] sm:$0xff] }
 0x7c6   : > { %v1359_v55 = vadd.f32 %v1341_v9, %v1327_v25  ;;  %v1749_v57 = vmul.f32 1.442695, %v5446_v6  ;;  %3674 = vpow2.f32 %v1753_v46 }
 0x7c7   : > { %886 = vst.msk [vmem:[#allocation5 + $0x28] sm:$0xff] %vm528_vm3, %v877_v43 }
 0x7c8   : > { %1367 = vst.msk [vmem:[#allocation5 + $0x50] sm:$0xff] %vm528_vm3, %v1359_v55  ;;  %v871_v15 = vpop.xlane.xlu1 %870  ;;  %3676 = vpow2.f32 %v1749_v57 }
 0x7c9   : > { %v879_v20 = vadd.f32 %v871_v15, %v847_v2  ;;  %v1347_v27 = vpop.xlane.xlu0 %1346  ;;  %3678 = vpow2.f32 %v1751_v18 }
 0x7ca   : > { %v1361_v30 = vadd.f32 %v1347_v27, %v1329_v36  ;;  %v1830_v36 = vld [vmem:[#allocation5 + $0x80] sm:$0xff] }
 0x7cb   : > { %888 = vst.msk [vmem:[#allocation5 + $0x38] sm:$0xff] %vm528_vm3, %v879_v20 }
 0x7cc   : > { %1369 = vst.msk [vmem:[#allocation5 + $0x60] sm:$0xff] %vm528_vm3, %v1361_v30  ;;  %v1335_v13 = vpop.xlane.xlu1 %1334 }
 0x7cd   : > { %v1357_v52 = vadd.f32 %v1335_v13, %v1325_v7  ;;  %v4788_v22 = vpop.eup %3672 }
 0x7ce   : > { %v1841_v43 = vmul.f32 %v4788_v22, %v1833_v42 }
 0x7cf   : > { %1365 = vst.msk [vmem:[#allocation5 + $0x40] sm:$0xff] %vm528_vm3, %v1357_v52 }
 0x7d0   : > { %v1344_v24 = vpop.xlane.xlu1 %1343  ;;  %v4790_v25 = vpop.eup %3674 }
 0x7d1   : > { %v1360_v60 = vadd.f32 %v1344_v24, %v1328_v29  ;;  %v1840_v2 = vmul.f32 %v4790_v25, %v1832_v32 }
 0x7d2   : > { %v4793_v14 = vpop.eup %3676 }
 0x7d3   : > { %1368 = vst.msk [vmem:[#allocation5 + $0x58] sm:$0xff] %vm528_vm3, %v1360_v60  ;;  %v4796_v15 = vpop.eup %3678  ;;  %v1838_v27 = vmul.f32 %v4793_v14, %v1830_v36 }
 0x7d4   : > { %v1350_v19 = vpop.xlane.xlu1 %1349  ;;  %v1839_v30 = vmul.f32 %v4796_v15, %v1831_v21  ;;  %v4862_v21 = vld [vmem:[#allocation4 + $0xc8] sm:$0xff] }
 0x7d5   : > { %v1362_v45 = vadd.f32 %v1350_v19, %v1330_v54 }
 0x7d7   : > { %1370 = vst.msk [vmem:[#allocation5 + $0x68] sm:$0xff] %vm528_vm3, %v1362_v45 }
 0x7fa   : > { %v1857_v9 = vpop.xlane.xlu1 %1856 }
 0x7fb   : > { %v1873_v55 = vadd.f32 %v1857_v9, %v1841_v43  ;;  %v4852_v43 = vld [vmem:[#allocation4 + $0xd0] sm:$0xff]  ;;  %v4854_v9 = vld [vmem:[#allocation4 + $0xc0] sm:$0xff] }
 0x7fc   : > { %v1854_v33 = vpop.xlane.xlu0 %1853 }
 0x7fd   : > { %1881 = vst.msk [vmem:[#allocation5 + $0x98] sm:$0xff] %vm528_vm3, %v1873_v55  ;;  %v1872_v20 = vadd.f32 %v1854_v33, %v1840_v2 }
 0x7ff   : > { %1880 = vst.msk [vmem:[#allocation5 + $0x90] sm:$0xff] %vm528_vm3, %v1872_v20 }
 0x800   : > { %v1848_v7 = vpop.xlane.xlu0 %1847  ;;  %v1851_v13 = vpop.xlane.xlu1 %1850 }
 0x801   : > { %v1870_v49 = vadd.f32 %v1848_v7, %v1838_v27  ;;  %v1871_v52 = vadd.f32 %v1851_v13, %v1839_v30  ;;  %v4869_v27 = vld [vmem:[#allocation4 + $0xd8] sm:$0xff]  ;;  %v5450_v30 = vld [vmem:[#allocation23_spill] sm:$0xff] }
 0x803   : > { %1878 = vst.msk [vmem:[#allocation5 + $0x80] sm:$0xff] %vm528_vm3, %v1870_v49  ;;  %1879 = vst.msk [vmem:[#allocation5 + $0x88] sm:$0xff] %vm528_vm3, %v1871_v52 }
 0x84a   : > { %v4804_v29 = vpop.f32.mrb[32].mxu1 }
 0x84b   : > { %v4806_v24 = vpop.f32.mrb[33].mxu1 }
 0x84c   : > { %v4808_v10 = vpop.f32.mrb[34].mxu1 }
 0x84d   : > { %v4810_v60 = vpop.f32.mrb[35].mxu1 }
 0x858   : > { %v4812_v54 = vpop.f32.mrb[36].mxu1 }
 0x859   : > { %v4814_v19 = vpop.f32.mrb[37].mxu1 }
 0x85a   : > { %v4816_v45 = vpop.f32.mrb[38].mxu1 }
 0x85b   : > { %v4818_v56 = vpop.f32.mrb[39].mxu1 }
 0x870   : > { %v4820_v34 = vpop.f32.mrb[40].mxu1 }
 0x871   : > { %v4822_v48 = vpop.f32.mrb[41].mxu1  ;;  %v2228_v63 = vsel %vm385_vm1, %v4820_v34, -inf }
 0x872   : > { %2229 = vmax.xlane.f32.xlu0 %v2228_v63  ;;  %v4826_v47 = vpop.f32.mrb[42].mxu1  ;;  %v2222_v40 = vsel %vm385_vm1, %v4822_v48, -inf  ;;  %v4882_v63 = vld [vmem:[#allocation4 + $0xf0] sm:$0xff] }
 0x873   : > { %2223 = vmax.xlane.f32.xlu1 %v2222_v40  ;;  %v4830_v26 = vpop.f32.mrb[43].mxu1  ;;  %v2231_v11 = vsel %vm385_vm1, %v4826_v47, -inf }
 0x874   : > { %v2225_v46 = vsel %vm385_vm1, %v4830_v26, -inf }
 0x876   : > { %2226 = vmax.xlane.f32.xlu0 %v2225_v46  ;;  %v5451_v46 = vld [vmem:[#allocation22_spill] sm:$0xff] }
 0x877   : > { %2232 = vmax.xlane.f32.xlu1 %v2231_v11 }
 0x878   : > { %v4836_v3 = vpop.f32.mrb[44].mxu1 }
 0x879   : > { %v4838_v6 = vpop.f32.mrb[45].mxu1  ;;  %v2240_v57 = vsel %vm385_vm1, %v4836_v3, -inf }
 0x87a   : > { %2241 = vmax.xlane.f32.xlu0 %v2240_v57  ;;  %v4842_v17 = vpop.f32.mrb[46].mxu1  ;;  %v2234_v42 = vsel %vm385_vm1, %v4838_v6, -inf  ;;  %v4894_v57 = vld [vmem:[#allocation4 + $0xf8] sm:$0xff] }
 0x87b   : > { %v4844_v31 = vpop.f32.mrb[47].mxu1  ;;  %v2243_v18 = vsel %vm385_vm1, %v4842_v17, -inf  ;;  %5449 = vst [vmem:[#allocation35_spill] sm:$0xff] %v4894_v57 }
 0x87c   : > { %2244 = vmax.xlane.f32.xlu1 %v2243_v18  ;;  %v2237_v32 = vsel %vm385_vm1, %v4844_v31, -inf }
 0x87e   : > { %2235 = vmax.xlane.f32.xlu0 %v2234_v42 }
 0x880   : > { %2238 = vmax.xlane.f32.xlu1 %v2237_v32  ;;  %v4899_v32 = vld [vmem:[#allocation4 + $0xe0] sm:$0xff] }
 0x8ff   : > { %v2230_v55 = vpop.xlane.xlu0 %2229 }
 0x900   : > { %v4857_v2 = vmax.f32 %v4852_v43, %v2230_v55  ;;  %v2224_v33 = vpop.xlane.xlu1 %2223 }
 0x901   : > { %v4860_v36 = vmax.f32 %v4854_v9, %v2224_v33 }
 0x902   : > { %2599 = vst.msk [vmem:[#allocation4 + $0xd0] sm:$0xff] %vm528_vm3, %v4857_v2  ;;  %2290 = vperm.xlu1 %3581, %v4857_v2  }
 0x903   : > { %2597 = vst.msk [vmem:[#allocation4 + $0xc0] sm:$0xff] %vm528_vm3, %v4860_v36  ;;  %v2227_v7 = vpop.xlane.xlu0 %2226  ;;  %2280 = vperm.xlu0 %3580, %v4860_v36  }
 0x904   : > { %v4877_v13 = vmax.f32 %v4862_v21, %v2227_v7  ;;  %v2233_v49 = vpop.xlane.xlu1 %2232 }
 0x905   : > { %v4880_v52 = vmax.f32 %v4869_v27, %v2233_v49  ;;  %v4908_v49 = vld [vmem:[#allocation4 + $0xe8] sm:$0xff] }
 0x906   : > { %2598 = vst.msk [vmem:[#allocation4 + $0xc8] sm:$0xff] %vm528_vm3, %v4877_v13  ;;  %2285 = vperm.xlu1 %3581, %v4877_v13  }
 0x907   : > { %2600 = vst.msk [vmem:[#allocation4 + $0xd8] sm:$0xff] %vm528_vm3, %v4880_v52  ;;  %v2242_v11 = vpop.xlane.xlu0 %2241  ;;  %2295 = vperm.xlu0 %3580, %v4880_v52  }
 0x908   : > { %v4897_v18 = vmax.f32 %v4882_v63, %v2242_v11 }
 0x909   : > { %v2245_v42 = vpop.xlane.xlu1 %2244 }
 0x90a   : > { %2603 = vst.msk [vmem:[#allocation4 + $0xf0] sm:$0xff] %vm528_vm3, %v4897_v18  ;;  %v4906_v33 = vmax.f32 %v4894_v57, %v2245_v42  ;;  %v1354_v57 = vsel %vm385_vm1, %v5451_v46, 0.0  ;;  %v1867_v46 = vsel %vm385_vm1, %v4653_v0, 0.0 }
 0x90b   : > { %v2236_v7 = vpop.xlane.xlu0 %2235 }
 0x90c   : > { %2604 = vst.msk [vmem:[#allocation4 + $0xf8] sm:$0xff] %vm528_vm3, %v4906_v33  ;;  %v4915_v11 = vmax.f32 %v4899_v32, %v2236_v7  ;;  %v1351_v7 = vsel %vm385_vm1, %v5450_v30, 0.0  ;;  %v1861_v30 = vsel %vm385_vm1, %v4661_v50, 0.0 }
 0x90d   : > { %v2239_v40 = vpop.xlane.xlu1 %2238 }
 0x90e   : > { %v2258_v55 = vsub.f32 %v4899_v32, %v4915_v11  ;;  %2601 = vst.msk [vmem:[#allocation4 + $0xe0] sm:$0xff] %vm528_vm3, %v4915_v11  ;;  %v4922_v42 = vmax.f32 %v4908_v49, %v2239_v40  ;;  %v1858_v40 = vsel %vm385_vm1, %v4663_v28, 0.0 }
 0x910   : > { %v2259_v20 = vsub.f32 %v4908_v49, %v4922_v42  ;;  %2602 = vst.msk [vmem:[#allocation4 + $0xe8] sm:$0xff] %vm528_vm3, %v4922_v42 }
 0x926   : > { %1352 = vadd.xlane.f32.xlu0 %v1351_v7  ;;  %v1864_v7 = vsel %vm385_vm1, %v4656_v23, 0.0 }
 0x92a   : > { %1355 = vadd.xlane.f32.xlu1 %v1354_v57 }
 0x93b   : > { %2310 = vperm.xlu1 %3581, %v4897_v18  }
 0x93c   : > { %2315 = vperm.xlu0 %3580, %v4906_v33  }
 0x93f   : > { %2300 = vperm.xlu1 %3581, %v4915_v11  }
 0x940   : > { %2305 = vperm.xlu0 %3580, %v4922_v42  }
 0x95f   : > { %1859 = vadd.xlane.f32.xlu0 %v1858_v40  ;;  %v5455_v40 = vld [vmem:[#allocation20_spill] sm:$0xff] }
 0x963   : > { %1862 = vadd.xlane.f32.xlu1 %v1861_v30  ;;  %1865 = vadd.xlane.f32.xlu0 %v1864_v7  ;;  %v5457_v7 = vld [vmem:[#allocation19_spill] sm:$0xff] }
 0x967   : > { %1868 = vadd.xlane.f32.xlu1 %v1867_v46 }
 0x978   : > { %904 = vperm.xlu1 %3581, %v4693_v1  }
 0x979   : > { %899 = vperm.xlu0 %3580, %v4720_v37  }
 0x97c   : > { %909 = vperm.xlu1 %3581, %v4702_v8  }
 0x97d   : > { %914 = vperm.xlu0 %3580, %v4730_v12  }
 0x980   : > { %919 = vperm.xlu1 %3581, %v4712_v5  }
 0x981   : > { %924 = vperm.xlu0 %3580, %v4741_v38   ;;  %v2291_v50 = vpop.permute.xlu1 %2290 }
 0x982   : > { %v2320_v23 = vsub.f32 %v4820_v34, %v2291_v50  ;;  %v2281_v28 = vpop.permute.xlu0 %2280 }
 0x983   : > { %v2318_v57 = vsub.f32 %v4822_v48, %v2281_v28  ;;  %v5461_v28 = vld [vmem:[#allocation26_spill] sm:$0xff] }
 0x984   : > { %v2330_v0 = vmul.f32 1.442695, %v2320_v23  ;;  %1388 = vperm.xlu1 %3581, %v4734_v51   ;;  %v5452_v51 = vld [vmem:[#allocation25_spill] sm:$0xff]  ;;  %v5460_v23 = vld [vmem:[#allocation24_spill] sm:$0xff] }
 0x985   : > { %v2326_v1 = vmul.f32 1.442695, %v2318_v57  ;;  %1383 = vperm.xlu0 %3580, %v4760_v58   ;;  %v2286_v37 = vpop.permute.xlu1 %2285  ;;  %v5453_v58 = vld [vmem:[#allocation27_spill] sm:$0xff] }
 0x986   : > { %v2319_v8 = vsub.f32 %v4830_v26, %v2286_v37  ;;  %v2296_v12 = vpop.permute.xlu0 %2295  ;;  %3680 = vpow2.f32 %v2330_v0 }
 0x987   : > { %v2321_v5 = vsub.f32 %v4826_v47, %v2296_v12  ;;  %3682 = vpow2.f32 %v2326_v1  ;;  %v5470_v12 = vld [vmem:[#allocation42_spill] sm:$0xff] }
 0x988   : > { %v2328_v38 = vmul.f32 1.442695, %v2319_v8  ;;  %1393 = vperm.xlu1 %3581, %v4745_v16   ;;  %v5468_v8 = vld [vmem:[#allocation31_spill] sm:$0xff] }
 0x989   : > { %v2332_v34 = vmul.f32 1.442695, %v2321_v5  ;;  %1398 = vperm.xlu0 %3580, %v4766_v62  }
 0x98a   : > { %3684 = vpow2.f32 %v2328_v38 }
 0x98b   : > { %3686 = vpow2.f32 %v2332_v34  ;;  %v1323_v34 = vld [vmem:[#allocation5 + $0x70] sm:$0xff] }
 0x98c   : > { %1530 = vrot.lane.b32.xlu1 %v5452_v51, %s3881_s12 }
 0x98d   : > { %1532 = vrot.lane.b32.xlu0 %v5453_v58, %s3881_s12 }
 0x990   : > { %929 = vperm.xlu1 %3581, %v4724_v53   ;;  %v4964_v48 = vpop.eup %3680 }
 0x991   : > { %934 = vperm.xlu0 %3580, %v4752_v4   ;;  %v4966_v16 = vpop.eup %3682  ;;  %v5454_v4 = vld [vmem:[#allocation18_spill] sm:$0xff] }
 0x992   : > { %v5456_v30 = vsub.f32 %v5454_v4, %v5455_v40  ;;  %v1324_v4 = vld [vmem:[#allocation5 + $0x78] sm:$0xff] }
 0x994   : > { %v4968_v47 = vpop.eup %3684  ;;  %1896 = vperm.xlu1 %3581, %v4793_v14   ;;  %v1248_v14 = vmul.f32 1.442695, %v5456_v30 }
 0x995   : > { %v4971_v62 = vpop.eup %3686  ;;  %1901 = vperm.xlu0 %3580, %v4796_v15   ;;  %v2455_v26 = vpack.c.bf16 %v4968_v47, %v4966_v16  ;;  %v5458_v15 = vld [vmem:[#allocation21_spill] sm:$0xff] }
 0x996   : > { %v2456_v53 = vpack.c.bf16 %v4971_v62, %v4964_v48  ;;  %v5459_v46 = vsub.f32 %v5457_v7, %v5458_v15  ;;  %3688 = vpow2.f32 %v1248_v14  ;;  %v5472_v15 = vld [vmem:[#allocation28_spill] sm:$0xff] }
 0x997   : > { %3470 = vmatprep.mubr.msk.bf16.mxu0 %vm385_vm1, %v2455_v26  ;;  %v2609_v26 = vld [vmem:[#allocation5 + $0x8] sm:$0xff] }
 0x998   : > { %1403 = vperm.xlu1 %3581, %v4756_v59   ;;  %3471 = vmatmul.mubr.msk.bf16.vlgmr.msra.gmra.mrb[24].mxu0 %vm385_vm1, %v2456_v53  ;;  %v1250_v50 = vmul.f32 1.442695, %v5459_v46  ;;  %v5462_v59 = vsub.f32 %v4563_v44, %v4573_v39  ;;  %v5465_v39 = vld [vmem:[#allocation29_spill] sm:$0xff]  ;;  %v5473_v46 = vld [vmem:[#allocation30_spill] sm:$0xff] }
 0x999   : > { %1408 = vperm.xlu0 %3580, %v4771_v35   ;;  %v5463_v35 = vld [vmem:[#allocation39_spill] sm:$0xff]  ;;  %v5466_v44 = vld [vmem:[#allocation41_spill] sm:$0xff] }
 0x99a   : > { %3690 = vpow2.f32 %v1250_v50  ;;  %v1757_v57 = vmul.f32 1.442695, %v5462_v59  ;;  %v5464_v0 = vsub.f32 %v5463_v35, %v4576_v61  ;;  %v5467_v61 = vsub.f32 %v4578_v41, %v5466_v44  ;;  %v2608_v41 = vld [vmem:[#allocation5] sm:$0xff]  ;;  %v2610_v50 = vld [vmem:[#allocation5 + $0x10] sm:$0xff] }
 0x99c   : > { %1534 = vrot.lane.b32.xlu1 %v5460_v23, %s3881_s12  ;;  %v1759_v1 = vmul.f32 1.442695, %v5464_v0  ;;  %3692 = vpow2.f32 %v1757_v57  ;;  %v2611_v23 = vld [vmem:[#allocation5 + $0x18] sm:$0xff] }
 0x99d   : > { %1536 = vrot.lane.b32.xlu0 %v5461_v28, %s3881_s12 }
 0x99e   : > { %3694 = vpow2.f32 %v1759_v1 }
 0x9a0   : > { %1906 = vperm.xlu1 %3581, %v4790_v25   ;;  %v3689_v25 = vpop.eup %3688 }
 0x9a1   : > { %1911 = vperm.xlu0 %3580, %v4788_v22   ;;  %v1761_v22 = vmul.f32 1.442695, %v5467_v61  ;;  %v1331_v58 = vmul.f32 %v3689_v25, %v1323_v34  ;;  %v2688_v61 = vld [vmem:[#allocation5 + $0x40] sm:$0xff] }
 0x9a3   : > { %3696 = vpow2.f32 %v1761_v22 }
 0x9a4   : > { %2043 = vrot.lane.b32.xlu1 %v4806_v24, %s3882_s13  ;;  %v3691_v37 = vpop.eup %3690  ;;  %v5469_v24 = vld [vmem:[#allocation40_spill] sm:$0xff] }
 0x9a5   : > { %2045 = vrot.lane.b32.xlu0 %v4810_v60, %s3882_s13  ;;  %v5471_v5 = vsub.f32 %v5469_v24, %v5470_v12  ;;  %v1332_v30 = vmul.f32 %v3691_v37, %v1324_v4  ;;  %v1835_v4 = vld [vmem:[#allocation5 + $0xa8] sm:$0xff] }
 0x9a6   : > { %v5014_v60 = vpop.eup %3692 }
 0x9a7   : > { %v1763_v38 = vmul.f32 1.442695, %v5471_v5  ;;  %v5475_v5 = vsub.f32 %v4852_v43, %v4857_v2 }
 0x9a8   : > { %1413 = vperm.xlu1 %3581, %v3689_v25   ;;  %v5016_v51 = vpop.eup %3694 }
 0x9a9   : > { %1418 = vperm.xlu0 %3580, %v3691_v37   ;;  %3698 = vpow2.f32 %v1763_v38 }
 0x9aa   : > { %3700 = vrcp.f32 %v2608_v41  ;;  %v1834_v41 = vld [vmem:[#allocation5 + $0xa0] sm:$0xff] }
 0x9ab   : > { %3702 = vrcp.f32 %v2609_v26 }
 0x9ac   : > { %1538 = vrot.lane.b32.xlu1 %v5465_v39, %s3881_s12  ;;  %3704 = vrcp.f32 %v2610_v50 }
 0x9ad   : > { %1540 = vrot.lane.b32.xlu0 %v5468_v8, %s3881_s12  ;;  %3706 = vrcp.f32 %v2611_v23 }
 0x9b0   : > { %1916 = vperm.xlu1 %3581, %v5014_v60  }
 0x9b1   : > { %1921 = vperm.xlu0 %3580, %v5016_v51  }
 0x9b3   : > { %v1353_v53 = vpop.xlane.xlu0 %1352 }
 0x9b4   : > { %v1363_v40 = vadd.f32 %v1353_v53, %v1331_v58  ;;  %2047 = vrot.lane.b32.xlu1 %v4804_v29, %s3882_s13  ;;  %v5030_v29 = vpop.eup %3696  ;;  %v1842_v58 = vmul.f32 %v5014_v60, %v1834_v41  ;;  %v1836_v53 = vld [vmem:[#allocation5 + $0xb0] sm:$0xff]  ;;  %v2362_v41 = vsel %vm385_vm1, %v4968_v47, 0.0 }
 0x9b5   : > { %2049 = vrot.lane.b32.xlu0 %v4808_v10, %s3882_s13  ;;  %v5032_v59 = vpop.eup %3698 }
 0x9b6   : > { %1371 = vst.msk [vmem:[#allocation5 + $0x70] sm:$0xff] %vm528_vm3, %v1363_v40  ;;  %v3701_v25 = vpop.eup %3700 }
 0x9b7   : > { %v1356_v14 = vpop.xlane.xlu1 %1355  ;;  %v3703_v44 = vpop.eup %3702 }
 0x9b8   : > { %v1364_v7 = vadd.f32 %v1356_v14, %v1332_v30  ;;  %1542 = vrot.lane.b32.xlu1 %v5472_v15, %s3881_s12  ;;  %v1844_v30 = vmul.f32 %v5030_v29, %v1836_v53  ;;  %v1843_v14 = vmul.f32 %v5016_v51, %v1835_v4  ;;  %v2365_v51 = vsel %vm385_vm1, %v4964_v48, 0.0 }
 0x9b9   : > { %1544 = vrot.lane.b32.xlu0 %v5473_v46, %s3881_s12  ;;  %v1837_v46 = vld [vmem:[#allocation5 + $0xb8] sm:$0xff]  ;;  %v5484_v53 = vsub.f32 %v4882_v63, %v4897_v18  ;;  %s236_s12 = sand.u32 1, %s3853_s19  }
 0x9ba   : > { %1372 = vst.msk [vmem:[#allocation5 + $0x78] sm:$0xff] %vm528_vm3, %v1364_v7  ;;  %v1845_v60 = vmul.f32 %v5032_v59, %v1837_v46  ;;  %s5319_s21 = scalar_lea.sflag [#allocation8], %s236_s12 }
 0x9bb   : > { %v2316_v28 = vpop.permute.xlu0 %2315  ;;  %v2311_v10 = vpop.permute.xlu1 %2310  ;;  %v2274_v4 = vmul.f32 1.442695, %v5484_v53 }
 0x9bc   : > { %v2325_v57 = vsub.f32 %v4842_v17, %v2316_v28  ;;  %v2324_v35 = vsub.f32 %v4836_v3, %v2311_v10  ;;  %1926 = vperm.xlu1 %3581, %v5030_v29   ;;  %v5474_v3 = vsub.f32 %v4869_v27, %v4880_v52  ;;  %v3705_v52 = vpop.eup %3704 }
 0x9bd   : > { %1931 = vperm.xlu0 %3580, %v5032_v59   ;;  %v3707_v38 = vpop.eup %3706 }
 0x9be   : > { %v2340_v0 = vmul.f32 1.442695, %v2325_v57  ;;  %v2338_v1 = vmul.f32 1.442695, %v2324_v35  ;;  %v2268_v8 = vmul.f32 1.442695, %v5474_v3 }
 0x9bf   : > { %v2306_v37 = vpop.permute.xlu0 %2305  ;;  %v2301_v39 = vpop.permute.xlu1 %2300  ;;  %v889_v57 = vld [vmem:[#allocation6] sm:$0xff]  ;;  %v890_v35 = vld [vmem:[#allocation6 + $0x8] sm:$0xff] }
 0x9c0   : > { %3708 = vpow2.f32 %v2340_v0  ;;  %v2323_v22 = vsub.f32 %v4844_v31, %v2306_v37  ;;  %v2322_v17 = vsub.f32 %v4838_v6, %v2301_v39  ;;  %2634 = vperm.xlu1 %3581, %v3701_v25   ;;  %v2266_v31 = vmul.f32 1.442695, %v5475_v5  ;;  %v892_v37 = vld [vmem:[#allocation6 + $0x18] sm:$0xff]  ;;  %v891_v39 = vld [vmem:[#allocation6 + $0x10] sm:$0xff]  ;;  %v893_v5 = vld [vmem:[#allocation6 + $0x20] sm:$0xff] }
 0x9c1   : > { %3710 = vpow2.f32 %v2338_v1  ;;  %2639 = vperm.xlu0 %3580, %v3703_v44   ;;  %v5476_v6 = vsub.f32 %v4862_v21, %v4877_v13  ;;  %v5478_v44 = vld [vmem:[#allocation11_spill] sm:$0xff] }
 0x9c2   : > { %v2336_v24 = vmul.f32 1.442695, %v2323_v22  ;;  %v2334_v12 = vmul.f32 1.442695, %v2322_v17  ;;  %3712 = vrcp.f32 %v2688_v61  ;;  %v5479_v22 = vld [vmem:[#allocation13_spill] sm:$0xff]  ;;  %v2359_v17 = vsel %vm385_vm1, %v4966_v16, 0.0 }
 0x9c3   : > { %v2264_v27 = vmul.f32 1.442695, %v5476_v6 }
 0x9c4   : > { %3714 = vpow2.f32 %v2336_v24  ;;  %2051 = vrot.lane.b32.xlu1 %v4814_v19, %s3882_s13  ;;  %v5477_v19 = vsub.f32 %v4854_v9, %v4860_v36  ;;  %v2270_v9 = vmul.f32 1.442695, %v2258_v55 }
 0x9c5   : > { %3716 = vpow2.f32 %v2334_v12  ;;  %2053 = vrot.lane.b32.xlu0 %v4818_v56, %s3882_s13  ;;  %v2272_v56 = vmul.f32 1.442695, %v2259_v20  ;;  %v894_v12 = vld [vmem:[#allocation6 + $0x28] sm:$0xff] }
 0x9c6   : > { %3718 = vpow2.f32 %v2268_v8  ;;  %v2262_v34 = vmul.f32 1.442695, %v5477_v19 }
 0x9c7   : > { %3720 = vpow2.f32 %v2266_v31  ;;  %v5480_v31 = vld [vmem:[#allocation12_spill] sm:$0xff] }
 0x9c8   : > { %2644 = vperm.xlu1 %3581, %v3705_v52   ;;  %3722 = vpow2.f32 %v2264_v27  ;;  %v5481_v27 = vld [vmem:[#allocation10_spill] sm:$0xff] }
 0x9c9   : > { %2649 = vperm.xlu0 %3580, %v3707_v38   ;;  %3724 = vpow2.f32 %v2262_v34  ;;  %v2368_v38 = vsel %vm385_vm1, %v4971_v62, 0.0 }
 0x9ca   : > { %v5056_v43 = vpop.eup %3708  ;;  %3726 = vpow2.f32 %v2272_v56 }
 0x9cb   : > { %v5061_v2 = vpop.eup %3710  ;;  %3728 = vpow2.f32 %v2270_v9  ;;  %v5483_v9 = vld [vmem:[#allocation15_spill] sm:$0xff] }
 0x9cc   : > { %2055 = vrot.lane.b32.xlu1 %v4812_v54, %s3882_s13  ;;  %v2458_v21 = vpack.c.bf16 %v5056_v43, %v5061_v2  ;;  %v3713_v13 = vpop.eup %3712 }
 0x9cd   : > { %2057 = vrot.lane.b32.xlu0 %v4816_v45, %s3882_s13  ;;  %s3170_s13 = sshll.u32 %s236_s12, 4 }
 0x9ce   : > { %v5072_v36 = vpop.eup %3714 }
 0x9cf   : > { %v5074_v20 = vpop.eup %3716 }
 0x9d0   : > { %v5076_v49 = vpop.eup %3718  ;;  %2714 = vperm.xlu1 %3581, %v3713_v13   ;;  %v2457_v54 = vpack.c.bf16 %v5072_v36, %v5074_v20 }
 0x9d1   : > { %2424 = vperm.xlu0 %3580, %v5076_v49   ;;  %v5082_v32 = vpop.eup %3720 }
 0x9d2   : > { %3474 = vmatprep.mubr.msk.bf16.mxu0 %vm385_vm1, %v2457_v54  ;;  %v5085_v45 = vpop.eup %3722 }
 0x9d3   : > { %3475 = vmatmul.mubr.msk.bf16.gmra.mrb[28].mxu0 %vm385_vm1, %v2458_v21  ;;  %v5089_v55 = vpop.eup %3724  ;;  %v5482_v21 = vld [vmem:[#allocation17_spill] sm:$0xff] }
 0x9d4   : > { %2419 = vperm.xlu1 %3581, %v5082_v32   ;;  %v5091_v11 = vpop.eup %3726 }
 0x9d5   : > { %2414 = vperm.xlu0 %3580, %v5085_v45   ;;  %v5095_v42 = vpop.eup %3728 }
 0x9d8   : > { %2409 = vperm.xlu1 %3581, %v5089_v55  }
 0x9d9   : > { %2434 = vperm.xlu0 %3580, %v5091_v11  }
 0x9dc   : > { %2429 = vperm.xlu1 %3581, %v5095_v42  }
 0x9ec   : > { %v1860_v26 = vpop.xlane.xlu0 %1859 }
 0x9ed   : > { %v1874_v40 = vadd.f32 %v1860_v26, %v1842_v58  ;;  %v2689_v58 = vld [vmem:[#allocation5 + $0x48] sm:$0xff] }
 0x9ee   : > { %3730 = vrcp.f32 %v2689_v58 }
 0x9ef   : > { %1882 = vst.msk [vmem:[#allocation5 + $0xa0] sm:$0xff] %vm528_vm3, %v1874_v40  ;;  %3732 = vpow2.f32 %v2274_v4 }
 0x9f0   : > { %v1866_v7 = vpop.xlane.xlu0 %1865  ;;  %v1863_v15 = vpop.xlane.xlu1 %1862 }
 0x9f1   : > { %v1876_v50 = vadd.f32 %v1866_v7, %v1844_v30  ;;  %v1875_v23 = vadd.f32 %v1863_v15, %v1843_v14 }
 0x9f3   : > { %1884 = vst.msk [vmem:[#allocation5 + $0xb0] sm:$0xff] %vm528_vm3, %v1876_v50  ;;  %1883 = vst.msk [vmem:[#allocation5 + $0xa8] sm:$0xff] %vm528_vm3, %v1875_v23 }
 0x9f4   : > { %v1869_v28 = vpop.xlane.xlu1 %1868 }
 0x9f5   : > { %v1877_v10 = vadd.f32 %v1869_v28, %v1845_v60  ;;  %v896_v28 = vld [vmem:[#allocation6 + $0x38] sm:$0xff] }
 0x9f7   : > { %1885 = vst.msk [vmem:[#allocation5 + $0xb8] sm:$0xff] %vm528_vm3, %v1877_v10  ;;  %v895_v10 = vld [vmem:[#allocation6 + $0x30] sm:$0xff] }
 0x9f8   : > { %v900_v29 = vpop.permute.xlu0 %899  ;;  %2366 = vadd.xlane.f32.xlu0 %v2365_v51  ;;  %v905_v0 = vpop.permute.xlu1 %904 }
 0x9f9   : > { %v937_v1 = vmul.f32 %v900_v29, %v889_v57  ;;  %v938_v25 = vmul.f32 %v905_v0, %v890_v35  ;;  %v3731_v57 = vpop.eup %3730  ;;  %v5485_v29 = vld [vmem:[#allocation16_spill] sm:$0xff] }
 0x9fb   : > { %v1042_v61 = vadd.f32 %v5478_v44, %v937_v1  ;;  %v1043_v59 = vadd.f32 %v5479_v22, %v938_v25  ;;  %v5486_v1 = vld [vmem:[#allocation14_spill] sm:$0xff] }
 0x9fc   : > { %v915_v3 = vpop.permute.xlu0 %914  ;;  %2360 = vadd.xlane.f32.xlu0 %v2359_v17  ;;  %v910_v8 = vpop.permute.xlu1 %909 }
 0x9fd   : > { %1050 = vst.msk [vmem:[#allocation6] sm:$0xff] %vm613_vm2, %v1042_v61  ;;  %1051 = vst.msk [vmem:[#allocation6 + $0x8] sm:$0xff] %vm613_vm2, %v1043_v59  ;;  %v940_v48 = vmul.f32 %v915_v3, %v892_v37  ;;  %v939_v24 = vmul.f32 %v910_v8, %v891_v39  ;;  %v5133_v37 = vpop.eup %3732 }
 0x9ff   : > { %v1045_v6 = vadd.f32 %v5480_v31, %v940_v48  ;;  %v1044_v52 = vadd.f32 %v5481_v27, %v939_v24 }
 0xa00   : > { %2369 = vadd.xlane.f32.xlu1 %v2368_v38  ;;  %v925_v16 = vpop.permute.xlu0 %924  ;;  %v920_v19 = vpop.permute.xlu1 %919 }
 0xa01   : > { %1053 = vst.msk [vmem:[#allocation6 + $0x18] sm:$0xff] %vm613_vm2, %v1045_v6  ;;  %1052 = vst.msk [vmem:[#allocation6 + $0x10] sm:$0xff] %vm613_vm2, %v1044_v52  ;;  %v942_v34 = vmul.f32 %v925_v16, %v894_v12  ;;  %v941_v56 = vmul.f32 %v920_v19, %v893_v5 }
 0xa03   : > { %v1047_v13 = vadd.f32 %v5482_v21, %v942_v34  ;;  %v1046_v54 = vadd.f32 %v5483_v9, %v941_v56 }
 0xa04   : > { %v1384_v26 = vpop.permute.xlu0 %1383  ;;  %2363 = vadd.xlane.f32.xlu1 %v2362_v41  ;;  %v1389_v62 = vpop.permute.xlu1 %1388  ;;  %v1373_v40 = vld [vmem:[#allocation6] sm:$0xff]  ;;  %v1374_v30 = vld [vmem:[#allocation6 + $0x8] sm:$0xff] }
 0xa05   : > { %1055 = vst.msk [vmem:[#allocation6 + $0x28] sm:$0xff] %vm613_vm2, %v1047_v13  ;;  %1054 = vst.msk [vmem:[#allocation6 + $0x20] sm:$0xff] %vm613_vm2, %v1046_v54  ;;  %v1421_v15 = vmul.f32 %v1384_v26, %v1373_v40  ;;  %v1422_v47 = vmul.f32 %v1389_v62, %v1374_v30 }
 0xa08   : > { %v1399_v14 = vpop.permute.xlu0 %1398  ;;  %v1394_v7 = vpop.permute.xlu1 %1393  ;;  %v1376_v61 = vld [vmem:[#allocation6 + $0x18] sm:$0xff]  ;;  %v1375_v22 = vld [vmem:[#allocation6 + $0x10] sm:$0xff] }
 0xa09   : > { %v1424_v3 = vmul.f32 %v1399_v14, %v1376_v61  ;;  %v1423_v8 = vmul.f32 %v1394_v7, %v1375_v22 }
 0xa0c   : > { %v1533_v46 = vpop.permute.xlu0 %1532  ;;  %v1531_v50 = vpop.permute.xlu1 %1530  ;;  %v1378_v54 = vld [vmem:[#allocation6 + $0x28] sm:$0xff]  ;;  %v1377_v41 = vld [vmem:[#allocation6 + $0x20] sm:$0xff] }
 0xa0d   : > { %v1555_v23 = vadd.f32 %v1533_v46, %v1422_v47  ;;  %v1554_v60 = vadd.f32 %v1531_v50, %v1421_v15  ;;  %v2377_v47 = vsel %vm385_vm1, %v5061_v2, 0.0 }
 0xa0f   : > { %1564 = vst.msk [vmem:[#allocation6 + $0x8] sm:$0xff] %vm1562_vm4, %v1555_v23  ;;  %1563 = vst.msk [vmem:[#allocation6] sm:$0xff] %vm1562_vm4, %v1554_v60 }
 0xa10   : > { %v935_v63 = vpop.permute.xlu0 %934  ;;  %v930_v18 = vpop.permute.xlu1 %929 }
 0xa11   : > { %v944_v35 = vmul.f32 %v935_v63, %v896_v28  ;;  %v943_v51 = vmul.f32 %v930_v18, %v895_v10  ;;  %v2371_v28 = vsel %vm385_vm1, %v5074_v20, 0.0  ;;  %v5487_v20 = vld [vmem:[#allocation35_spill] sm:$0xff] }
 0xa12   : > { %2719 = vperm.xlu0 %3580, %v3731_v57  }
 0xa13   : > { %v1049_v0 = vadd.f32 %v5485_v29, %v944_v35  ;;  %v1048_v25 = vadd.f32 %v5486_v1, %v943_v51 }
 0xa14   : > { %v1902_v39 = vpop.permute.xlu0 %1901  ;;  %v1897_v44 = vpop.permute.xlu1 %1896 }
 0xa15   : > { %1057 = vst.msk [vmem:[#allocation6 + $0x38] sm:$0xff] %vm613_vm2, %v1049_v0  ;;  %1056 = vst.msk [vmem:[#allocation6 + $0x30] sm:$0xff] %vm613_vm2, %v1048_v25  ;;  %2439 = vperm.xlu1 %3581, %v5133_v37   ;;  %v2380_v0 = vsel %vm385_vm1, %v5056_v43, 0.0 }
 0xa16   : > { %v1887_v31 = vld [vmem:[#allocation6 + $0x8] sm:$0xff]  ;;  %v1886_v6 = vld [vmem:[#allocation6] sm:$0xff] }
 0xa17   : > { %v1935_v38 = vmul.f32 %v1902_v39, %v1887_v31  ;;  %v1934_v16 = vmul.f32 %v1897_v44, %v1886_v6  ;;  %v5488_v39 = vsub.f32 %v5487_v20, %v4906_v33  ;;  %v2346_v20 = vld [vmem:[#allocation5 + $0xd8] sm:$0xff] }
 0xa18   : > { %v1409_v59 = vpop.permute.xlu0 %1408  ;;  %v1404_v17 = vpop.permute.xlu1 %1403 }
 0xa19   : > { %v1426_v58 = vmul.f32 %v1409_v59, %v1378_v54  ;;  %v1425_v26 = vmul.f32 %v1404_v17, %v1377_v41  ;;  %v2276_v44 = vmul.f32 1.442695, %v5488_v39  ;;  %v2374_v59 = vsel %vm385_vm1, %v5072_v36, 0.0  ;;  %v2612_v17 = vld [vmem:[#allocation5 + $0x20] sm:$0xff] }
 0xa1b   : > { %3734 = vpow2.f32 %v2276_v44  ;;  %v2354_v44 = vmul.f32 %v5076_v49, %v2346_v20 }
 0xa1c   : > { %v1537_v48 = vpop.permute.xlu0 %1536  ;;  %v1535_v24 = vpop.permute.xlu1 %1534  ;;  %v1380_v18 = vld [vmem:[#allocation6 + $0x38] sm:$0xff]  ;;  %v1379_v57 = vld [vmem:[#allocation6 + $0x30] sm:$0xff]  ;;  %3736 = vrcp.f32 %v2612_v17 }
 0xa1d   : > { %v1557_v12 = vadd.f32 %v1537_v48, %v1424_v3  ;;  %v1556_v5 = vadd.f32 %v1535_v24, %v1423_v8  ;;  %v2613_v24 = vld [vmem:[#allocation5 + $0x28] sm:$0xff] }
 0xa1e   : > { %3738 = vrcp.f32 %v2613_v24  ;;  %v2692_v24 = vld [vmem:[#allocation5 + $0x60] sm:$0xff] }
 0xa1f   : > { %1566 = vst.msk [vmem:[#allocation6 + $0x18] sm:$0xff] %vm1562_vm4, %v1557_v12  ;;  %1565 = vst.msk [vmem:[#allocation6 + $0x10] sm:$0xff] %vm1562_vm4, %v1556_v5 }
 0xa20   : > { %v1912_v27 = vpop.permute.xlu0 %1911  ;;  %v1907_v52 = vpop.permute.xlu1 %1906 }
 0xa24   : > { %v2046_v19 = vpop.permute.xlu0 %2045  ;;  %v2044_v34 = vpop.permute.xlu1 %2043 }
 0xa25   : > { %v2068_v56 = vadd.f32 %v2046_v19, %v1935_v38  ;;  %v2067_v21 = vadd.f32 %v2044_v34, %v1934_v16  ;;  %v5169_v19 = vpop.eup %3734 }
 0xa26   : > { %v1889_v30 = vld [vmem:[#allocation6 + $0x18] sm:$0xff]  ;;  %v1888_v14 = vld [vmem:[#allocation6 + $0x10] sm:$0xff] }
 0xa27   : > { %2077 = vst.msk [vmem:[#allocation6 + $0x8] sm:$0xff] %vm2075_vm5, %v2068_v56  ;;  %2076 = vst.msk [vmem:[#allocation6] sm:$0xff] %vm2075_vm5, %v2067_v21  ;;  %v1937_v46 = vmul.f32 %v1912_v27, %v1889_v30  ;;  %v1936_v50 = vmul.f32 %v1907_v52, %v1888_v14 }
 0xa28   : > { %v1419_v13 = vpop.permute.xlu0 %1418  ;;  %v1414_v9 = vpop.permute.xlu1 %1413 }
 0xa29   : > { %v1428_v35 = vmul.f32 %v1419_v13, %v1380_v18  ;;  %v1427_v51 = vmul.f32 %v1414_v9, %v1379_v57  ;;  %v3737_v9 = vpop.eup %3736  ;;  %v2345_v18 = vld [vmem:[#allocation5 + $0xd0] sm:$0xff] }
 0xa2c   : > { %v1541_v62 = vpop.permute.xlu0 %1540  ;;  %v1539_v53 = vpop.permute.xlu1 %1538 }
 0xa2d   : > { %v1559_v4 = vadd.f32 %v1541_v62, %v1426_v58  ;;  %v1558_v40 = vadd.f32 %v1539_v53, %v1425_v26  ;;  %v3739_v58 = vpop.eup %3738  ;;  %v2690_v26 = vld [vmem:[#allocation5 + $0x50] sm:$0xff]  ;;  %v2691_v62 = vld [vmem:[#allocation5 + $0x58] sm:$0xff]  ;;  %v2768_v53 = vld [vmem:[#allocation5 + $0x80] sm:$0xff] }
 0xa2e   : > { %3740 = vrcp.f32 %v2690_v26 }
 0xa2f   : > { %1568 = vst.msk [vmem:[#allocation6 + $0x28] sm:$0xff] %vm1562_vm4, %v1559_v4  ;;  %1567 = vst.msk [vmem:[#allocation6 + $0x20] sm:$0xff] %vm1562_vm4, %v1558_v40  ;;  %3742 = vrcp.f32 %v2691_v62  ;;  %v2769_v40 = vld [vmem:[#allocation5 + $0x88] sm:$0xff] }
 0xa30   : > { %v1922_v7 = vpop.permute.xlu0 %1921  ;;  %v1917_v15 = vpop.permute.xlu1 %1916  ;;  %3744 = vrcp.f32 %v2768_v53 }
 0xa31   : > { %2378 = vadd.xlane.f32.xlu0 %v2377_v47  ;;  %3746 = vrcp.f32 %v2769_v40  ;;  %v2349_v40 = vld [vmem:[#allocation5 + $0xf0] sm:$0xff] }
 0xa34   : > { %v2050_v23 = vpop.permute.xlu0 %2049  ;;  %v2048_v60 = vpop.permute.xlu1 %2047 }
 0xa35   : > { %v2070_v10 = vadd.f32 %v2050_v23, %v1937_v46  ;;  %v2069_v63 = vadd.f32 %v2048_v60, %v1936_v50  ;;  %2372 = vadd.xlane.f32.xlu0 %v2371_v28 }
 0xa36   : > { %v1891_v43 = vld [vmem:[#allocation6 + $0x28] sm:$0xff]  ;;  %v1890_v3 = vld [vmem:[#allocation6 + $0x20] sm:$0xff] }
 0xa37   : > { %2079 = vst.msk [vmem:[#allocation6 + $0x18] sm:$0xff] %vm2075_vm5, %v2070_v10  ;;  %2078 = vst.msk [vmem:[#allocation6 + $0x10] sm:$0xff] %vm2075_vm5, %v2069_v63  ;;  %v1939_v12 = vmul.f32 %v1922_v7, %v1891_v43  ;;  %v1938_v5 = vmul.f32 %v1917_v15, %v1890_v3  ;;  %v2615_v3 = vld [vmem:[#allocation5 + $0x38] sm:$0xff] }
 0xa38   : > { %v1545_v2 = vpop.permute.xlu0 %1544  ;;  %v1543_v29 = vpop.permute.xlu1 %1542 }
 0xa39   : > { %v1561_v1 = vadd.f32 %v1545_v2, %v1428_v35  ;;  %v1560_v25 = vadd.f32 %v1543_v29, %v1427_v51  ;;  %2381 = vadd.xlane.f32.xlu1 %v2380_v0  ;;  %v3741_v15 = vpop.eup %3740  ;;  %v2353_v35 = vmul.f32 %v5082_v32, %v2345_v18  ;;  %v2343_v2 = vld [vmem:[#allocation5 + $0xc0] sm:$0xff]  ;;  %v2775_v18 = vld [vmem:[#allocation5 + $0xb8] sm:$0xff] }
 0xa3a   : > { %v3743_v47 = vpop.eup %3742  ;;  %v2351_v0 = vmul.f32 %v5089_v55, %v2343_v2  ;;  %v2614_v55 = vld [vmem:[#allocation5 + $0x30] sm:$0xff] }
 0xa3b   : > { %1570 = vst.msk [vmem:[#allocation6 + $0x38] sm:$0xff] %vm1562_vm4, %v1561_v1  ;;  %1569 = vst.msk [vmem:[#allocation6 + $0x30] sm:$0xff] %vm1562_vm4, %v1560_v25  ;;  %v3745_v50 = vpop.eup %3744  ;;  %3748 = vrcp.f32 %v2614_v55 }
 0xa3c   : > { %v1932_v61 = vpop.permute.xlu0 %1931  ;;  %v1927_v22 = vpop.permute.xlu1 %1926  ;;  %3750 = vrcp.f32 %v2615_v3 }
 0xa3d   : > { %2375 = vadd.xlane.f32.xlu1 %v2374_v59  ;;  %v3747_v60 = vpop.eup %3746  ;;  %3752 = vrcp.f32 %v2692_v24 }
 0xa40   : > { %v5159_v8 = vpop.permute.xlu0 %2639  ;;  %v5161_v48 = vpop.permute.xlu1 %2634 }
 0xa42   : > { %v1893_v36 = vld [vmem:[#allocation6 + $0x38] sm:$0xff]  ;;  %v1892_v52 = vld [vmem:[#allocation6 + $0x30] sm:$0xff] }
 0xa43   : > { %v1941_v34 = vmul.f32 %v1932_v61, %v1893_v36  ;;  %v1940_v56 = vmul.f32 %v1927_v22, %v1892_v52  ;;  %v2344_v22 = vld [vmem:[#allocation5 + $0xc8] sm:$0xff] }
 0xa44   : > { %v2054_v33 = vpop.permute.xlu0 %2053  ;;  %v2052_v31 = vpop.permute.xlu1 %2051  ;;  %v2352_v32 = vmul.f32 %v5085_v45, %v2344_v22  ;;  %v2771_v45 = vld [vmem:[#allocation5 + $0x98] sm:$0xff] }
 0xa45   : > { %v2072_v6 = vadd.f32 %v2054_v33, %v1939_v12  ;;  %v2071_v27 = vadd.f32 %v2052_v31, %v1938_v5  ;;  %v2693_v5 = vld [vmem:[#allocation5 + $0x68] sm:$0xff]  ;;  %v2770_v31 = vld [vmem:[#allocation5 + $0x90] sm:$0xff]  ;;  %v3749_v36 = vpop.eup %3748 }
 0xa46   : > { %3754 = vrcp.f32 %v2693_v5 }
 0xa47   : > { %2081 = vst.msk [vmem:[#allocation6 + $0x28] sm:$0xff] %vm2075_vm5, %v2072_v6  ;;  %2080 = vst.msk [vmem:[#allocation6 + $0x20] sm:$0xff] %vm2075_vm5, %v2071_v27  ;;  %3756 = vrcp.f32 %v2770_v31 }
 0xa48   : > { %v5165_v38 = vpop.permute.xlu0 %2649  ;;  %v5167_v16 = vpop.permute.xlu1 %2644  ;;  %3758 = vrcp.f32 %v2771_v45  ;;  %v2401_v45 = vld [vmem:[#allocation6 + $0x10] sm:$0xff] }
 0xa4b   : > { %2444 = vperm.xlu0 %3580, %v5169_v19  }
 0xa4c   : > { %v2058_v21 = vpop.permute.xlu0 %2057  ;;  %v2056_v13 = vpop.permute.xlu1 %2055 }
 0xa4d   : > { %v2074_v54 = vadd.f32 %v2058_v21, %v1941_v34  ;;  %v2073_v41 = vadd.f32 %v2056_v13, %v1940_v56  ;;  %v3751_v34 = vpop.eup %3750  ;;  %v2694_v56 = vld [vmem:[#allocation5 + $0x70] sm:$0xff]  ;;  %v2695_v13 = vld [vmem:[#allocation5 + $0x78] sm:$0xff] }
 0xa4e   : > { %2654 = vperm.xlu1 %3581, %v3737_v9   ;;  %v3753_v21 = vpop.eup %3752 }
 0xa4f   : > { %2083 = vst.msk [vmem:[#allocation6 + $0x38] sm:$0xff] %vm2075_vm5, %v2074_v54  ;;  %2082 = vst.msk [vmem:[#allocation6 + $0x30] sm:$0xff] %vm2075_vm5, %v2073_v41  ;;  %2659 = vperm.xlu0 %3580, %v3739_v58   ;;  %v2772_v54 = vld [vmem:[#allocation5 + $0xa0] sm:$0xff]  ;;  %v2773_v58 = vld [vmem:[#allocation5 + $0xa8] sm:$0xff] }
 0xa50   : > { %v5178_v46 = vpop.permute.xlu0 %2424  ;;  %v5180_v23 = vpop.permute.xlu1 %2714 }
 0xa51   : > { %v3755_v9 = vpop.eup %3754 }
 0xa52   : > { %v3757_v41 = vpop.eup %3756 }
 0xa53   : > { %v3759_v26 = vpop.eup %3758 }
 0xa54   : > { %v5182_v28 = vpop.permute.xlu0 %2414  ;;  %v5184_v10 = vpop.permute.xlu1 %2419 }
 0xa58   : > { %v5186_v63 = vpop.permute.xlu0 %2434  ;;  %v5188_v57 = vpop.permute.xlu1 %2409 }
 0xa5c   : > { %v5193_v1 = vpop.permute.xlu1 %2429 }
 0xa6b   : > { %v3472_v4 = vpop.f32.mrb[24].mxu0 }
 0xa6c   : > { %v2517_v30 = vpop.f32.mrb[25].mxu0  ;;  %2560 = vrot.lane.b32.xlu1 %v3472_v4, %s3883_s14 }
 0xa6d   : > { %v3473_v14 = vpop.f32.mrb[26].mxu0 }
 0xa6e   : > { %v2520_v7 = vpop.f32.mrb[27].mxu0  ;;  %2562 = vrot.lane.b32.xlu0 %v3473_v14, %s3883_s14 }
 0xa70   : > { %2556 = vrot.lane.b32.xlu1 %v2517_v30, %s3883_s14 }
 0xa72   : > { %2558 = vrot.lane.b32.xlu0 %v2520_v7, %s3883_s14  ;;  %v2774_v7 = vld [vmem:[#allocation5 + $0xb0] sm:$0xff] }
 0xa74   : > { %2724 = vperm.xlu1 %3581, %v3741_v15   ;;  %v2357_v15 = vmul.f32 %v5133_v37, %v2349_v40  ;;  %v2350_v37 = vld [vmem:[#allocation5 + $0xf8] sm:$0xff] }
 0xa76   : > { %2729 = vperm.xlu0 %3580, %v3743_v47  }
 0xa78   : > { %2794 = vperm.xlu1 %3581, %v3745_v50  }
 0xa7a   : > { %2799 = vperm.xlu0 %3580, %v3747_v60   ;;  %v2347_v60 = vld [vmem:[#allocation5 + $0xe0] sm:$0xff] }
 0xa7b   : > { %v2355_v2 = vmul.f32 %v5095_v42, %v2347_v60 }
 0xa85   : > { %v2367_v51 = vpop.xlane.xlu0 %2366 }
 0xa86   : > { %v2385_v29 = vadd.f32 %v2367_v51, %v2353_v35 }
 0xa88   : > { %2393 = vst.msk [vmem:[#allocation5 + $0xd0] sm:$0xff] %vm528_vm3, %v2385_v29 }
 0xa89   : > { %v2361_v25 = vpop.xlane.xlu0 %2360 }
 0xa8a   : > { %v2383_v39 = vadd.f32 %v2361_v25, %v2351_v0 }
 0xa8c   : > { %2391 = vst.msk [vmem:[#allocation5 + $0xc0] sm:$0xff] %vm528_vm3, %v2383_v39 }
 0xa8d   : > { %v2370_v61 = vpop.xlane.xlu1 %2369 }
 0xa8e   : > { %v2386_v59 = vadd.f32 %v2370_v61, %v2354_v44  ;;  %v2358_v44 = vmul.f32 %v5169_v19, %v2350_v37 }
 0xa8f   : > { %v2850_v62 = vld [vmem:[#allocation5 + $0xd0] sm:$0xff] }
 0xa90   : > { %2394 = vst.msk [vmem:[#allocation5 + $0xd8] sm:$0xff] %vm528_vm3, %v2386_v59  ;;  %v2348_v59 = vld [vmem:[#allocation5 + $0xe8] sm:$0xff] }
 0xa91   : > { %v2364_v17 = vpop.xlane.xlu1 %2363  ;;  %v5204_v4 = vpop.permute.xlu0 %2719 }
 0xa92   : > { %v2384_v43 = vadd.f32 %v2364_v17, %v2352_v32  ;;  %v2356_v17 = vmul.f32 %v5091_v11, %v2348_v59 }
 0xa93   : > { %v2848_v27 = vld [vmem:[#allocation5 + $0xc0] sm:$0xff] }
 0xa94   : > { %2392 = vst.msk [vmem:[#allocation5 + $0xc8] sm:$0xff] %vm528_vm3, %v2384_v43  ;;  %3760 = vrcp.f32 %v2848_v27 }
 0xa95   : > { %v5209_v0 = vpop.permute.xlu1 %2439 }
 0xa97   : > { %v2851_v30 = vld [vmem:[#allocation5 + $0xd8] sm:$0xff] }
 0xa9b   : > { %v2849_v52 = vld [vmem:[#allocation5 + $0xc8] sm:$0xff] }
 0xa9c   : > { %3762 = vrcp.f32 %v2849_v52  ;;  %v2944_v52 = vld [vmem:[%s5369_s4] sm:$0xff] }
 0xa9d   : > { %3764 = vrcp.f32 %v2694_v56 }
 0xa9e   : > { %3766 = vrcp.f32 %v2695_v13  ;;  %v3761_v53 = vpop.eup %3760 }
 0xa9f   : > { %3768 = vrcp.f32 %v2772_v54  ;;  %v2399_v54 = vld [vmem:[#allocation6] sm:$0xff] }
 0xaa0   : > { %3770 = vrcp.f32 %v2773_v58  ;;  %v2447_v58 = vmul.f32 %v5188_v57, %v2399_v54 }
 0xaa1   : > { %3772 = vrcp.f32 %v2850_v62  ;;  %v2400_v62 = vld [vmem:[#allocation6 + $0x8] sm:$0xff] }
 0xaa2   : > { %3774 = vrcp.f32 %v2851_v30  ;;  %v2448_v30 = vmul.f32 %v5182_v28, %v2400_v62  ;;  %v2947_v28 = vld [vmem:[%s5369_s4 + $0x18] sm:$0xff] }
 0xaa3   : > { %3776 = vrcp.f32 %v2774_v7  ;;  %v2945_v7 = vld [vmem:[%s5369_s4 + $0x8] sm:$0xff] }
 0xaa4   : > { %3778 = vrcp.f32 %v2775_v18 }
 0xaa6   : > { %v3476_v12 = vpop.f32.mrb[28].mxu0  ;;  %v3763_v14 = vpop.eup %3762 }
 0xaa7   : > { %2568 = vrot.lane.b32.xlu1 %v3476_v12, %s3883_s14  ;;  %v2533_v49 = vpop.f32.mrb[29].mxu0  ;;  %v3765_v47 = vpop.eup %3764 }
 0xaa8   : > { %v3477_v33 = vpop.f32.mrb[30].mxu0  ;;  %v3767_v51 = vpop.eup %3766 }
 0xaa9   : > { %v2536_v6 = vpop.f32.mrb[31].mxu0  ;;  %2570 = vrot.lane.b32.xlu0 %v3477_v33, %s3883_s14  ;;  %v3769_v29 = vpop.eup %3768 }
 0xaaa   : > { %v3771_v39 = vpop.eup %3770 }
 0xaab   : > { %2564 = vrot.lane.b32.xlu1 %v2533_v49, %s3883_s14  ;;  %v3773_v61 = vpop.eup %3772 }
 0xaac   : > { %v3775_v42 = vpop.eup %3774 }
 0xaad   : > { %2566 = vrot.lane.b32.xlu0 %v2536_v6, %s3883_s14  ;;  %v3777_v43 = vpop.eup %3776  ;;  %s238_s14 = scalar_lea.vmem [#allocation7], %s3170_s13 }
 0xaae   : > { %v3779_v24 = vpop.eup %3778  ;;  %s3082_s15 = sshll.u32 %s238_s14, 4  ;;  %s5309_s15 = int_to_ptr.vmem [resolvable:$true] %s3082_s15 }
 0xaaf   : > { %2664 = vperm.xlu1 %3581, %v3749_v36   ;;  %v2449_v36 = vmul.f32 %v5184_v10, %v2401_v45  ;;  %s3791_s27 = scalar_lea.vmem %s5309_s15, 256  ;;  %p3798_p1 = scmp.lt.s32.totalorder %s5309_s15, %s3796_s7 }
 0xab0   : > { %p3792_p12 = scmp.ne.s32.totalorder %s5309_s15, %s3791_s27  ;;  %p3799_p2 = scmp.lt.s32.totalorder %s3797_s8, %s3791_s27 }
 0xab1   : > { %2669 = vperm.xlu0 %3580, %v3751_v34   ;;  %v2402_v34 = vld [vmem:[#allocation6 + $0x18] sm:$0xff] }
 0xab2   : > { %v2450_v13 = vmul.f32 %v5178_v46, %v2402_v34  ;;  %p3793_p13 = pnand %p3792_p12, %p3957_p4  ;;  %p3800_p3 = por %p3799_p2, %p3798_p1 }
 0xab3   : > { %2734 = vperm.xlu1 %3581, %v3753_v21  }
 0xab4   : > { %p3794_p0 = pneg %p3793_p13 }
 0xab5   : > { %2739 = vperm.xlu0 %3580, %v3755_v9  }
 0xab6   : > { %p3801_p5 = pnand %p3800_p3, %p3794_p0 }
 0xab7   : > { %2804 = vperm.xlu1 %3581, %v3757_v41  }
 0xab9   : > { %2809 = vperm.xlu0 %3580, %v3759_v26   ;;  %v2946_v26 = vld [vmem:[%s5369_s4 + $0x10] sm:$0xff] }
 0xabb   : > { %2874 = vperm.xlu1 %3581, %v3761_v53  }
 0xabd   : > { %2879 = vperm.xlu0 %3580, %v3763_v14  }
 0xabe   : > { %v2379_v50 = vpop.xlane.xlu0 %2378 }
 0xabf   : > { %v2389_v35 = vadd.f32 %v2379_v50, %v2357_v15  ;;  %2744 = vperm.xlu1 %3581, %v3765_v47  }
 0xac1   : > { %2397 = vst.msk [vmem:[#allocation5 + $0xf0] sm:$0xff] %vm528_vm3, %v2389_v35  ;;  %2749 = vperm.xlu0 %3580, %v3767_v51  }
 0xac2   : > { %v2373_v25 = vpop.xlane.xlu0 %2372 }
 0xac3   : > { %2814 = vperm.xlu1 %3581, %v3769_v29   ;;  %v2387_v20 = vadd.f32 %v2373_v25, %v2355_v2 }
 0xac5   : > { %2395 = vst.msk [vmem:[#allocation5 + $0xe0] sm:$0xff] %vm528_vm3, %v2387_v20  ;;  %2819 = vperm.xlu0 %3580, %v3771_v39  }
 0xac6   : > { %v2382_v22 = vpop.xlane.xlu1 %2381 }
 0xac7   : > { %2884 = vperm.xlu1 %3581, %v3773_v61   ;;  %v2390_v32 = vadd.f32 %v2382_v22, %v2358_v44 }
 0xac8   : > { %v2854_v19 = vld [vmem:[#allocation5 + $0xf0] sm:$0xff] }
 0xac9   : > { %2398 = vst.msk [vmem:[#allocation5 + $0xf8] sm:$0xff] %vm528_vm3, %v2390_v32  ;;  %2889 = vperm.xlu0 %3580, %v3775_v42  }
 0xaca   : > { %v2376_v55 = vpop.xlane.xlu1 %2375  ;;  %v5216_v33 = vpop.permute.xlu0 %2444 }
 0xacb   : > { %2824 = vperm.xlu1 %3581, %v3777_v43   ;;  %v2388_v3 = vadd.f32 %v2376_v55, %v2356_v17 }
 0xacc   : > { %v2852_v12 = vld [vmem:[#allocation5 + $0xe0] sm:$0xff] }
 0xacd   : > { %3780 = vrcp.f32 %v2852_v12  ;;  %2396 = vst.msk [vmem:[#allocation5 + $0xe8] sm:$0xff] %vm528_vm3, %v2388_v3  ;;  %2829 = vperm.xlu0 %3580, %v3779_v24   ;;  %v2406_v3 = vld [vmem:[#allocation6 + $0x38] sm:$0xff] }
 0xace   : > { %3782 = vrcp.f32 %v2854_v19  ;;  %v5218_v11 = vpop.permute.xlu1 %2654  ;;  %v5220_v27 = vpop.permute.xlu0 %2659  ;;  %v2454_v12 = vmul.f32 %v5216_v33, %v2406_v3  ;;  %v2403_v19 = vld [vmem:[#allocation6 + $0x20] sm:$0xff] }
 0xad0   : > { %v2855_v49 = vld [vmem:[#allocation5 + $0xf8] sm:$0xff] }
 0xad4   : > { %v2853_v5 = vld [vmem:[#allocation5 + $0xe8] sm:$0xff] }
 0xad5   : > { %3784 = vrcp.f32 %v2853_v5 }
 0xad6   : > { %3786 = vrcp.f32 %v2855_v49  ;;  %v2451_v49 = vmul.f32 %v5193_v1, %v2403_v19 }
 0xad7   : > { %v3781_v31 = vpop.eup %3780 }
 0xad8   : > { %2894 = vperm.xlu1 %3581, %v3781_v31   ;;  %v3783_v6 = vpop.eup %3782 }
 0xadc   : > { %2904 = vperm.xlu1 %3581, %v3783_v6   ;;  %v2404_v6 = vld [vmem:[#allocation6 + $0x28] sm:$0xff] }
 0xade   : > { %v2561_v56 = vpop.permute.xlu1 %2560 }
 0xadf   : > { %v3785_v21 = vpop.eup %3784  ;;  %v2582_v9 = vadd.f32 %v2561_v56, %v2449_v36  ;;  %v2452_v36 = vmul.f32 %v5186_v63, %v2404_v6 }
 0xae0   : > { %v2563_v41 = vpop.permute.xlu0 %2562  ;;  %2950 = vperm.xlu1 %3581, %v2944_v52   ;;  %2899 = vperm.xlu0 %3580, %v3785_v21   ;;  %v3787_v40 = vpop.eup %3786 }
 0xae1   : > { %2591 = vst.msk [vmem:[#allocation6 + $0x10] sm:$0xff] %vm2588_vm6, %v2582_v9  ;;  %v2583_v10 = vadd.f32 %v2563_v41, %v2450_v13 }
 0xae2   : > { %v2557_v53 = vpop.permute.xlu1 %2556 }
 0xae3   : > { %2592 = vst.msk [vmem:[#allocation6 + $0x18] sm:$0xff] %vm2588_vm6, %v2583_v10  ;;  %v2580_v46 = vadd.f32 %v2557_v53, %v2447_v58 }
 0xae4   : > { %v2559_v14 = vpop.permute.xlu0 %2558  ;;  %2960 = vperm.xlu1 %3581, %v2946_v26   ;;  %2909 = vperm.xlu0 %3580, %v3787_v40  }
 0xae5   : > { %2589 = vst.msk [vmem:[#allocation6] sm:$0xff] %vm2588_vm6, %v2580_v46  ;;  %v2581_v57 = vadd.f32 %v2559_v14, %v2448_v30 }
 0xae7   : > { %2590 = vst.msk [vmem:[#allocation6 + $0x8] sm:$0xff] %vm2588_vm6, %v2581_v57 }
 0xae8   : > { %2955 = vperm.xlu0 %3580, %v2945_v7   ;;  %v2626_v15 = vld [vmem:[#allocation6 + $0x10] sm:$0xff] }
 0xae9   : > { %v2674_v47 = vmul.f32 %v5167_v16, %v2626_v15 }
 0xaea   : > { %v2627_v50 = vld [vmem:[#allocation6 + $0x18] sm:$0xff] }
 0xaeb   : > { %2682 = vst.msk [vmem:[#allocation6 + $0x10] sm:$0xff] %vm613_vm2, %v2674_v47  ;;  %v2675_v60 = vmul.f32 %v5165_v38, %v2627_v50  ;;  %v3594_v38 = vld [vmem:[%s5368_s3] sm:$0xff]  }
 0xaec   : > { %v2624_v18 = vld [vmem:[#allocation6] sm:$0xff]  ;;  %2965 = vperm.xlu0 %3580, %v2947_v28   ;;  %3486 = vmatprep.mubr.msk.bf16.mxu0 %vm299_vm0, %v3594_v38 }
 0xaed   : > { %v2672_v35 = vmul.f32 %v5161_v48, %v2624_v18  ;;  %2683 = vst.msk [vmem:[#allocation6 + $0x18] sm:$0xff] %vm613_vm2, %v2675_v60 }
 0xaee   : > { %v2625_v51 = vld [vmem:[#allocation6 + $0x8] sm:$0xff] }
 0xaef   : > { %2680 = vst.msk [vmem:[#allocation6] sm:$0xff] %vm613_vm2, %v2672_v35  ;;  %v2673_v2 = vmul.f32 %v5159_v8, %v2625_v51 }
 0xaf1   : > { %2681 = vst.msk [vmem:[#allocation6 + $0x8] sm:$0xff] %vm613_vm2, %v2673_v2 }
 0xaf2   : > { %v2706_v29 = vld [vmem:[#allocation6 + $0x10] sm:$0xff] }
 0xaf3   : > { %v2725_v16 = vpop.permute.xlu1 %2724 }
 0xaf4   : > { %v2754_v25 = vmul.f32 %v2725_v16, %v2706_v29  ;;  %v2707_v37 = vld [vmem:[#allocation6 + $0x18] sm:$0xff] }
 0xaf5   : > { %v2730_v20 = vpop.permute.xlu0 %2729 }
 0xaf6   : > { %2762 = vst.msk [vmem:[#allocation6 + $0x10] sm:$0xff] %vm1562_vm4, %v2754_v25  ;;  %v2755_v48 = vmul.f32 %v2730_v20, %v2707_v37  ;;  %v2704_v39 = vld [vmem:[#allocation6] sm:$0xff] }
 0xaf7   : > { %v2752_v44 = vmul.f32 %v5180_v23, %v2704_v39  ;;  %v2795_v59 = vpop.permute.xlu1 %2794  ;;  %v2405_v23 = vld [vmem:[#allocation6 + $0x30] sm:$0xff] }
 0xaf8   : > { %2763 = vst.msk [vmem:[#allocation6 + $0x18] sm:$0xff] %vm1562_vm4, %v2755_v48  ;;  %v2705_v8 = vld [vmem:[#allocation6 + $0x8] sm:$0xff]  ;;  %v2453_v55 = vmul.f32 %v5209_v0, %v2405_v23 }
 0xaf9   : > { %2760 = vst.msk [vmem:[#allocation6] sm:$0xff] %vm1562_vm4, %v2752_v44  ;;  %v2753_v61 = vmul.f32 %v5204_v4, %v2705_v8  ;;  %v2800_v42 = vpop.permute.xlu0 %2799 }
 0xafb   : > { %2761 = vst.msk [vmem:[#allocation6 + $0x8] sm:$0xff] %vm1562_vm4, %v2753_v61 }
 0xafd   : > { %v2786_v40 = vld [vmem:[#allocation6 + $0x10] sm:$0xff] }
 0xaff   : > { %v2787_v14 = vld [vmem:[#allocation6 + $0x18] sm:$0xff] }
 0xb00   : > { %v2784_v22 = vld [vmem:[#allocation6] sm:$0xff] }
 0xb01   : > { %v2832_v32 = vmul.f32 %v2795_v59, %v2784_v22 }
 0xb02   : > { %v2785_v17 = vld [vmem:[#allocation6 + $0x8] sm:$0xff] }
 0xb03   : > { %2840 = vst.msk [vmem:[#allocation6] sm:$0xff] %vm2075_vm5, %v2832_v32  ;;  %v2833_v43 = vmul.f32 %v2800_v42, %v2785_v17 }
 0xb05   : > { %2841 = vst.msk [vmem:[#allocation6 + $0x8] sm:$0xff] %vm2075_vm5, %v2833_v43 }
 0xb0a   : > { %v2864_v15 = vld [vmem:[#allocation6] sm:$0xff] }
 0xb0c   : > { %v2865_v50 = vld [vmem:[#allocation6 + $0x8] sm:$0xff] }
 0xb19   : > { %v2569_v24 = vpop.permute.xlu1 %2568 }
 0xb1a   : > { %v2586_v4 = vadd.f32 %v2569_v24, %v2453_v55 }
 0xb1b   : > { %v2571_v5 = vpop.permute.xlu0 %2570 }
 0xb1c   : > { %2595 = vst.msk [vmem:[#allocation6 + $0x30] sm:$0xff] %vm2588_vm6, %v2586_v4  ;;  %v2587_v31 = vadd.f32 %v2571_v5, %v2454_v12 }
 0xb1d   : > { %v2565_v45 = vpop.permute.xlu1 %2564 }
 0xb1e   : > { %2596 = vst.msk [vmem:[#allocation6 + $0x38] sm:$0xff] %vm2588_vm6, %v2587_v31  ;;  %v2584_v52 = vadd.f32 %v2565_v45, %v2451_v49 }
 0xb1f   : > { %v2567_v0 = vpop.permute.xlu0 %2566 }
 0xb20   : > { %2593 = vst.msk [vmem:[#allocation6 + $0x20] sm:$0xff] %vm2588_vm6, %v2584_v52  ;;  %v2585_v34 = vadd.f32 %v2567_v0, %v2452_v36 }
 0xb22   : > { %2594 = vst.msk [vmem:[#allocation6 + $0x28] sm:$0xff] %vm2588_vm6, %v2585_v34 }
 0xb23   : > { %v2630_v63 = vld [vmem:[#allocation6 + $0x30] sm:$0xff] }
 0xb25   : > { %v2631_v54 = vld [vmem:[#allocation6 + $0x38] sm:$0xff] }
 0xb27   : > { %v2628_v33 = vld [vmem:[#allocation6 + $0x20] sm:$0xff] }
 0xb28   : > { %v2676_v56 = vmul.f32 %v5218_v11, %v2628_v33 }
 0xb29   : > { %v2629_v1 = vld [vmem:[#allocation6 + $0x28] sm:$0xff] }
 0xb2a   : > { %2684 = vst.msk [vmem:[#allocation6 + $0x20] sm:$0xff] %vm613_vm2, %v2676_v56  ;;  %v2677_v21 = vmul.f32 %v5220_v27, %v2629_v1 }
 0xb2c   : > { %2685 = vst.msk [vmem:[#allocation6 + $0x28] sm:$0xff] %vm613_vm2, %v2677_v21 }
 0xb2e   : > { %v2665_v13 = vpop.permute.xlu1 %2664 }
 0xb2f   : > { %v2678_v9 = vmul.f32 %v2665_v13, %v2630_v63 }
 0xb30   : > { %v2670_v41 = vpop.permute.xlu0 %2669 }
 0xb31   : > { %2686 = vst.msk [vmem:[#allocation6 + $0x30] sm:$0xff] %vm613_vm2, %v2678_v9  ;;  %v2679_v58 = vmul.f32 %v2670_v41, %v2631_v54  ;;  %v2708_v10 = vld [vmem:[#allocation6 + $0x20] sm:$0xff] }
 0xb32   : > { %v2735_v26 = vpop.permute.xlu1 %2734 }
 0xb33   : > { %2687 = vst.msk [vmem:[#allocation6 + $0x38] sm:$0xff] %vm613_vm2, %v2679_v58  ;;  %v2756_v11 = vmul.f32 %v2735_v26, %v2708_v10  ;;  %v2709_v62 = vld [vmem:[#allocation6 + $0x28] sm:$0xff] }
 0xb34   : > { %v2740_v53 = vpop.permute.xlu0 %2739 }
 0xb35   : > { %2764 = vst.msk [vmem:[#allocation6 + $0x20] sm:$0xff] %vm1562_vm4, %v2756_v11  ;;  %v2757_v27 = vmul.f32 %v2740_v53, %v2709_v62 }
 0xb36   : > { %v2805_v30 = vpop.permute.xlu1 %2804 }
 0xb37   : > { %2765 = vst.msk [vmem:[#allocation6 + $0x28] sm:$0xff] %vm1562_vm4, %v2757_v27  ;;  %v2834_v46 = vmul.f32 %v2805_v30, %v2786_v40  ;;  %v3595_v40 = vld [vmem:[%s5368_s3 + $0x8] sm:$0xff]  }
 0xb38   : > { %v2810_v57 = vpop.permute.xlu0 %2809  ;;  %v2710_v35 = vld [vmem:[#allocation6 + $0x30] sm:$0xff] }
 0xb39   : > { %2842 = vst.msk [vmem:[#allocation6 + $0x10] sm:$0xff] %vm2075_vm5, %v2834_v46  ;;  %v2835_v7 = vmul.f32 %v2810_v57, %v2787_v14 }
 0xb3a   : > { %v2875_v28 = vpop.permute.xlu1 %2874  ;;  %v2711_v29 = vld [vmem:[#allocation6 + $0x38] sm:$0xff] }
 0xb3b   : > { %2843 = vst.msk [vmem:[#allocation6 + $0x18] sm:$0xff] %vm2075_vm5, %v2835_v7  ;;  %v2912_v47 = vmul.f32 %v2875_v28, %v2864_v15 }
 0xb3c   : > { %v2880_v60 = vpop.permute.xlu0 %2879  ;;  %v2788_v37 = vld [vmem:[#allocation6 + $0x20] sm:$0xff] }
 0xb3d   : > { %2920 = vst.msk [vmem:[#allocation6] sm:$0xff] %vm2588_vm6, %v2912_v47  ;;  %v2913_v18 = vmul.f32 %v2880_v60, %v2865_v50 }
 0xb3e   : > { %v2745_v51 = vpop.permute.xlu1 %2744  ;;  %v2789_v48 = vld [vmem:[#allocation6 + $0x28] sm:$0xff] }
 0xb3f   : > { %2921 = vst.msk [vmem:[#allocation6 + $0x8] sm:$0xff] %vm2588_vm6, %v2913_v18  ;;  %v2758_v2 = vmul.f32 %v2745_v51, %v2710_v35 }
 0xb40   : > { %v2750_v16 = vpop.permute.xlu0 %2749  ;;  %v2866_v8 = vld [vmem:[#allocation6 + $0x10] sm:$0xff] }
 0xb41   : > { %2766 = vst.msk [vmem:[#allocation6 + $0x30] sm:$0xff] %vm1562_vm4, %v2758_v2  ;;  %v2759_v25 = vmul.f32 %v2750_v16, %v2711_v29 }
 0xb42   : > { %v2815_v20 = vpop.permute.xlu1 %2814  ;;  %v2867_v17 = vld [vmem:[#allocation6 + $0x18] sm:$0xff] }
 0xb43   : > { %2767 = vst.msk [vmem:[#allocation6 + $0x38] sm:$0xff] %vm1562_vm4, %v2759_v25  ;;  %v2836_v38 = vmul.f32 %v2815_v20, %v2788_v37 }
 0xb44   : > { %v2820_v39 = vpop.permute.xlu0 %2819  ;;  %v2928_v22 = vld [vmem:[#allocation6] sm:$0xff] }
 0xb45   : > { %2844 = vst.msk [vmem:[#allocation6 + $0x20] sm:$0xff] %vm2075_vm5, %v2836_v38  ;;  %v2837_v44 = vmul.f32 %v2820_v39, %v2789_v48 }
 0xb46   : > { %v2885_v61 = vpop.permute.xlu1 %2884  ;;  %v2929_v59 = vld [vmem:[#allocation6 + $0x8] sm:$0xff] }
 0xb47   : > { %2845 = vst.msk [vmem:[#allocation6 + $0x28] sm:$0xff] %vm2075_vm5, %v2837_v44  ;;  %v2914_v32 = vmul.f32 %v2885_v61, %v2866_v8  ;;  %v2936_v42 = vpack.c.bf16 %v2929_v59, %v2928_v22 }
 0xb48   : > { %v2890_v43 = vpop.permute.xlu0 %2889  ;;  %v2790_v3 = vld [vmem:[#allocation6 + $0x30] sm:$0xff] }
 0xb49   : > { %2922 = vst.msk [vmem:[#allocation6 + $0x10] sm:$0xff] %vm2588_vm6, %v2914_v32  ;;  %v2915_v23 = vmul.f32 %v2890_v43, %v2867_v17  ;;  %3506 = vmatprep.subr.msk.bf16.mxu0 %vm299_vm0, %v2936_v42  ;;  %v2986_v55 = vsel %vm299_vm0, %v2936_v42, 0 }
 0xb4a   : > { %3479 = vmatpush3.bf16.xpose.msra.mxu0 %v2986_v55  ;;  %v2825_v24 = vpop.permute.xlu1 %2824  ;;  %v2791_v4 = vld [vmem:[#allocation6 + $0x38] sm:$0xff] }
 0xb4b   : > { %2923 = vst.msk [vmem:[#allocation6 + $0x18] sm:$0xff] %vm2588_vm6, %v2915_v23  ;;  %v2838_v12 = vmul.f32 %v2825_v24, %v2790_v3 }
 0xb4c   : > { %v2830_v19 = vpop.permute.xlu0 %2829  ;;  %v2868_v36 = vld [vmem:[#allocation6 + $0x20] sm:$0xff] }
 0xb4d   : > { %2846 = vst.msk [vmem:[#allocation6 + $0x30] sm:$0xff] %vm2075_vm5, %v2838_v12  ;;  %v2839_v5 = vmul.f32 %v2830_v19, %v2791_v4 }
 0xb4e   : > { %v2869_v1 = vld [vmem:[#allocation6 + $0x28] sm:$0xff] }
 0xb4f   : > { %2847 = vst.msk [vmem:[#allocation6 + $0x38] sm:$0xff] %vm2075_vm5, %v2839_v5 }
 0xb50   : > { %v2930_v49 = vld [vmem:[#allocation6 + $0x10] sm:$0xff] }
 0xb52   : > { %v2931_v31 = vld [vmem:[#allocation6 + $0x18] sm:$0xff] }
 0xb53   : > { %v2937_v6 = vpack.c.bf16 %v2931_v31, %v2930_v49 }
 0xb54   : > { %v2870_v34 = vld [vmem:[#allocation6 + $0x30] sm:$0xff] }
 0xb55   : > { %3507 = vmatprep.subr.msk.bf16.mxu0 %vm299_vm0, %v2937_v6  ;;  %v2989_v45 = vsel %vm299_vm0, %v2937_v6, 0 }
 0xb56   : > { %3481 = vmatpush3.bf16.xpose.msra.mxu0 %v2989_v45  ;;  %v2871_v13 = vld [vmem:[#allocation6 + $0x38] sm:$0xff] }
 0xb57   : > { %v2895_v52 = vpop.permute.xlu1 %2894 }
 0xb58   : > { %v2916_v0 = vmul.f32 %v2895_v52, %v2868_v36 }
 0xb5a   : > { %2924 = vst.msk [vmem:[#allocation6 + $0x20] sm:$0xff] %vm2588_vm6, %v2916_v0 }
 0xb5b   : > { %v2905_v33 = vpop.permute.xlu1 %2904 }
 0xb5c   : > { %v2918_v56 = vmul.f32 %v2905_v33, %v2870_v34 }
 0xb5e   : > { %2926 = vst.msk [vmem:[#allocation6 + $0x30] sm:$0xff] %vm2588_vm6, %v2918_v56 }
 0xb5f   : > { %v2900_v21 = vpop.permute.xlu0 %2899  ;;  %v2951_v30 = vpop.permute.xlu1 %2950 }
 0xb60   : > { %v2917_v63 = vmul.f32 %v2900_v21, %v2869_v1 }
 0xb61   : > { %v2932_v41 = vld [vmem:[#allocation6 + $0x20] sm:$0xff] }
 0xb62   : > { %2925 = vst.msk [vmem:[#allocation6 + $0x28] sm:$0xff] %vm2588_vm6, %v2917_v63 }
 0xb63   : > { %v2910_v9 = vpop.permute.xlu0 %2909  ;;  %v2961_v14 = vpop.permute.xlu1 %2960 }
 0xb64   : > { %v2919_v54 = vmul.f32 %v2910_v9, %v2871_v13 }
 0xb65   : > { %v2934_v11 = vld [vmem:[#allocation6 + $0x30] sm:$0xff] }
 0xb66   : > { %2927 = vst.msk [vmem:[#allocation6 + $0x38] sm:$0xff] %vm2588_vm6, %v2919_v54 }
 0xb67   : > { %v2956_v46 = vpop.permute.xlu0 %2955 }
 0xb69   : > { %v2933_v58 = vld [vmem:[#allocation6 + $0x28] sm:$0xff] }
 0xb6a   : > { %v2938_v10 = vpack.c.bf16 %v2933_v58, %v2932_v41 }
 0xb6b   : > { %v2966_v28 = vpop.permute.xlu0 %2965 }
 0xb6c   : > { %3508 = vmatprep.subr.msk.bf16.mxu0 %vm299_vm0, %v2938_v10  ;;  %v2992_v26 = vsel %vm299_vm0, %v2938_v10, 0 }
 0xb6d   : > { %3483 = vmatpush3.bf16.xpose.msra.mxu0 %v2992_v26  ;;  %v2935_v62 = vld [vmem:[#allocation6 + $0x38] sm:$0xff] }
 0xb6e   : > { %v2939_v53 = vpack.c.bf16 %v2935_v62, %v2934_v11 }
 0xb70   : > { %3509 = vmatprep.subr.msk.bf16.mxu0 %vm299_vm0, %v2939_v53  ;;  %v2995_v27 = vsel %vm299_vm0, %v2939_v53, 0 }
 0xb75   : > { %3485 = vmatpush3.bf16.xpose.msra.mxu0 %v2995_v27 }
 0xb7c   : > { %3487 = vmatmul.mubr.msk.bf16.vlgmr.msra.gmra.mrb[32].mxu0 %vm299_vm0, %v3595_v40 }
 0xc4f   : > { %v3488_v57 = vpop.f32.mrb[32].mxu0 }
 0xc50   : > { %v3040_v7 = vadd.f32 %v3488_v57, %v2961_v14  ;;  %v3031_v15 = vpop.f32.mrb[33].mxu0 }
 0xc51   : > { %v3032_v47 = vadd.f32 %v3031_v15, %v2951_v30  ;;  %v3489_v50 = vpop.f32.mrb[34].mxu0 }
 0xc52   : > { %v3241_v60 = vpack.c.bf16 %v3040_v7, %v3040_v7  ;;  %v3043_v18 = vadd.f32 %v3489_v50, %v2966_v28  ;;  %v3034_v35 = vpop.f32.mrb[35].mxu0 }
 0xc53   : > { %v3239_v51 = vpack.c.bf16 %v3032_v47, %v3032_v47  ;;  %v3035_v2 = vadd.f32 %v3034_v35, %v2956_v46 }
 0xc54   : > { %3065 = vst.msk [vmem:[%s238_s14 + $0x8] sm:$0xf] %vm3062_vm7, %v3241_v60  ;;  %v3242_v29 = vpack.c.bf16 %v3043_v18, %v3043_v18 }
 0xc55   : > { %3063 = vst.msk [vmem:[%s238_s14] sm:$0xf] %vm3062_vm7, %v3239_v51  ;;  %v3240_v16 = vpack.c.bf16 %v3035_v2, %v3035_v2 }
 0xc56   : > { %3066 = vst.msk [vmem:[%s238_s14 + $0xc] sm:$0xf] %vm3062_vm7, %v3242_v29 }
 0xc57   : > { %3064 = vst.msk [vmem:[%s238_s14 + $0x4] sm:$0xf] %vm3062_vm7, %v3240_v16 }
 0xc58   : > { %3804 = shalt.err (!%p3801_p5)
}
 0xc59   : > { %s3805_s9 = scalar_lea.hbm %s5315_s25, 256  ;;  %s3809_s12 = scalar_lea.hbm %s5370_s5, 512 }
 0xc5a   : > { %p3806_p6 = scmp.ne.s32.totalorder %s5315_s25, %s3805_s9  ;;  %p3810_p10 = scmp.lt.u32.totalorder %s5315_s25, %s5370_s5 }
 0xc5b   : > { %p3811_p11 = scmp.lt.u32.totalorder %s3809_s12, %s3805_s9  ;;  %p3813_p13 = scmp.lt.u32.totalorder %s3805_s9, %s5315_s25 }
 0xc5c   : > { %p3807_p7 = pnand %p3806_p6, %p3957_p4 }
 0xc5d   : > { %p3812_p12 = por %p3811_p11, %p3810_p10 }
 0xc5e   : > { %p3808_p9 = pneg %p3807_p7 }
 0xc5f   : > { %p3814_p0 = por %p3813_p13, %p3812_p12 }
 0xc61   : > { %p3815_p1 = pnand %p3814_p0, %p3808_p9 }
 0xc63   : > { %3818 = shalt.err (!%p3815_p1)
}
 0xc64   : > { %s3885_s16 = smov 64   ;;  %s3886_s17 = smov 4  }
 0xc65   : > { %3510 = dma.vmem_to_hbm [thread:$0]  (%p3957_p4), %s5309_s15, 256, %s5315_s25, %s5319_s21, %s3885_s16, %s3885_s16, %s3886_s17  }
 0xc66 PF: > { %p3516_p2 = scmp.ge.s32.totalorder %s3869_s23, 2  ;;  %s3097_s24 = sand.u32 1, %s3849_s18  }
 0xc67   : > { %s3098_s27 = scalar_lea.sflag [#allocation8], %s3097_s24 }
 0xc68   : > { %p3513_p3 = pnand %p3516_p2, %p3964_p8 }
 0xc6a   : > { %3844 = dma.done.wait (!%p3513_p3), %s3098_s27, 256  }
 0xc6b   : > { %3846 = vsyncadd (!%p3513_p3), %s3098_s27, 4294967040  ;;  %s18_s23 = sadd.s32 1, %s3869_s23   ;;  %s5489_s18 = smov %s3853_s19 }
 0xc6c   : > { %p15_p5 = scmp.ge.s32.totalorder %s18_s23, 4   ;;  %s5490_s19 = smov %s3857_s20 }
 0xc6d   : > { %s5491_s20 = smov %s3970_s6  ;;  %s5492_s21 = smov %s3865_s22 }
 0xc6e   : > { %s5493_s22 = smov %s5495_s26  ;;  %17 = sbr.rel (!%p15_p5) target bundleno = 4 (0x4), region = 97 }
 0xc75   :  { %3103 = vsyncpa [#allocation8], 1 }
 0xc76   :  { %3105 = vsyncpa [#allocation8 + $0x1], 1 }

</bundles_post_ra>
